<compile_context>
chip_gen: v7x
topology: tpu7x:2x2x1
jax: 0.10.0
libtpu: 0.0.40
codegen_flags: <defaults>
</compile_context>

<pallas_src>
import functools

import jax
import jax.numpy as jnp
from jax import lax
from jax.experimental import pallas as pl
from jax.experimental.pallas import tpu as pltpu

F32 = jnp.float32
BF16 = jnp.bfloat16


def lpmnet_kernel(points_ref,
                  w1_ref, b1_ref, w2_ref, b2_ref, w3_ref, b3_ref,
                  w4a_ref, w4b_ref, b4_ref, w5_ref, b5_ref,
                  w6_ref, b6_ref, w7_ref, b7_ref,
                  wd1_ref, bd1_ref, wd2_ref, bd2_ref, wd3_ref, bd3_ref,
                  seg_ref, rec_ref,
                  *, part_count):
    bb, n, _ = points_ref.shape                                  # batch block, points
    m = bb * n

    def mmb(x, w_ref, b_ref=None):
        # bf16 x bf16 MXU matmul with f32 accumulation (weights arrive as bf16).
        y = jnp.dot(x.astype(BF16), w_ref[...], preferred_element_type=F32)
        return y if b_ref is None else y + b_ref[...]

    pts = points_ref[...].reshape(m, 3)                          # (m, 3) f32

    # ---- encoder ----
    # layer 1: K=3 would waste the MXU systolic depth -> 3 VPU multiply-adds.
    w1 = w1_ref[...]
    h = (pts[:, 0:1] * w1[0:1, :] + pts[:, 1:2] * w1[1:2, :]
         + pts[:, 2:3] * w1[2:3, :] + b1_ref[...])
    h = jnp.maximum(h, 0.0)                                      # (m, 64)
    h = jnp.maximum(mmb(h, w2_ref, b2_ref), 0.0)                 # (m, 128)
    pf = mmb(h, w3_ref, b3_ref)                                  # (m, L) point feats
    latent = pf.shape[1]

    # ---- segmentation head ----
    gc = jnp.max(pf.reshape(bb, n, latent), axis=1)              # (bb, L) global code
    # torch.cat((pf, gc), channel) followed by a 1x1 conv == split matmul:
    s = mmb(pf, w4a_ref).reshape(bb, n, latent)
    s = s + mmb(gc, w4b_ref)[:, None, :]
    s = s.reshape(m, latent) + b4_ref[...]
    s = jnp.maximum(s, 0.0)
    s = jnp.maximum(mmb(s, w5_ref, b5_ref), 0.0)                 # (m, L/2)
    s = jnp.maximum(mmb(s, w6_ref, b6_ref), 0.0)                 # (m, L/4)
    logits = mmb(s, w7_ref, b7_ref)                              # (m, CPAD) lane-dense
    cpad = logits.shape[1]
    seg_ref[...] = logits.reshape(bb, n, cpad)

    # ---- argmax labels (first-max semantics) ----
    # Padded channels carry a -1e9 bias so they can never win the argmax.
    row_max = jnp.max(logits, axis=1, keepdims=True)
    col = lax.broadcasted_iota(jnp.int32, logits.shape, 1)
    labels = jnp.min(jnp.where(logits == row_max, col, cpad),
                     axis=1, keepdims=True)                      # (m, 1) int32

    # ---- part-wise masked max pooling, collapsed to one masked reduce ----
    mask = (labels >= 1).astype(F32)                             # (m, 1)
    gcode = jnp.max((pf * mask).reshape(bb, n, latent), axis=1)  # (bb, L)
    if part_count >= 2:
        # the per-part loop carries an implicit 0 floor whenever part_count >= 2
        gcode = jnp.maximum(gcode, 0.0)

    # ---- decoder (batched over the bb clouds of this grid step) ----
    d = jnp.maximum(mmb(gcode, wd1_ref, bd1_ref), 0.0)           # (bb, N/2)
    d = jnp.maximum(mmb(d, wd2_ref, bd2_ref), 0.0)               # (bb, N)
    d = jnp.tanh(mmb(d, wd3_ref, bd3_ref))                       # (bb, 3N)
    rec_ref[...] = d.reshape(bb, 1, 3 * n)


def _choose_batch_block(batch, n_points, target_rows=1024):
    """Largest divisor of `batch` that keeps ~1-2k matmul rows per grid step
    while leaving >= 2 grid steps (so both v7x TensorCores get work)."""
    cap = max(1, target_rows // max(n_points, 1))
    if batch > 1:
        cap = min(cap, max(1, batch // 2))
    bb = 1
    for d in range(1, min(batch, cap) + 1):
        if batch % d == 0:
            bb = d
    return bb


def lpmnet_forward(x, params, *, part_count):
    """x: (B, N, C>=3) point cloud. Returns (seg_logits (B,N,P+1), recon (B,N,3))."""
    points = x[:, :, :3].astype(F32)
    B, N, _ = points.shape
    L = params["w3"].shape[1]
    C = part_count + 1
    CPAD = ((C + 127) // 128) * 128          # lane-dense seg-output channel width

    # Pad the final seg layer to CPAD output channels; pad channels get a large
    # negative bias so they never win the in-kernel argmax.
    w7p = jnp.zeros((params["w7"].shape[0], CPAD), F32).at[:, :C].set(params["w7"])
    b7p = jnp.full((1, CPAD), -1e9, F32).at[:, :C].set(params["b7"])

    bf = lambda w: w.astype(BF16)            # MXU weights as bf16 (halves weight DMA)
    weights = [
        params["w1"], params["b1"],                             # VPU layer: f32
        bf(params["w2"]), params["b2"],
        bf(params["w3"]), params["b3"],
        bf(params["w4a"]), bf(params["w4b"]), params["b4"],
        bf(params["w5"]), params["b5"],
        bf(params["w6"]), params["b6"],
        bf(w7p), b7p,
        bf(params["wd1"]), params["bd1"],
        bf(params["wd2"]), params["bd2"],
        bf(params["wd3"]), params["bd3"],
    ]

    Bb = _choose_batch_block(B, N)
    grid = (B // Bb,)

    def full_spec(a):
        nd = a.ndim
        return pl.BlockSpec(a.shape, lambda g, _nd=nd: (0,) * _nd)

    in_specs = [pl.BlockSpec((Bb, N, 3), lambda g: (g, 0, 0))]
    in_specs += [full_spec(w) for w in weights]
    out_specs = (pl.BlockSpec((Bb, N, CPAD), lambda g: (g, 0, 0)),
                 pl.BlockSpec((Bb, 1, 3 * N), lambda g: (g, 0, 0)))
    out_shape = (jax.ShapeDtypeStruct((B, N, CPAD), F32),
                 jax.ShapeDtypeStruct((B, 1, 3 * N), F32))

    # Advisory cost estimate so XLA schedules/overlaps the custom call sensibly.
    per_point = 2 * (64 * 128 + 128 * L + L * L + L * (L // 2)
                     + (L // 2) * (L // 4) + (L // 4) * CPAD) + 6 * 64
    per_cloud = 2 * (L * L + L * (N // 2) + (N // 2) * N + N * 3 * N)
    flops = int(B * (N * per_point + per_cloud))
    w_bytes = sum(int(w.size) * w.dtype.itemsize for w in weights)
    bytes_accessed = int(points.size * 4 + w_bytes + B * N * CPAD * 4 + B * 3 * N * 4)
    cost = pl.CostEstimate(flops=flops, transcendentals=int(3 * B * N),
                           bytes_accessed=bytes_accessed)

    seg_padded, rec = pl.pallas_call(
        functools.partial(lpmnet_kernel, part_count=part_count),
        out_shape=out_shape,
        grid_spec=pltpu.PrefetchScalarGridSpec(
            num_scalar_prefetch=0,
            grid=grid,
            in_specs=in_specs,
            out_specs=out_specs),
        compiler_params=pltpu.CompilerParams(
            dimension_semantics=("parallel",)),
        cost_estimate=cost,
    )(points, *weights)

    seg = seg_padded[:, :, :C]
    return seg, rec.reshape(B, N, 3)


# ------------------------- deterministic parameter init -------------------------

def _dense(key, fan_in, fan_out):
    k1, k2 = jax.random.split(key)
    w = jax.random.normal(k1, (fan_in, fan_out), F32) / jnp.sqrt(float(fan_in))
    b = 0.05 * jax.random.normal(k2, (1, fan_out), F32)
    return w, b


def _bn(key, c):
    k1, k2, k3, k4 = jax.random.split(key, 4)
    gamma = 1.0 + 0.1 * jax.random.normal(k1, (c,), F32)
    beta = 0.05 * jax.random.normal(k2, (c,), F32)
    mean = 0.05 * jax.random.normal(k3, (c,), F32)
    var = 0.5 + jax.random.uniform(k4, (c,), F32)
    return gamma, beta, mean, var


def _fold_bn(w, b, bn_params, eps=1e-5):
    gamma, beta, mean, var = bn_params
    scale = gamma / jnp.sqrt(var + eps)
    return w * scale[None, :], (b - mean[None, :]) * scale[None, :] + beta[None, :]


def init_params(key, n_points, latent, part_count):
    keys = jax.random.split(key, 20)
    p = {}
    # encoder
    w, b = _dense(keys[0], 3, 64)
    p["w1"], p["b1"] = _fold_bn(w, b, _bn(keys[1], 64))
    w, b = _dense(keys[2], 64, 128)
    p["w2"], p["b2"] = _fold_bn(w, b, _bn(keys[3], 128))
    p["w3"], p["b3"] = _dense(keys[4], 128, latent)
    # segmentation head
    w4, b4 = _dense(keys[5], 2 * latent, latent)
    w4, b4 = _fold_bn(w4, b4, _bn(keys[6], latent))
    p["w4a"], p["w4b"], p["b4"] = w4[:latent], w4[latent:], b4
    w, b = _dense(keys[7], latent, latent // 2)
    p["w5"], p["b5"] = _fold_bn(w, b, _bn(keys[8], latent // 2))
    w, b = _dense(keys[9], latent // 2, latent // 4)
    p["w6"], p["b6"] = _fold_bn(w, b, _bn(keys[10], latent // 4))
    p["w7"], p["b7"] = _dense(keys[11], latent // 4, part_count + 1)
    # decoder
    p["wd1"], p["bd1"] = _dense(keys[12], latent, n_points // 2)
    p["wd2"], p["bd2"] = _dense(keys[13], n_points // 2, n_points)
    p["wd3"], p["bd3"] = _dense(keys[14], n_points, n_points * 3)
    return p


# ---------------- pure-JAX reference (same math / precision as the kernel) ----------------

def lpmnet_reference(x, params, part_count):
    relu = jax.nn.relu

    def mm(a, w):
        return jnp.dot(a.astype(BF16), w.astype(BF16), preferred_element_type=F32)

    pts = x[:, :, :3].astype(F32)
    w1, b1 = params["w1"], params["b1"]
    h = relu(pts[..., 0:1] * w1[0] + pts[..., 1:2] * w1[1]
             + pts[..., 2:3] * w1[2] + b1)
    h = relu(mm(h, params["w2"]) + params["b2"])
    pf = mm(h, params["w3"]) + params["b3"]                       # (B, N, L)
    gc = jnp.max(pf, axis=1, keepdims=True)                       # (B, 1, L)
    s = relu(mm(pf, params["w4a"]) + mm(gc, params["w4b"]) + params["b4"])
    s = relu(mm(s, params["w5"]) + params["b5"])
    s = relu(mm(s, params["w6"]) + params["b6"])
    logits = mm(s, params["w7"]) + params["b7"]                   # (B, N, P+1)
    labels = jnp.argmax(logits, axis=2)                           # (B, N)
    parts = []
    for p in range(part_count):
        msk = (labels == (p + 1)).astype(F32)[..., None]
        parts.append(jnp.max(pf * msk, axis=1, keepdims=True))
    part_feats = jnp.concatenate(parts, axis=1)                   # (B, P, L)
    gcode = jnp.max(part_feats, axis=1)                           # (B, L)
    d = relu(mm(gcode, params["wd1"]) + params["bd1"])
    d = relu(mm(d, params["wd2"]) + params["bd2"])
    d = jnp.tanh(mm(d, params["wd3"]) + params["bd3"])
    return logits, d.reshape(x.shape[0], -1, 3)


if __name__ == "__main__":
    N_POINTS, LATENT, PART_COUNT, BATCH = 256, 64, 3, 2

    key = jax.random.PRNGKey(0)
    kx, kp = jax.random.split(key)
    # point cloud with 6 channels (xyz + extras); forward only uses [:, :, 0:3]
    x = jax.random.normal(kx, (BATCH, N_POINTS, 6), F32)
    params = init_params(kp, N_POINTS, LATENT, PART_COUNT)

    seg, rec = lpmnet_forward(x, params, part_count=PART_COUNT)
    jax.block_until_ready((seg, rec))

    seg_ref, rec_ref = lpmnet_reference(x, params, PART_COUNT)
    assert seg.shape == (BATCH, N_POINTS, PART_COUNT + 1)
    assert rec.shape == (BATCH, N_POINTS, 3)
    assert jnp.allclose(seg, seg_ref, atol=2e-3, rtol=2e-3)
    assert jnp.allclose(rec, rec_ref, atol=2e-3, rtol=2e-3)

    print("KERNEL_OK")
</pallas_src>

<mosaic_0001>
module attributes {stable_mosaic.version = 11 : i64} {
  func.func @lpmnet_kernel(%arg0: i32, %arg1: memref<1x256x3xf32, #tpu.memory_space<vmem>>, %arg2: memref<3x64xf32, #tpu.memory_space<vmem>>, %arg3: memref<1x64xf32, #tpu.memory_space<vmem>>, %arg4: memref<64x128xbf16, #tpu.memory_space<vmem>>, %arg5: memref<1x128xf32, #tpu.memory_space<vmem>>, %arg6: memref<128x64xbf16, #tpu.memory_space<vmem>>, %arg7: memref<1x64xf32, #tpu.memory_space<vmem>>, %arg8: memref<64x64xbf16, #tpu.memory_space<vmem>>, %arg9: memref<64x64xbf16, #tpu.memory_space<vmem>>, %arg10: memref<1x64xf32, #tpu.memory_space<vmem>>, %arg11: memref<64x32xbf16, #tpu.memory_space<vmem>>, %arg12: memref<1x32xf32, #tpu.memory_space<vmem>>, %arg13: memref<32x16xbf16, #tpu.memory_space<vmem>>, %arg14: memref<1x16xf32, #tpu.memory_space<vmem>>, %arg15: memref<16x128xbf16, #tpu.memory_space<vmem>>, %arg16: memref<1x128xf32, #tpu.memory_space<vmem>>, %arg17: memref<64x128xbf16, #tpu.memory_space<vmem>>, %arg18: memref<1x128xf32, #tpu.memory_space<vmem>>, %arg19: memref<128x256xbf16, #tpu.memory_space<vmem>>, %arg20: memref<1x256xf32, #tpu.memory_space<vmem>>, %arg21: memref<256x768xbf16, #tpu.memory_space<vmem>>, %arg22: memref<1x768xf32, #tpu.memory_space<vmem>>, %arg23: memref<1x256x128xf32, #tpu.memory_space<vmem>>, %arg24: memref<1x1x768xf32, #tpu.memory_space<vmem>>) attributes {dimension_semantics = [#tpu.dimension_semantics<parallel>], iteration_bounds = array<i64: 2>, scalar_prefetch = 0 : i64, scratch_operands = 0 : i64, tpu.core_type = #tpu.core_type<tc>, window_params = [{transform_indices = @transform_0, window_bounds = array<i64: 1, 256, 3>}, {pipeline_mode = #tpu.pipeline_mode<synchronous>, transform_indices = @transform_1, window_bounds = array<i64: 3, 64>}, {pipeline_mode = #tpu.pipeline_mode<synchronous>, transform_indices = @transform_2, window_bounds = array<i64: 1, 64>}, {pipeline_mode = #tpu.pipeline_mode<synchronous>, transform_indices = @transform_3, window_bounds = array<i64: 64, 128>}, {pipeline_mode = #tpu.pipeline_mode<synchronous>, transform_indices = @transform_4, window_bounds = array<i64: 1, 128>}, {pipeline_mode = #tpu.pipeline_mode<synchronous>, transform_indices = @transform_5, window_bounds = array<i64: 128, 64>}, {pipeline_mode = #tpu.pipeline_mode<synchronous>, transform_indices = @transform_6, window_bounds = array<i64: 1, 64>}, {pipeline_mode = #tpu.pipeline_mode<synchronous>, transform_indices = @transform_7, window_bounds = array<i64: 64, 64>}, {pipeline_mode = #tpu.pipeline_mode<synchronous>, transform_indices = @transform_8, window_bounds = array<i64: 64, 64>}, {pipeline_mode = #tpu.pipeline_mode<synchronous>, transform_indices = @transform_9, window_bounds = array<i64: 1, 64>}, {pipeline_mode = #tpu.pipeline_mode<synchronous>, transform_indices = @transform_10, window_bounds = array<i64: 64, 32>}, {pipeline_mode = #tpu.pipeline_mode<synchronous>, transform_indices = @transform_11, window_bounds = array<i64: 1, 32>}, {pipeline_mode = #tpu.pipeline_mode<synchronous>, transform_indices = @transform_12, window_bounds = array<i64: 32, 16>}, {pipeline_mode = #tpu.pipeline_mode<synchronous>, transform_indices = @transform_13, window_bounds = array<i64: 1, 16>}, {pipeline_mode = #tpu.pipeline_mode<synchronous>, transform_indices = @transform_14, window_bounds = array<i64: 16, 128>}, {pipeline_mode = #tpu.pipeline_mode<synchronous>, transform_indices = @transform_15, window_bounds = array<i64: 1, 128>}, {pipeline_mode = #tpu.pipeline_mode<synchronous>, transform_indices = @transform_16, window_bounds = array<i64: 64, 128>}, {pipeline_mode = #tpu.pipeline_mode<synchronous>, transform_indices = @transform_17, window_bounds = array<i64: 1, 128>}, {pipeline_mode = #tpu.pipeline_mode<synchronous>, transform_indices = @transform_18, window_bounds = array<i64: 128, 256>}, {pipeline_mode = #tpu.pipeline_mode<synchronous>, transform_indices = @transform_19, window_bounds = array<i64: 1, 256>}, {pipeline_mode = #tpu.pipeline_mode<synchronous>, transform_indices = @transform_20, window_bounds = array<i64: 256, 768>}, {pipeline_mode = #tpu.pipeline_mode<synchronous>, transform_indices = @transform_21, window_bounds = array<i64: 1, 768>}, {transform_indices = @transform_22, window_bounds = array<i64: 1, 256, 128>}, {transform_indices = @transform_23, window_bounds = array<i64: 1, 1, 768>}]} {
    %c0 = arith.constant 0 : index
    %c0_0 = arith.constant 0 : index
    %c0_1 = arith.constant 0 : index
    %0 = vector.load %arg1[%c0, %c0_0, %c0_1] : memref<1x256x3xf32, #tpu.memory_space<vmem>>, vector<1x256x3xf32>
    %1 = vector.shape_cast %0 : vector<1x256x3xf32> to vector<256x3xf32>
    %c0_2 = arith.constant 0 : index
    %c0_3 = arith.constant 0 : index
    %2 = vector.load %arg2[%c0_2, %c0_3] : memref<3x64xf32, #tpu.memory_space<vmem>>, vector<3x64xf32>
    %3 = vector.extract_strided_slice %1 {offsets = [0, 0], sizes = [256, 1], strides = [1, 1]} : vector<256x3xf32> to vector<256x1xf32>
    %4 = vector.extract_strided_slice %2 {offsets = [0, 0], sizes = [1, 64], strides = [1, 1]} : vector<3x64xf32> to vector<1x64xf32>
    %5 = vector.broadcast %3 : vector<256x1xf32> to vector<256x64xf32>
    %6 = vector.broadcast %4 : vector<1x64xf32> to vector<256x64xf32>
    %7 = arith.mulf %5, %6 : vector<256x64xf32>
    %8 = vector.extract_strided_slice %1 {offsets = [0, 1], sizes = [256, 1], strides = [1, 1]} : vector<256x3xf32> to vector<256x1xf32>
    %9 = vector.extract_strided_slice %2 {offsets = [1, 0], sizes = [1, 64], strides = [1, 1]} : vector<3x64xf32> to vector<1x64xf32>
    %10 = vector.broadcast %8 : vector<256x1xf32> to vector<256x64xf32>
    %11 = vector.broadcast %9 : vector<1x64xf32> to vector<256x64xf32>
    %12 = arith.mulf %10, %11 : vector<256x64xf32>
    %13 = arith.addf %7, %12 : vector<256x64xf32>
    %14 = vector.extract_strided_slice %1 {offsets = [0, 2], sizes = [256, 1], strides = [1, 1]} : vector<256x3xf32> to vector<256x1xf32>
    %15 = vector.extract_strided_slice %2 {offsets = [2, 0], sizes = [1, 64], strides = [1, 1]} : vector<3x64xf32> to vector<1x64xf32>
    %16 = vector.broadcast %14 : vector<256x1xf32> to vector<256x64xf32>
    %17 = vector.broadcast %15 : vector<1x64xf32> to vector<256x64xf32>
    %18 = arith.mulf %16, %17 : vector<256x64xf32>
    %19 = arith.addf %13, %18 : vector<256x64xf32>
    %c0_4 = arith.constant 0 : index
    %c0_5 = arith.constant 0 : index
    %20 = vector.load %arg3[%c0_4, %c0_5] : memref<1x64xf32, #tpu.memory_space<vmem>>, vector<1x64xf32>
    %21 = vector.broadcast %20 : vector<1x64xf32> to vector<256x64xf32>
    %22 = arith.addf %19, %21 : vector<256x64xf32>
    %cst = arith.constant 0.000000e+00 : f32
    %23 = vector.broadcast %cst : f32 to vector<256x64xf32>
    %24 = arith.maximumf %22, %23 : vector<256x64xf32>
    %25 = arith.truncf %24 : vector<256x64xf32> to vector<256x64xbf16>
    %c0_6 = arith.constant 0 : index
    %c0_7 = arith.constant 0 : index
    %26 = vector.load %arg4[%c0_6, %c0_7] : memref<64x128xbf16, #tpu.memory_space<vmem>>, vector<64x128xbf16>
    %cst_8 = arith.constant dense<0.000000e+00> : vector<256x128xf32>
    %27 = tpu.matmul %25, %26, %cst_8 {dimension_numbers = #tpu.dot_dimension_numbers<[1], [0], [0], [1], [0, 0, 1, 1], [], []>} : vector<256x64xbf16>, vector<64x128xbf16>, vector<256x128xf32> -> vector<256x128xf32>
    %c0_9 = arith.constant 0 : index
    %c0_10 = arith.constant 0 : index
    %28 = vector.load %arg5[%c0_9, %c0_10] : memref<1x128xf32, #tpu.memory_space<vmem>>, vector<1x128xf32>
    %29 = vector.broadcast %28 : vector<1x128xf32> to vector<256x128xf32>
    %30 = arith.addf %27, %29 : vector<256x128xf32>
    %cst_11 = arith.constant 0.000000e+00 : f32
    %31 = vector.broadcast %cst_11 : f32 to vector<256x128xf32>
    %32 = arith.maximumf %30, %31 : vector<256x128xf32>
    %33 = arith.truncf %32 : vector<256x128xf32> to vector<256x128xbf16>
    %c0_12 = arith.constant 0 : index
    %c0_13 = arith.constant 0 : index
    %34 = vector.load %arg6[%c0_12, %c0_13] : memref<128x64xbf16, #tpu.memory_space<vmem>>, vector<128x64xbf16>
    %cst_14 = arith.constant dense<0.000000e+00> : vector<256x64xf32>
    %35 = tpu.matmul %33, %34, %cst_14 {dimension_numbers = #tpu.dot_dimension_numbers<[1], [0], [0], [1], [0, 0, 1, 1], [], []>} : vector<256x128xbf16>, vector<128x64xbf16>, vector<256x64xf32> -> vector<256x64xf32>
    %c0_15 = arith.constant 0 : index
    %c0_16 = arith.constant 0 : index
    %36 = vector.load %arg7[%c0_15, %c0_16] : memref<1x64xf32, #tpu.memory_space<vmem>>, vector<1x64xf32>
    %37 = vector.broadcast %36 : vector<1x64xf32> to vector<256x64xf32>
    %38 = arith.addf %35, %37 : vector<256x64xf32>
    %39 = vector.shape_cast %38 : vector<256x64xf32> to vector<1x256x64xf32>
    %cst_17 = arith.constant dense<0xFF800000> : vector<1x64xf32>
    %40 = vector.multi_reduction <maximumf>, %39, %cst_17 [1] : vector<1x256x64xf32> to vector<1x64xf32>
    %41 = arith.truncf %38 : vector<256x64xf32> to vector<256x64xbf16>
    %c0_18 = arith.constant 0 : index
    %c0_19 = arith.constant 0 : index
    %42 = vector.load %arg8[%c0_18, %c0_19] : memref<64x64xbf16, #tpu.memory_space<vmem>>, vector<64x64xbf16>
    %cst_20 = arith.constant dense<0.000000e+00> : vector<256x64xf32>
    %43 = tpu.matmul %41, %42, %cst_20 {dimension_numbers = #tpu.dot_dimension_numbers<[1], [0], [0], [1], [0, 0, 1, 1], [], []>} : vector<256x64xbf16>, vector<64x64xbf16>, vector<256x64xf32> -> vector<256x64xf32>
    %44 = vector.shape_cast %43 : vector<256x64xf32> to vector<1x256x64xf32>
    %45 = arith.truncf %40 : vector<1x64xf32> to vector<1x64xbf16>
    %c0_21 = arith.constant 0 : index
    %c0_22 = arith.constant 0 : index
    %46 = vector.load %arg9[%c0_21, %c0_22] : memref<64x64xbf16, #tpu.memory_space<vmem>>, vector<64x64xbf16>
    %cst_23 = arith.constant dense<0.000000e+00> : vector<1x64xf32>
    %47 = tpu.matmul %45, %46, %cst_23 {dimension_numbers = #tpu.dot_dimension_numbers<[1], [0], [0], [1], [0, 0, 1, 1], [], []>} : vector<1x64xbf16>, vector<64x64xbf16>, vector<1x64xf32> -> vector<1x64xf32>
    %48 = vector.shape_cast %47 : vector<1x64xf32> to vector<1x1x64xf32>
    %49 = vector.broadcast %48 : vector<1x1x64xf32> to vector<1x256x64xf32>
    %50 = arith.addf %44, %49 : vector<1x256x64xf32>
    %51 = vector.shape_cast %50 : vector<1x256x64xf32> to vector<256x64xf32>
    %c0_24 = arith.constant 0 : index
    %c0_25 = arith.constant 0 : index
    %52 = vector.load %arg10[%c0_24, %c0_25] : memref<1x64xf32, #tpu.memory_space<vmem>>, vector<1x64xf32>
    %53 = vector.broadcast %52 : vector<1x64xf32> to vector<256x64xf32>
    %54 = arith.addf %51, %53 : vector<256x64xf32>
    %cst_26 = arith.constant 0.000000e+00 : f32
    %55 = vector.broadcast %cst_26 : f32 to vector<256x64xf32>
    %56 = arith.maximumf %54, %55 : vector<256x64xf32>
    %57 = arith.truncf %56 : vector<256x64xf32> to vector<256x64xbf16>
    %c0_27 = arith.constant 0 : index
    %c0_28 = arith.constant 0 : index
    %58 = vector.load %arg11[%c0_27, %c0_28] : memref<64x32xbf16, #tpu.memory_space<vmem>>, vector<64x32xbf16>
    %cst_29 = arith.constant dense<0.000000e+00> : vector<256x32xf32>
    %59 = tpu.matmul %57, %58, %cst_29 {dimension_numbers = #tpu.dot_dimension_numbers<[1], [0], [0], [1], [0, 0, 1, 1], [], []>} : vector<256x64xbf16>, vector<64x32xbf16>, vector<256x32xf32> -> vector<256x32xf32>
    %c0_30 = arith.constant 0 : index
    %c0_31 = arith.constant 0 : index
    %60 = vector.load %arg12[%c0_30, %c0_31] : memref<1x32xf32, #tpu.memory_space<vmem>>, vector<1x32xf32>
    %61 = vector.broadcast %60 : vector<1x32xf32> to vector<256x32xf32>
    %62 = arith.addf %59, %61 : vector<256x32xf32>
    %cst_32 = arith.constant 0.000000e+00 : f32
    %63 = vector.broadcast %cst_32 : f32 to vector<256x32xf32>
    %64 = arith.maximumf %62, %63 : vector<256x32xf32>
    %65 = arith.truncf %64 : vector<256x32xf32> to vector<256x32xbf16>
    %c0_33 = arith.constant 0 : index
    %c0_34 = arith.constant 0 : index
    %66 = vector.load %arg13[%c0_33, %c0_34] : memref<32x16xbf16, #tpu.memory_space<vmem>>, vector<32x16xbf16>
    %cst_35 = arith.constant dense<0.000000e+00> : vector<256x16xf32>
    %67 = tpu.matmul %65, %66, %cst_35 {dimension_numbers = #tpu.dot_dimension_numbers<[1], [0], [0], [1], [0, 0, 1, 1], [], []>} : vector<256x32xbf16>, vector<32x16xbf16>, vector<256x16xf32> -> vector<256x16xf32>
    %c0_36 = arith.constant 0 : index
    %c0_37 = arith.constant 0 : index
    %68 = vector.load %arg14[%c0_36, %c0_37] : memref<1x16xf32, #tpu.memory_space<vmem>>, vector<1x16xf32>
    %69 = vector.broadcast %68 : vector<1x16xf32> to vector<256x16xf32>
    %70 = arith.addf %67, %69 : vector<256x16xf32>
    %cst_38 = arith.constant 0.000000e+00 : f32
    %71 = vector.broadcast %cst_38 : f32 to vector<256x16xf32>
    %72 = arith.maximumf %70, %71 : vector<256x16xf32>
    %73 = arith.truncf %72 : vector<256x16xf32> to vector<256x16xbf16>
    %c0_39 = arith.constant 0 : index
    %c0_40 = arith.constant 0 : index
    %74 = vector.load %arg15[%c0_39, %c0_40] : memref<16x128xbf16, #tpu.memory_space<vmem>>, vector<16x128xbf16>
    %cst_41 = arith.constant dense<0.000000e+00> : vector<256x128xf32>
    %75 = tpu.matmul %73, %74, %cst_41 {dimension_numbers = #tpu.dot_dimension_numbers<[1], [0], [0], [1], [0, 0, 1, 1], [], []>} : vector<256x16xbf16>, vector<16x128xbf16>, vector<256x128xf32> -> vector<256x128xf32>
    %c0_42 = arith.constant 0 : index
    %c0_43 = arith.constant 0 : index
    %76 = vector.load %arg16[%c0_42, %c0_43] : memref<1x128xf32, #tpu.memory_space<vmem>>, vector<1x128xf32>
    %77 = vector.broadcast %76 : vector<1x128xf32> to vector<256x128xf32>
    %78 = arith.addf %75, %77 : vector<256x128xf32>
    %79 = vector.shape_cast %78 : vector<256x128xf32> to vector<1x256x128xf32>
    %c0_44 = arith.constant 0 : index
    %c0_45 = arith.constant 0 : index
    %c0_46 = arith.constant 0 : index
    %80 = vector.load %arg23[%c0_44, %c0_45, %c0_46] : memref<1x256x128xf32, #tpu.memory_space<vmem>>, vector<1x256x128xf32>
    tpu.vector_store %arg23[%c0_44, %c0_45, %c0_46], %79 {strides = array<i32>} : memref<1x256x128xf32, #tpu.memory_space<vmem>>, vector<1x256x128xf32>,
    %cst_47 = arith.constant dense<0xFF800000> : vector<256xf32>
    %81 = vector.multi_reduction <maximumf>, %78, %cst_47 [1] : vector<256x128xf32> to vector<256xf32>
    %82 = vector.shape_cast %81 : vector<256xf32> to vector<256x1xf32>
    %83 = tpu.iota {dimensions = array<i32: 1>} : vector<256x128xi32>
    %84 = vector.broadcast %82 : vector<256x1xf32> to vector<256x128xf32>
    %85 = arith.cmpf oeq, %78, %84 : vector<256x128xf32>
    %c128_i32 = arith.constant 128 : i32
    %86 = vector.broadcast %c128_i32 : i32 to vector<256x128xi32>
    %87 = arith.select %85, %83, %86 : vector<256x128xi1>, vector<256x128xi32>
    %cst_48 = arith.constant dense<2147483647> : vector<256xi32>
    %88 = vector.multi_reduction <minsi>, %87, %cst_48 [1] : vector<256x128xi32> to vector<256xi32>
    %89 = vector.shape_cast %88 : vector<256xi32> to vector<256x1xi32>
    %c1_i32 = arith.constant 1 : i32
    %90 = vector.broadcast %c1_i32 : i32 to vector<256x1xi32>
    %91 = arith.cmpi sge, %89, %90 : vector<256x1xi32>
    %92 = arith.extui %91 : vector<256x1xi1> to vector<256x1xi32>
    %93 = arith.sitofp %92 : vector<256x1xi32> to vector<256x1xf32>
    %94 = vector.broadcast %93 : vector<256x1xf32> to vector<256x64xf32>
    %95 = arith.mulf %38, %94 : vector<256x64xf32>
    %96 = vector.shape_cast %95 : vector<256x64xf32> to vector<1x256x64xf32>
    %cst_49 = arith.constant dense<0xFF800000> : vector<1x64xf32>
    %97 = vector.multi_reduction <maximumf>, %96, %cst_49 [1] : vector<1x256x64xf32> to vector<1x64xf32>
    %cst_50 = arith.constant 0.000000e+00 : f32
    %98 = vector.broadcast %cst_50 : f32 to vector<1x64xf32>
    %99 = arith.maximumf %97, %98 : vector<1x64xf32>
    %100 = arith.truncf %99 : vector<1x64xf32> to vector<1x64xbf16>
    %c0_51 = arith.constant 0 : index
    %c0_52 = arith.constant 0 : index
    %101 = vector.load %arg17[%c0_51, %c0_52] : memref<64x128xbf16, #tpu.memory_space<vmem>>, vector<64x128xbf16>
    %cst_53 = arith.constant dense<0.000000e+00> : vector<1x128xf32>
    %102 = tpu.matmul %100, %101, %cst_53 {dimension_numbers = #tpu.dot_dimension_numbers<[1], [0], [0], [1], [0, 0, 1, 1], [], []>} : vector<1x64xbf16>, vector<64x128xbf16>, vector<1x128xf32> -> vector<1x128xf32>
    %c0_54 = arith.constant 0 : index
    %c0_55 = arith.constant 0 : index
    %103 = vector.load %arg18[%c0_54, %c0_55] : memref<1x128xf32, #tpu.memory_space<vmem>>, vector<1x128xf32>
    %104 = arith.addf %102, %103 : vector<1x128xf32>
    %cst_56 = arith.constant 0.000000e+00 : f32
    %105 = vector.broadcast %cst_56 : f32 to vector<1x128xf32>
    %106 = arith.maximumf %104, %105 : vector<1x128xf32>
    %107 = arith.truncf %106 : vector<1x128xf32> to vector<1x128xbf16>
    %c0_57 = arith.constant 0 : index
    %c0_58 = arith.constant 0 : index
    %108 = vector.load %arg19[%c0_57, %c0_58] : memref<128x256xbf16, #tpu.memory_space<vmem>>, vector<128x256xbf16>
    %cst_59 = arith.constant dense<0.000000e+00> : vector<1x256xf32>
    %109 = tpu.matmul %107, %108, %cst_59 {dimension_numbers = #tpu.dot_dimension_numbers<[1], [0], [0], [1], [0, 0, 1, 1], [], []>} : vector<1x128xbf16>, vector<128x256xbf16>, vector<1x256xf32> -> vector<1x256xf32>
    %c0_60 = arith.constant 0 : index
    %c0_61 = arith.constant 0 : index
    %110 = vector.load %arg20[%c0_60, %c0_61] : memref<1x256xf32, #tpu.memory_space<vmem>>, vector<1x256xf32>
    %111 = arith.addf %109, %110 : vector<1x256xf32>
    %cst_62 = arith.constant 0.000000e+00 : f32
    %112 = vector.broadcast %cst_62 : f32 to vector<1x256xf32>
    %113 = arith.maximumf %111, %112 : vector<1x256xf32>
    %114 = arith.truncf %113 : vector<1x256xf32> to vector<1x256xbf16>
    %c0_63 = arith.constant 0 : index
    %c0_64 = arith.constant 0 : index
    %115 = vector.load %arg21[%c0_63, %c0_64] : memref<256x768xbf16, #tpu.memory_space<vmem>>, vector<256x768xbf16>
    %cst_65 = arith.constant dense<0.000000e+00> : vector<1x768xf32>
    %116 = tpu.matmul %114, %115, %cst_65 {dimension_numbers = #tpu.dot_dimension_numbers<[1], [0], [0], [1], [0, 0, 1, 1], [], []>} : vector<1x256xbf16>, vector<256x768xbf16>, vector<1x768xf32> -> vector<1x768xf32>
    %c0_66 = arith.constant 0 : index
    %c0_67 = arith.constant 0 : index
    %117 = vector.load %arg22[%c0_66, %c0_67] : memref<1x768xf32, #tpu.memory_space<vmem>>, vector<1x768xf32>
    %118 = arith.addf %116, %117 : vector<1x768xf32>
    %119 = math.tanh %118 : vector<1x768xf32>
    %120 = vector.shape_cast %119 : vector<1x768xf32> to vector<1x1x768xf32>
    %c0_68 = arith.constant 0 : index
    %c0_69 = arith.constant 0 : index
    %c0_70 = arith.constant 0 : index
    %121 = vector.load %arg24[%c0_68, %c0_69, %c0_70] : memref<1x1x768xf32, #tpu.memory_space<vmem>>, vector<1x1x768xf32>
    tpu.vector_store %arg24[%c0_68, %c0_69, %c0_70], %120 {strides = array<i32>} : memref<1x1x768xf32, #tpu.memory_space<vmem>>, vector<1x1x768xf32>,
    return
  }
  func.func @transform_0(%arg0: i32) -> (i32, i32, i32) {
    %c0_i32 = arith.constant 0 : i32
    %c0_i32_0 = arith.constant 0 : i32
    %c0_i32_1 = arith.constant 0 : i32
    return %arg0, %c0_i32, %c0_i32_0 : i32, i32, i32
  }
  func.func @transform_1(%arg0: i32) -> (i32, i32) {
    %c0_i32 = arith.constant 0 : i32
    %c0_i32_0 = arith.constant 0 : i32
    %c0_i32_1 = arith.constant 0 : i32
    return %c0_i32, %c0_i32_0 : i32, i32
  }
  func.func @transform_2(%arg0: i32) -> (i32, i32) {
    %c0_i32 = arith.constant 0 : i32
    %c0_i32_0 = arith.constant 0 : i32
    %c0_i32_1 = arith.constant 0 : i32
    return %c0_i32, %c0_i32_0 : i32, i32
  }
  func.func @transform_3(%arg0: i32) -> (i32, i32) {
    %c0_i32 = arith.constant 0 : i32
    %c0_i32_0 = arith.constant 0 : i32
    %c0_i32_1 = arith.constant 0 : i32
    return %c0_i32, %c0_i32_0 : i32, i32
  }
  func.func @transform_4(%arg0: i32) -> (i32, i32) {
    %c0_i32 = arith.constant 0 : i32
    %c0_i32_0 = arith.constant 0 : i32
    %c0_i32_1 = arith.constant 0 : i32
    return %c0_i32, %c0_i32_0 : i32, i32
  }
  func.func @transform_5(%arg0: i32) -> (i32, i32) {
    %c0_i32 = arith.constant 0 : i32
    %c0_i32_0 = arith.constant 0 : i32
    %c0_i32_1 = arith.constant 0 : i32
    return %c0_i32, %c0_i32_0 : i32, i32
  }
  func.func @transform_6(%arg0: i32) -> (i32, i32) {
    %c0_i32 = arith.constant 0 : i32
    %c0_i32_0 = arith.constant 0 : i32
    %c0_i32_1 = arith.constant 0 : i32
    return %c0_i32, %c0_i32_0 : i32, i32
  }
  func.func @transform_7(%arg0: i32) -> (i32, i32) {
    %c0_i32 = arith.constant 0 : i32
    %c0_i32_0 = arith.constant 0 : i32
    %c0_i32_1 = arith.constant 0 : i32
    return %c0_i32, %c0_i32_0 : i32, i32
  }
  func.func @transform_8(%arg0: i32) -> (i32, i32) {
    %c0_i32 = arith.constant 0 : i32
    %c0_i32_0 = arith.constant 0 : i32
    %c0_i32_1 = arith.constant 0 : i32
    return %c0_i32, %c0_i32_0 : i32, i32
  }
  func.func @transform_9(%arg0: i32) -> (i32, i32) {
    %c0_i32 = arith.constant 0 : i32
    %c0_i32_0 = arith.constant 0 : i32
    %c0_i32_1 = arith.constant 0 : i32
    return %c0_i32, %c0_i32_0 : i32, i32
  }
  func.func @transform_10(%arg0: i32) -> (i32, i32) {
    %c0_i32 = arith.constant 0 : i32
    %c0_i32_0 = arith.constant 0 : i32
    %c0_i32_1 = arith.constant 0 : i32
    return %c0_i32, %c0_i32_0 : i32, i32
  }
  func.func @transform_11(%arg0: i32) -> (i32, i32) {
    %c0_i32 = arith.constant 0 : i32
    %c0_i32_0 = arith.constant 0 : i32
    %c0_i32_1 = arith.constant 0 : i32
    return %c0_i32, %c0_i32_0 : i32, i32
  }
  func.func @transform_12(%arg0: i32) -> (i32, i32) {
    %c0_i32 = arith.constant 0 : i32
    %c0_i32_0 = arith.constant 0 : i32
    %c0_i32_1 = arith.constant 0 : i32
    return %c0_i32, %c0_i32_0 : i32, i32
  }
  func.func @transform_13(%arg0: i32) -> (i32, i32) {
    %c0_i32 = arith.constant 0 : i32
    %c0_i32_0 = arith.constant 0 : i32
    %c0_i32_1 = arith.constant 0 : i32
    return %c0_i32, %c0_i32_0 : i32, i32
  }
  func.func @transform_14(%arg0: i32) -> (i32, i32) {
    %c0_i32 = arith.constant 0 : i32
    %c0_i32_0 = arith.constant 0 : i32
    %c0_i32_1 = arith.constant 0 : i32
    return %c0_i32, %c0_i32_0 : i32, i32
  }
  func.func @transform_15(%arg0: i32) -> (i32, i32) {
    %c0_i32 = arith.constant 0 : i32
    %c0_i32_0 = arith.constant 0 : i32
    %c0_i32_1 = arith.constant 0 : i32
    return %c0_i32, %c0_i32_0 : i32, i32
  }
  func.func @transform_16(%arg0: i32) -> (i32, i32) {
    %c0_i32 = arith.constant 0 : i32
    %c0_i32_0 = arith.constant 0 : i32
    %c0_i32_1 = arith.constant 0 : i32
    return %c0_i32, %c0_i32_0 : i32, i32
  }
  func.func @transform_17(%arg0: i32) -> (i32, i32) {
    %c0_i32 = arith.constant 0 : i32
    %c0_i32_0 = arith.constant 0 : i32
    %c0_i32_1 = arith.constant 0 : i32
    return %c0_i32, %c0_i32_0 : i32, i32
  }
  func.func @transform_18(%arg0: i32) -> (i32, i32) {
    %c0_i32 = arith.constant 0 : i32
    %c0_i32_0 = arith.constant 0 : i32
    %c0_i32_1 = arith.constant 0 : i32
    return %c0_i32, %c0_i32_0 : i32, i32
  }
  func.func @transform_19(%arg0: i32) -> (i32, i32) {
    %c0_i32 = arith.constant 0 : i32
    %c0_i32_0 = arith.constant 0 : i32
    %c0_i32_1 = arith.constant 0 : i32
    return %c0_i32, %c0_i32_0 : i32, i32
  }
  func.func @transform_20(%arg0: i32) -> (i32, i32) {
    %c0_i32 = arith.constant 0 : i32
    %c0_i32_0 = arith.constant 0 : i32
    %c0_i32_1 = arith.constant 0 : i32
    return %c0_i32, %c0_i32_0 : i32, i32
  }
  func.func @transform_21(%arg0: i32) -> (i32, i32) {
    %c0_i32 = arith.constant 0 : i32
    %c0_i32_0 = arith.constant 0 : i32
    %c0_i32_1 = arith.constant 0 : i32
    return %c0_i32, %c0_i32_0 : i32, i32
  }
  func.func @transform_22(%arg0: i32) -> (i32, i32, i32) {
    %c0_i32 = arith.constant 0 : i32
    %c0_i32_0 = arith.constant 0 : i32
    %c0_i32_1 = arith.constant 0 : i32
    return %arg0, %c0_i32, %c0_i32_0 : i32, i32, i32
  }
  func.func @transform_23(%arg0: i32) -> (i32, i32, i32) {
    %c0_i32 = arith.constant 0 : i32
    %c0_i32_0 = arith.constant 0 : i32
    %c0_i32_1 = arith.constant 0 : i32
    return %arg0, %c0_i32, %c0_i32_0 : i32, i32, i32
  }
}

</mosaic_0001>

<bundles_post_ra>
// kernel: tpu_custom_call.1
= control target key start
LH: loop header
LB: loop body
LE: loop exit
PB: predicated region body
PF: predicated region fallthrough
CT: control target
= control target key end

     0   :  { %s8487_s0 = inlined_call_operand.vmem [shape: f32[2,256,3], index: 0, kind: input, shape index: {}]   ;;  %s8488_s1 = inlined_call_operand.vmem [shape: f32[3,64], index: 1, kind: input, shape index: {}]   ;;  %s8489_s2 = inlined_call_operand.vmem [shape: f32[1,64], index: 2, kind: input, shape index: {}]   ;;  %s8490_s3 = inlined_call_operand.vmem [shape: bf16[64,128], index: 3, kind: input, shape index: {}]   ;;  %s8491_s4 = inlined_call_operand.vmem [shape: f32[1,128], index: 4, kind: input, shape index: {}]   ;;  %s8492_s5 = inlined_call_operand.vmem [shape: bf16[128,64], index: 5, kind: input, shape index: {}]   ;;  %s8493_s6 = inlined_call_operand.vmem [shape: f32[1,64], index: 6, kind: input, shape index: {}]   ;;  %s8494_s7 = inlined_call_operand.vmem [shape: bf16[64,64], index: 7, kind: input, shape index: {}]   ;;  %s8495_s8 = inlined_call_operand.vmem [shape: bf16[64,64], index: 8, kind: input, shape index: {}]   ;;  %s8496_s9 = inlined_call_operand.vmem [shape: f32[1,64], index: 9, kind: input, shape index: {}]   ;;  %s8497_s10 = inlined_call_operand.vmem [shape: bf16[64,32], index: 10, kind: input, shape index: {}]   ;;  %s8498_s11 = inlined_call_operand.vmem [shape: f32[1,32], index: 11, kind: input, shape index: {}]   ;;  %s8499_s12 = inlined_call_operand.vmem [shape: bf16[32,16], index: 12, kind: input, shape index: {}]   ;;  %s8500_s13 = inlined_call_operand.vmem [shape: f32[1,16], index: 13, kind: input, shape index: {}]   ;;  %s8501_s14 = inlined_call_operand.vmem [shape: bf16[16,128], index: 14, kind: input, shape index: {}]   ;;  %s8502_s15 = inlined_call_operand.vmem [shape: f32[1,128], index: 15, kind: input, shape index: {}]   ;;  %s8503_s16 = inlined_call_operand.vmem [shape: bf16[64,128], index: 16, kind: input, shape index: {}]   ;;  %s8504_s17 = inlined_call_operand.vmem [shape: f32[1,128], index: 17, kind: input, shape index: {}]   ;;  %s8505_s18 = inlined_call_operand.vmem [shape: bf16[128,256], index: 18, kind: input, shape index: {}]   ;;  %s8506_s19 = inlined_call_operand.vmem [shape: f32[1,256], index: 19, kind: input, shape index: {}]   ;;  %s8507_s20 = inlined_call_operand.hbm [shape: bf16[256,768], index: 20, kind: input, shape index: {}]   ;;  %s8508_s21 = inlined_call_operand.vmem [shape: f32[1,768], index: 21, kind: input, shape index: {}]   ;;  %s8509_s22 = inlined_call_operand.hbm [shape: f32[2,256,128], index: 22, kind: output, shape index: {0}]   ;;  %s8510_s23 = inlined_call_operand.hbm [shape: f32[2,1,768], index: 23, kind: output, shape index: {1}]  }
   0x1   :  { %8577 = sst [smem:[#allocation61_spill]] %s8487_s0 }
   0x2   :  { %8578 = sst [smem:[#allocation62_spill]] %s8488_s1 }
   0x3   :  { %8579 = sst [smem:[#allocation63_spill]] %s8489_s2 }
   0x4   :  { %8580 = sst [smem:[#allocation64_spill]] %s8490_s3 }
   0x5   :  { %8581 = sst [smem:[#allocation65_spill]] %s8491_s4 }
   0x6   :  { %8582 = sst [smem:[#allocation66_spill]] %s8492_s5 }
   0x7   :  { %8583 = sst [smem:[#allocation67_spill]] %s8493_s6 }
   0x8   :  { %8584 = sst [smem:[#allocation68_spill]] %s8494_s7 }
   0x9   :  { %8585 = sst [smem:[#allocation69_spill]] %s8495_s8 }
   0xa   :  { %8586 = sst [smem:[#allocation70_spill]] %s8496_s9 }
   0xb   :  { %8587 = sst [smem:[#allocation71_spill]] %s8497_s10 }
   0xc   :  { %8588 = sst [smem:[#allocation72_spill]] %s8498_s11 }
   0xd   :  { %29 = vsyncpa [#allocation3], 0 }
   0xe   :  { %30 = vsyncpa [#allocation4], 0 }
   0xf   :  { %32 = vsyncpa [#allocation4 + $0x1], 0 }
  0x10   :  { %33 = vsyncpa [#allocation7], 0 }
  0x11   :  { %35 = vsyncpa [#allocation7 + $0x1], 0  ;;  %s6523_s4 = smov 0   ;;  %s6525_s30 = smov 0  }
  0x12   :  { %s6527_s24 = smov 0   ;;  %s6529_s25 = smov 0  }
  0x13 LB: > { %8589 = sst [smem:[#allocation11_spill]] %s6376_s4  ;;  %s6544_s5 = sadd.s32 4294967295, %s6388_s25   ;;  %s6388_s25 = sphi %s6529_s25, %s8713_s25   ;;  %s6384_s24 = sphi %s6527_s24, %s8715_s24   ;;  %s6380_s30 = sphi %s6525_s30, %s8717_s30   ;;  %s6376_s4 = sphi %s6523_s4, %s8716_s4  }
  0x14   : > { %8590 = sst [smem:[#allocation12_spill]] %s6384_s24  ;;  %s5268_s1 = sadd.s32 4294967294, %s6388_s25  }
  0x15   : > { %s6548_s26 = sadd.s32 1, %s6388_s25   ;;  %s515_s2 = sadd.s32 1, %s6384_s24 }
  0x16   : > { %8591 = sst [smem:[#allocation13_spill]] %s6548_s26  ;;  %s512_s6 = ssub.s32 %s6388_s25, %s6548_s26 }
  0x17   : > { %p525_p0 = scmp.ne.s32.totalorder %s6384_s24, %s6380_s30  ;;  %p513_p1 = scmp.eq.s32.totalorder %s512_s6, 0 }
  0x18   : > { %p526_p2 = scmp.eq.s32.totalorder %s6544_s5, 1  ;;  %p531_p3 = scmp.ne.s32.totalorder %s6380_s30, %s6376_s4 }
  0x19   : > { %p532_p4 = scmp.eq.s32.totalorder %s5268_s1, 1  ;;  %p5269_p7 = scmp.ge.s32.totalorder %s6388_s25, 1 }
  0x1a   : > { %s6559_s27 = scalar_select %p513_p1, %s6384_s24, %s515_s2  }
  0x1b   : > { %p6561_p5 = por %p526_p2, %p525_p0  ;;  %p6565_p6 = por %p532_p4, %p531_p3 }
  0x1c   : > { %8592 = sst [smem:[#allocation14_spill]] %s6559_s27  ;;  %p565_p8 = scmp.lt.s32.totalorder %s6388_s25, 3 }
  0x1d   : > { %s8593_s7 = scalar_select %p6561_p5, 1, 0 }
  0x1e   : > { %s8594_s28 = scalar_select %p6565_p6, 1, 0 }
  0x1f   : > { %p8519_p9 = scmp.eq.s32.totalorder %s6544_s5, 0  ;;  %p6572_p10 = pnand %p5269_p7, %p565_p8 }
  0x20   : > { %8595 = sst [smem:[#allocation15_spill]] %s8594_s28  ;;  %s6390_s3 = smov [#allocation2]  }
  0x21   : > { %s8596_s29 = scalar_select %p6572_p10, 1, 0 }
  0x22   : > { %s634_s0 = sshll.u32 %s6390_s3, 4  ;;  %p5950_p11 = pneg %p6572_p10  ;;  %s635_s0 = int_to_ptr.vmem [resolvable:$true] %s634_s0 }
  0x23   : > { %s6262_s27 = scalar_lea.hbm %s8507_s20, 12288 }
  0x24   : > { %p6580_p12 = pnand %p8519_p9, %p5950_p11  ;;  %p6263_p13 = scmp.ne.s32.totalorder %s8507_s20, %s6262_s27 }
  0x25   : > { %p6269_p3 = scmp.lt.u32.totalorder %s6262_s27, %s8507_s20 }
  0x26   : > { %p6264_p0 = pneg %p6580_p12 }
  0x28   : > { %p6265_p1 = pnand %p6264_p0, %p6263_p13 }
  0x2a   : > { %p6266_p2 = pneg %p6265_p1 }
  0x2c   : > { %p6271_p4 = pnand %p6269_p3, %p6266_p2 }
  0x2e   : > { %6274 = shalt.err (!%p6271_p4)
}
  0x2f   : > { %s6275_s4 = scalar_lea.vmem %s635_s0, 12288  ;;  %p6283_p9 = scmp.lt.s32.totalorder %s635_s0, %s635_s0 }
  0x30   : > { %p6276_p7 = scmp.ne.s32.totalorder %s635_s0, %s6275_s4  ;;  %p6284_p6 = scmp.lt.s32.totalorder %s6275_s4, %s6275_s4 }
  0x32   : > { %p6278_p8 = pnand %p6276_p7, %p6264_p0  ;;  %p6285_p5 = por %p6284_p6, %p6283_p9 }
  0x34   : > { %p6279_p11 = pneg %p6278_p8 }
  0x36   : > { %p6286_p10 = pnand %p6285_p5, %p6279_p11 }
  0x38   : > { %6289 = shalt.err (!%p6286_p10)
}
  0x39   : > { %s6391_s24 = smov 384   ;;  %s6392_s26 = smov 24  }
  0x3a   : > { %5953 = dma.hbm_to_vmem [thread:$0]  (!%p6580_p12), %s8507_s20, 12288, %s635_s0, [#allocation3], %s6391_s24, %s6391_s24, %s6392_s26  }
  0x3b   : > { %p8598_p13 = scmp.ne.s32.totalorder %s8596_s29, 0 }
  0x3d   : > { %661 = sbr.rel (%p8598_p13) target bundleno = 3126 (0xc36), region = 108 }
  0x44   : > { %p8599_p1 = scmp.eq.s32.totalorder %s6544_s5, 0 }
  0x46   : > { %6363 = dma.done.wait (%p8599_p1), [#allocation3], 12288   ;;  %p8600_p0 = pmov %p8599_p1 }
  0x47   : > { %p730_p5 = scmp.lt.s32.totalorder %s6544_s5, 1  ;;  %v6393_v0 = vmov 1   ;;  %s8601_s29 = sld [smem:[#allocation61_spill]]  ;;  %v8523_v7 = vmov 0   ;;  %v6395_v8 = vmov 2   ;;  %v8524_v56 = vlaneseq }
  0x48   : > { %6365 = vsyncadd (%p8600_p0), [#allocation3], 4294955008  ;;  %6009 = vset.pattern.permute.xlu0 %v6393_v0  ;;  %6007 = vset.pattern.permute.xlu1 %v6393_v0  ;;  %s8602_s26 = sld [smem:[#allocation64_spill]]  ;;  %s8605_s24 = sld [smem:[#allocation62_spill]]  ;;  %vm1483_vm0 = vcmask 523264   ;;  %vm6397_vm1 = vmmov 0  }
  0x49   : > { %s731_s4 = scalar_select %p730_p5, %s6544_s5, 1  ;;  %v6767_v59 = vshrl.u32 %v8524_v56, 7  ;;  %vm2817_vm2 = vcmask 261120   ;;  %vm3090_vm3 = vcmask 130048  }
  0x4a   : > { %s8608_s28 = sld [smem:[#allocation66_spill]]  ;;  %s8611_s3 = sld [smem:[#allocation67_spill]] }
  0x4b   : > { %s5547_s27 = sshll.u32 %s731_s4, 8  ;;  %8603 = vst [vmem:[#allocation16_spill] sm:$0xff] %v6767_v59  ;;  %v6774_v62 = vsub.s32 1, %v6767_v59  ;;  %s8607_s4 = sld [smem:[#allocation63_spill]] }
  0x4c   : > { %s8620_s8 = sld [smem:[#allocation69_spill]]  ;;  %s8645_s10 = sld [smem:[#allocation71_spill]] }
  0x4d   : > { %s6613_s1 = scalar_lea.vmem %s8601_s29, %s5547_s27  ;;  %8604 = vst [vmem:[#allocation17_spill] sm:$0xff] %v6774_v62  ;;  %s8610_s29 = sld [smem:[#allocation68_spill]] }
  0x4e   : > { %v738_v1 = vld [vmem:[%s6613_s1 + $0x10] sm:$0xff]  ;;  %v736_v2 = vld [vmem:[%s6613_s1] sm:$0xff]  ;;  %v741_v3 = vld [vmem:[%s6613_s1 + $0x28] sm:$0xff]  ;;  %s8647_s9 = sld [smem:[#allocation70_spill]]  ;;  %s8648_s11 = sld [smem:[#allocation72_spill]] }
  0x4f   : > { %974 = vperm.xlu0 %6009, %v738_v1   ;;  %966 = vperm.xlu1 %6007, %v736_v2   ;;  %v737_v4 = vld [vmem:[%s6613_s1 + $0x8] sm:$0xff]  ;;  %v742_v5 = vld [vmem:[%s6613_s1 + $0x30] sm:$0xff]  ;;  %v739_v6 = vld [vmem:[%s6613_s1 + $0x18] sm:$0xff]  ;;  %p8706_p9 = scmp.ne.s32.totalorder %s8593_s7, 0 }
  0x50   : > { %v740_v9 = vld [vmem:[%s6613_s1 + $0x20] sm:$0xff]  ;;  %v743_v10 = vld [vmem:[%s6613_s1 + $0x38] sm:$0xff]  ;;  %v745_v11 = vld [vmem:[%s6613_s1 + $0x48] sm:$0xff] }
  0x51   : > { %v6629_v12 = vld [vmem:[%s6613_s1 + $0x60] sm:$0xff]  ;;  %v6632_v13 = vld [vmem:[%s6613_s1 + $0x78] sm:$0xff]  ;;  %v6637_v14 = vld [vmem:[%s6613_s1 + $0x88] sm:$0xff] }
  0x52   : > { %v6643_v15 = vld [vmem:[%s6613_s1 + $0xa0] sm:$0xff]  ;;  %v6648_v16 = vld [vmem:[%s6613_s1 + $0xb8] sm:$0xff]  ;;  %v6651_v17 = vld [vmem:[%s6613_s1 + $0xc8] sm:$0xff] }
  0x53   : > { %986 = vperm.xlu0 %6009, %v741_v3   ;;  %970 = vperm.xlu1 %6007, %v737_v4   ;;  %v6051_v18 = vld [vmem:[%s8602_s26] sm:$0xff]   ;;  %v6052_v20 = vld [vmem:[%s8602_s26 + $0x8] sm:$0xff]   ;;  %v6053_v21 = vld [vmem:[%s8602_s26 + $0x10] sm:$0xff]  }
  0x54   : > { %5678 = vmatprep.subr.bf16.mxu0 %v6051_v18  ;;  %v744_v19 = vld [vmem:[%s6613_s1 + $0x40] sm:$0xff]  ;;  %v6054_v22 = vld [vmem:[%s8602_s26 + $0x18] sm:$0xff]   ;;  %v746_v23 = vld [vmem:[%s6613_s1 + $0x50] sm:$0xff] }
  0x55   : > { %5679 = vmatpush3.bf16.msra.mxu0 %v6051_v18  ;;  %v747_v24 = vld [vmem:[%s6613_s1 + $0x58] sm:$0xff]  ;;  %v6680_v25 = vld [vmem:[%s6613_s1 + $0x90] sm:$0xff]  ;;  %v6691_v27 = vld [vmem:[%s6613_s1 + $0xe0] sm:$0xff] }
  0x56   : > { %5680 = vmatprep.subr.bf16.mxu0 %v6052_v20  ;;  %v6687_v26 = vld [vmem:[%s6613_s1 + $0xd0] sm:$0xff]  ;;  %v749_v28 = vld [vmem:[%s6613_s1 + $0x68] sm:$0xff]  ;;  %v752_v36 = vld [vmem:[%s6613_s1 + $0x80] sm:$0xff] }
  0x57   : > { %990 = vperm.xlu0 %6009, %v742_v5   ;;  %6008 = vset.pattern.permute.xlu1 %v8523_v7  ;;  %v750_v29 = vld [vmem:[%s6613_s1 + $0x70] sm:$0xff]  ;;  %v6705_v30 = vld [vmem:[%s6613_s1 + $0xa8] sm:$0xff]  ;;  %v755_v45 = vld [vmem:[%s6613_s1 + $0x98] sm:$0xff] }
  0x58   : > { %786 = vperm.xlu1 %6008, %v739_v6   ;;  %v6710_v31 = vld [vmem:[%s6613_s1 + $0xb0] sm:$0xff]  ;;  %v6725_v37 = vld [vmem:[%s6613_s1 + $0xe8] sm:$0xff]  ;;  %v6743_v46 = vld [vmem:[%s6613_s1 + $0xf8] sm:$0xff] }
  0x59   : > { %5681 = vmatpush3.bf16.msra.mxu0 %v6052_v20  ;;  %v6732_v40 = vld [vmem:[%s6613_s1 + $0xf0] sm:$0xff]  ;;  %v768_v63 = vld [vmem:[%s8605_s24] sm:$0x7] }
  0x5a   : > { %5682 = vmatprep.subr.bf16.mxu0 %v6053_v21 }
  0x5b   : > { %6015 = vset.pattern.permute.xlu0 %v6395_v8 }
  0x5c   : > { %1166 = vperm.xlu0 %6015, %v737_v4   ;;  %6010 = vset.pattern.permute.xlu1 %v6393_v0 }
  0x5d   : > { %978 = vperm.xlu1 %6010, %v739_v6   ;;  %5683 = vmatpush3.bf16.msra.mxu0 %v6053_v21 }
  0x5e   : > { %5684 = vmatprep.subr.bf16.mxu0 %v6054_v22 }
  0x60   : > { %1178 = vperm.xlu0 %6015, %v740_v9  }
  0x61   : > { %6011 = vset.pattern.permute.xlu1 %v6395_v8  ;;  %5685 = vmatpush3.bf16.msra.mxu0 %v6054_v22 }
  0x62   : > { %1162 = vperm.xlu1 %6011, %v736_v2  }
  0x64   : > { %1190 = vperm.xlu0 %6015, %v743_v10  }
  0x66   : > { %1170 = vperm.xlu1 %6011, %v738_v1  }
  0x68   : > { %1198 = vperm.xlu0 %6015, %v745_v11  }
  0x6a   : > { %1174 = vperm.xlu1 %6011, %v739_v6  }
  0x6c   : > { %1210 = vperm.xlu0 %6015, %v6629_v12  }
  0x6e   : > { %6012 = vset.pattern.permute.xlu1 %v8523_v7 }
  0x6f   : > { %796 = vperm.xlu1 %6012, %v741_v3  }
  0x70   : > { %1222 = vperm.xlu0 %6015, %v6632_v13  }
  0x73   : > { %6013 = vset.pattern.permute.xlu1 %v6393_v0 }
  0x74   : > { %1230 = vperm.xlu0 %6015, %v6637_v14   ;;  %982 = vperm.xlu1 %6013, %v740_v9  }
  0x78   : > { %1242 = vperm.xlu0 %6015, %v6643_v15   ;;  %6014 = vset.pattern.permute.xlu1 %v8523_v7 }
  0x79   : > { %801 = vperm.xlu1 %6014, %v742_v5  }
  0x7c   : > { %1254 = vperm.xlu0 %6015, %v6648_v16  }
  0x7d   : > { %806 = vperm.xlu1 %6014, %v743_v10  }
  0x80   : > { %1262 = vperm.xlu0 %6015, %v6651_v17  }
  0x81   : > { %6016 = vset.pattern.permute.xlu1 %v6393_v0 }
  0x82   : > { %994 = vperm.xlu1 %6016, %v743_v10  }
  0x84   : > { %6043 = vset.pattern.permute.xlu0 %v8523_v7 }
  0x85   : > { %771 = vperm.xlu0 %6043, %v736_v2   ;;  %v8522_v2 = vsub.s32 2, %v6767_v59 }
  0x86   : > { %6017 = vset.pattern.permute.xlu1 %v6395_v8 }
  0x87   : > { %1182 = vperm.xlu1 %6017, %v741_v3  }
  0x89   : > { %776 = vperm.xlu0 %6043, %v737_v4   ;;  %v6788_v4 = vrot.slane %v768_v63, %v6774_v62  ;;  %v6075_v62 = vld [vmem:[%s8499_s12] sm:$0xff]  }
  0x8b   : > { %1186 = vperm.xlu1 %6017, %v742_v5  }
  0x8d   : > { %781 = vperm.xlu0 %6043, %v738_v1   ;;  %v6780_v1 = vsub.s32 0, %v6767_v59 }
  0x8f   : > { %6018 = vset.pattern.permute.xlu1 %v8523_v7  ;;  %8606 = vst [vmem:[#allocation18_spill] sm:$0xff] %v6780_v1  ;;  %v6791_v6 = vrot.slane %v768_v63, %v6780_v1 }
  0x90   : > { %811 = vperm.xlu1 %6018, %v744_v19  }
  0x91   : > { %791 = vperm.xlu0 %6043, %v740_v9   ;;  %v6795_v9 = vrot.slane %v768_v63, %v8522_v2 }
  0x94   : > { %6019 = vset.pattern.permute.xlu1 %v6393_v0 }
  0x95   : > { %816 = vperm.xlu0 %6043, %v745_v11   ;;  %998 = vperm.xlu1 %6019, %v744_v19  }
  0x99   : > { %821 = vperm.xlu0 %6043, %v746_v23   ;;  %1002 = vperm.xlu1 %6019, %v745_v11  }
  0x9d   : > { %831 = vperm.xlu0 %6043, %v6629_v12   ;;  %6020 = vset.pattern.permute.xlu1 %v8523_v7 }
  0x9e   : > { %826 = vperm.xlu1 %6020, %v747_v24  }
  0xa1   : > { %856 = vperm.xlu0 %6043, %v6637_v14  }
  0xa2   : > { %6021 = vset.pattern.permute.xlu1 %v6393_v0 }
  0xa3   : > { %1010 = vperm.xlu1 %6021, %v747_v24  }
  0xa5   : > { %861 = vperm.xlu0 %6043, %v6680_v25  }
  0xa7   : > { %6022 = vset.pattern.permute.xlu1 %v6395_v8 }
  0xa8   : > { %1194 = vperm.xlu1 %6022, %v744_v19  }
  0xa9   : > { %871 = vperm.xlu0 %6043, %v6643_v15  }
  0xac   : > { %1202 = vperm.xlu1 %6022, %v746_v23  }
  0xad   : > { %896 = vperm.xlu0 %6043, %v6651_v17  }
  0xb0   : > { %1206 = vperm.xlu1 %6022, %v747_v24  }
  0xb1   : > { %901 = vperm.xlu0 %6043, %v6687_v26  }
  0xb4   : > { %6023 = vset.pattern.permute.xlu1 %v8523_v7 }
  0xb5   : > { %911 = vperm.xlu0 %6043, %v6691_v27   ;;  %836 = vperm.xlu1 %6023, %v749_v28  }
  0xb9   : > { %6044 = vset.pattern.permute.xlu0 %v6393_v0  ;;  %6024 = vset.pattern.permute.xlu1 %v6393_v0 }
  0xba   : > { %1006 = vperm.xlu0 %6044, %v746_v23   ;;  %1014 = vperm.xlu1 %6024, %v6629_v12  }
  0xbe   : > { %1018 = vperm.xlu0 %6044, %v749_v28   ;;  %6025 = vset.pattern.permute.xlu1 %v8523_v7 }
  0xbf   : > { %841 = vperm.xlu1 %6025, %v750_v29  }
  0xc2   : > { %1022 = vperm.xlu0 %6044, %v750_v29  }
  0xc3   : > { %846 = vperm.xlu1 %6025, %v6632_v13  }
  0xc6   : > { %1038 = vperm.xlu0 %6044, %v6680_v25  }
  0xc7   : > { %6026 = vset.pattern.permute.xlu1 %v6393_v0 }
  0xc8   : > { %1026 = vperm.xlu1 %6026, %v6632_v13  }
  0xca   : > { %1050 = vperm.xlu0 %6044, %v6705_v30  }
  0xcc   : > { %6027 = vset.pattern.permute.xlu1 %v6395_v8 }
  0xcd   : > { %1214 = vperm.xlu1 %6027, %v749_v28  }
  0xce   : > { %v6713_v32 = vpop.permute.xlu1 %966  ;;  %v6715_v33 = vpop.permute.xlu0 %974  ;;  %1054 = vperm.xlu0 %6044, %v6710_v31  }
  0xcf   : > { %v1097_v11 = vmul.f32 %v6788_v4, %v6713_v32 }
  0xd1   : > { %1218 = vperm.xlu1 %6027, %v750_v29  }
  0xd2   : > { %v6718_v34 = vpop.permute.xlu1 %970  ;;  %v6720_v35 = vpop.permute.xlu0 %986  ;;  %1070 = vperm.xlu0 %6044, %v6687_v26  }
  0xd3   : > { %v1098_v21 = vmul.f32 %v6788_v4, %v6718_v34  ;;  %v1102_v29 = vmul.f32 %v6788_v4, %v6720_v35 }
  0xd5   : > { %6028 = vset.pattern.permute.xlu1 %v8523_v7 }
  0xd6   : > { %851 = vperm.xlu1 %6028, %v752_v36   ;;  %v6728_v38 = vpop.permute.xlu0 %990  ;;  %1082 = vperm.xlu0 %6044, %v6725_v37  }
  0xd7   : > { %v787_v39 = vpop.permute.xlu1 %786 }
  0xda   : > { %6029 = vset.pattern.permute.xlu1 %v6393_v0  ;;  %1086 = vperm.xlu0 %6044, %v6732_v40  }
  0xdb   : > { %1030 = vperm.xlu1 %6029, %v752_v36   ;;  %v1167_v41 = vpop.permute.xlu0 %1166 }
  0xdc   : > { %v979_v42 = vpop.permute.xlu1 %978  ;;  %v1294_v23 = vmul.f32 %v6795_v9, %v1167_v41  ;;  %v1103_v41 = vmul.f32 %v6788_v4, %v6728_v38 }
  0xdd   : > { %v1100_v12 = vmul.f32 %v6788_v4, %v979_v42 }
  0xde   : > { %6049 = vset.pattern.permute.xlu0 %v6395_v8 }
  0xdf   : > { %1034 = vperm.xlu1 %6029, %v6637_v14   ;;  %v6738_v43 = vpop.permute.xlu0 %1178  ;;  %1274 = vperm.xlu0 %6049, %v6691_v27  }
  0xe1   : > { %v1163_v44 = vpop.permute.xlu1 %1162 }
  0xe2   : > { %v1293_v18 = vmul.f32 %v6795_v9, %v1163_v44  ;;  %v6821_v44 = vld [vmem:[%s8607_s4] ss:$0 sm:$0xff] }
  0xe3   : > { %6030 = vset.pattern.permute.xlu1 %v8523_v7  ;;  %v6746_v47 = vpop.permute.xlu0 %1190  ;;  %1286 = vperm.xlu0 %6049, %v6743_v46  }
  0xe4   : > { %866 = vperm.xlu1 %6030, %v755_v45  }
  0xe5   : > { %v6749_v48 = vpop.permute.xlu1 %1170 }
  0xe7   : > { %v6751_v49 = vpop.permute.xlu0 %1198 }
  0xe8   : > { %6031 = vset.pattern.permute.xlu1 %v6393_v0 }
  0xe9   : > { %1042 = vperm.xlu1 %6031, %v755_v45   ;;  %v1175_v50 = vpop.permute.xlu1 %1174 }
  0xea   : > { %v1296_v19 = vmul.f32 %v6795_v9, %v1175_v50 }
  0xeb   : > { %v6754_v51 = vpop.permute.xlu0 %1210 }
  0xed   : > { %6032 = vset.pattern.permute.xlu1 %v6395_v8 }
  0xee   : > { %1226 = vperm.xlu1 %6032, %v752_v36   ;;  %v797_v52 = vpop.permute.xlu1 %796 }
  0xef   : > { %v6757_v53 = vpop.permute.xlu0 %1222  ;;  %v938_v32 = vmul.f32 %v6791_v6, %v797_v52 }
  0xf2   : > { %1234 = vperm.xlu1 %6032, %v6680_v25  }
  0xf3   : > { %v6760_v54 = vpop.permute.xlu1 %982  ;;  %v6762_v55 = vpop.permute.xlu0 %1230 }
  0xf6   : > { %1238 = vperm.xlu1 %6032, %v755_v45  }
  0xf7   : > { %v6764_v57 = vpop.permute.xlu0 %1242 }
  0xf8   : > { %v802_v58 = vpop.permute.xlu1 %801 }
  0xf9   : > { %v939_v45 = vmul.f32 %v6791_v6, %v802_v58  ;;  %v1295_v58 = vmul.f32 %v6795_v9, %v6749_v48 }
  0xfa   : > { %6033 = vset.pattern.permute.xlu1 %v8523_v7 }
  0xfb   : > { %876 = vperm.xlu1 %6033, %v6705_v30   ;;  %v6771_v60 = vpop.permute.xlu0 %1254 }
  0xfc   : > { %v807_v61 = vpop.permute.xlu1 %806 }
  0xff   : > { %6034 = vset.pattern.permute.xlu1 %v6393_v0  ;;  %v6784_v3 = vpop.permute.xlu0 %1262 }
 0x100   : > { %1046 = vperm.xlu1 %6034, %v6643_v15   ;;  %v936_v15 = vmul.f32 %v6791_v6, %v787_v39  ;;  %v1099_v39 = vmul.f32 %v6788_v4, %v6715_v33  ;;  %v1297_v33 = vmul.f32 %v6795_v9, %v6738_v43 }
 0x101   : > { %v995_v5 = vpop.permute.xlu1 %994 }
 0x102   : > { %v1132_v24 = vadd.f32 %v1100_v12, %v936_v15  ;;  %v1104_v35 = vmul.f32 %v6788_v4, %v995_v5  ;;  %v1134_v5 = vadd.f32 %v1102_v29, %v938_v32  ;;  %v940_v12 = vmul.f32 %v6791_v6, %v807_v61 }
 0x104   : > { %v772_v10 = vpop.permute.xlu0 %771  ;;  %6035 = vset.pattern.permute.xlu1 %v8523_v7  ;;  %v1328_v42 = vadd.f32 %v1296_v19, %v1132_v24  ;;  %v1101_v19 = vmul.f32 %v6788_v4, %v6760_v54 }
 0x105   : > { %v933_v13 = vmul.f32 %v6791_v6, %v772_v10  ;;  %881 = vperm.xlu1 %6035, %v6710_v31  }
 0x106   : > { %v1183_v14 = vpop.permute.xlu1 %1182  ;;  %v1367_v43 = vadd.f32 %v6821_v44, %v1328_v42 }
 0x107   : > { %v1129_v20 = vadd.f32 %v1097_v11, %v933_v13  ;;  %v1298_v50 = vmul.f32 %v6795_v9, %v1183_v14  ;;  %v1300_v11 = vmul.f32 %v6795_v9, %v6746_v47  ;;  %v1135_v47 = vadd.f32 %v1103_v41, %v939_v45 }
 0x108   : > { %v777_v22 = vpop.permute.xlu0 %776  ;;  %v1399_v54 = vmax.f32 %v1367_v43, 0.0 }
 0x109   : > { %v1325_v25 = vadd.f32 %v1293_v18, %v1129_v20  ;;  %v934_v28 = vmul.f32 %v6791_v6, %v777_v22  ;;  %886 = vperm.xlu1 %6035, %v6648_v16   ;;  %v1136_v20 = vadd.f32 %v1104_v35, %v940_v12 }
 0x10a   : > { %v1187_v36 = vpop.permute.xlu1 %1186 }
 0x10b   : > { %v1130_v34 = vadd.f32 %v1098_v21, %v934_v28  ;;  %v1364_v38 = vadd.f32 %v6821_v44, %v1325_v25  ;;  %v1299_v13 = vmul.f32 %v6795_v9, %v1187_v36  ;;  %v1330_v21 = vadd.f32 %v1298_v50, %v1134_v5 }
 0x10c   : > { %v782_v52 = vpop.permute.xlu0 %781 }
 0x10d   : > { %v1326_v63 = vadd.f32 %v1294_v23, %v1130_v34  ;;  %v935_v10 = vmul.f32 %v6791_v6, %v782_v52  ;;  %6036 = vset.pattern.permute.xlu1 %v6393_v0  ;;  %v1396_v23 = vmax.f32 %v1364_v38, 0.0  ;;  %v1331_v24 = vadd.f32 %v1299_v13, %v1135_v47 }
 0x10e   : > { %1058 = vperm.xlu1 %6036, %v6648_v16   ;;  %v1369_v42 = vadd.f32 %v6821_v44, %v1330_v21 }
 0x10f   : > { %v1131_v14 = vadd.f32 %v1099_v39, %v935_v10  ;;  %v812_v15 = vpop.permute.xlu1 %811  ;;  %v1365_v18 = vadd.f32 %v6821_v44, %v1326_v63  ;;  %v1332_v39 = vadd.f32 %v1300_v11, %v1136_v20  ;;  %v1370_v45 = vadd.f32 %v6821_v44, %v1331_v24  ;;  %v760_v11 = vld [vmem:[%s6613_s1 + $0xc0] sm:$0xff] }
 0x110   : > { %v792_v48 = vpop.permute.xlu0 %791  ;;  %v1401_v10 = vmax.f32 %v1369_v42, 0.0 }
 0x111   : > { %v1327_v22 = vadd.f32 %v1295_v58, %v1131_v14  ;;  %v937_v61 = vmul.f32 %v6791_v6, %v792_v48  ;;  %v1397_v16 = vmax.f32 %v1365_v18, 0.0  ;;  %v1371_v63 = vadd.f32 %v6821_v44, %v1332_v39 }
 0x112   : > { %6037 = vset.pattern.permute.xlu1 %v6395_v8  ;;  %v1402_v58 = vmax.f32 %v1370_v45, 0.0 }
 0x113   : > { %v1366_v25 = vadd.f32 %v6821_v44, %v1327_v22  ;;  %v1133_v28 = vadd.f32 %v1101_v19, %v937_v61  ;;  %1246 = vperm.xlu1 %6037, %v6705_v30   ;;  %v1428_v29 = vpack.c.bf16 %v1397_v16, %v1396_v23  ;;  %v1403_v12 = vmax.f32 %v1371_v63, 0.0  ;;  %v763_v16 = vld [vmem:[%s6613_s1 + $0xd8] sm:$0xff]  ;;  %s8609_s1 = sld [smem:[#allocation65_spill]] }
 0x114   : > { %v999_v32 = vpop.permute.xlu1 %998  ;;  %v817_v36 = vpop.permute.xlu0 %816  ;;  %v1302_v19 = vmul.f32 %v6795_v9, %v6751_v49  ;;  %v941_v22 = vmul.f32 %v6791_v6, %v812_v15 }
 0x115   : > { %v1398_v34 = vmax.f32 %v1366_v25, 0.0  ;;  %v1329_v41 = vadd.f32 %v1297_v33, %v1133_v28  ;;  %5686 = vmatprep.mubr.msk.bf16.mxu0 %vm1483_vm0, %v1428_v29  ;;  %v942_v43 = vmul.f32 %v6791_v6, %v817_v36  ;;  %v1431_v14 = vpack.c.bf16 %v1403_v12, %v1402_v58 }
 0x116   : > { %v1105_v21 = vmul.f32 %v6788_v4, %v999_v32 }
 0x117   : > { %v1368_v35 = vadd.f32 %v6821_v44, %v1329_v41  ;;  %1250 = vperm.xlu1 %6037, %v6710_v31   ;;  %v1429_v50 = vpack.c.bf16 %v1399_v54, %v1398_v34 }
 0x118   : > { %v1003_v30 = vpop.permute.xlu1 %1002  ;;  %v822_v52 = vpop.permute.xlu0 %821  ;;  %v1137_v24 = vadd.f32 %v1105_v21, %v941_v22 }
 0x119   : > { %v1400_v38 = vmax.f32 %v1368_v35, 0.0  ;;  %5687 = vmatmul.mubr.msk.bf16.vlgmr.msra.gmra.mrb[0].mxu0 %vm1483_vm0, %v1429_v50  ;;  %v1106_v13 = vmul.f32 %v6788_v4, %v1003_v30  ;;  %v943_v63 = vmul.f32 %v6791_v6, %v822_v52 }
 0x11b   : > { %6038 = vset.pattern.permute.xlu1 %v8523_v7  ;;  %v1430_v33 = vpack.c.bf16 %v1401_v10, %v1400_v38  ;;  %v1138_v47 = vadd.f32 %v1106_v13, %v942_v43 }
 0x11c   : > { %891 = vperm.xlu1 %6038, %v760_v11   ;;  %v6855_v5 = vpop.permute.xlu0 %831 }
 0x11d   : > { %5690 = vmatprep.mubr.msk.bf16.mxu0 %vm1483_vm0, %v1430_v33  ;;  %v827_v31 = vpop.permute.xlu1 %826  ;;  %v1334_v61 = vadd.f32 %v1302_v19, %v1138_v47 }
 0x11e   : > { %v944_v50 = vmul.f32 %v6791_v6, %v827_v31 }
 0x11f   : > { %v1373_v49 = vadd.f32 %v6821_v44, %v1334_v61 }
 0x120   : > { %6039 = vset.pattern.permute.xlu1 %v6393_v0  ;;  %v6861_v18 = vpop.permute.xlu0 %856 }
 0x121   : > { %1062 = vperm.xlu1 %6039, %v760_v11   ;;  %5691 = vmatmul.mubr.msk.bf16.gmra.mrb[4].mxu0 %vm1483_vm0, %v1431_v14  ;;  %v1405_v15 = vmax.f32 %v1373_v49, 0.0 }
 0x122   : > { %v1011_v20 = vpop.permute.xlu1 %1010 }
 0x123   : > { %v1108_v41 = vmul.f32 %v6788_v4, %v1011_v20  ;;  %v945_v20 = vmul.f32 %v6791_v6, %v6855_v5 }
 0x124   : > { %v6867_v48 = vpop.permute.xlu0 %861 }
 0x125   : > { %1066 = vperm.xlu1 %6039, %v6651_v17   ;;  %v1140_v10 = vadd.f32 %v1108_v41, %v944_v50 }
 0x127   : > { %v1195_v23 = vpop.permute.xlu1 %1194 }
 0x128   : > { %v1301_v25 = vmul.f32 %v6795_v9, %v1195_v23  ;;  %v6873_v28 = vpop.permute.xlu0 %871  ;;  %v1305_v23 = vmul.f32 %v6795_v9, %v6754_v51 }
 0x129   : > { %6040 = vset.pattern.permute.xlu1 %v8523_v7 }
 0x12a   : > { %v1333_v29 = vadd.f32 %v1301_v25, %v1137_v24  ;;  %906 = vperm.xlu1 %6040, %v763_v16  }
 0x12b   : > { %v1203_v54 = vpop.permute.xlu1 %1202 }
 0x12c   : > { %v1372_v32 = vadd.f32 %v6821_v44, %v1333_v29  ;;  %v6878_v17 = vpop.permute.xlu0 %896  ;;  %v1303_v43 = vmul.f32 %v6795_v9, %v1203_v54  ;;  %v1308_v54 = vmul.f32 %v6795_v9, %v6757_v53 }
 0x12e   : > { %v1404_v36 = vmax.f32 %v1372_v32, 0.0  ;;  %6041 = vset.pattern.permute.xlu1 %v6393_v0 }
 0x12f   : > { %1074 = vperm.xlu1 %6041, %v763_v16   ;;  %v1207_v39 = vpop.permute.xlu1 %1206 }
 0x130   : > { %v6881_v42 = vpop.permute.xlu0 %901  ;;  %v1432_v34 = vpack.c.bf16 %v1405_v15, %v1404_v36  ;;  %v1304_v30 = vmul.f32 %v6795_v9, %v1207_v39 }
 0x132   : > { %5694 = vmatprep.mubr.msk.bf16.mxu0 %vm1483_vm0, %v1432_v34  ;;  %v1336_v33 = vadd.f32 %v1304_v30, %v1140_v10 }
 0x133   : > { %6042 = vset.pattern.permute.xlu1 %v6395_v8 }
 0x134   : > { %1258 = vperm.xlu1 %6042, %v760_v11   ;;  %v837_v45 = vpop.permute.xlu1 %836  ;;  %v6886_v35 = vpop.permute.xlu0 %911  ;;  %v1375_v13 = vadd.f32 %v6821_v44, %v1336_v33 }
 0x138   : > { %1266 = vperm.xlu1 %6042, %v6687_v26   ;;  %v1407_v26 = vmax.f32 %v1375_v13, 0.0 }
 0x139   : > { %v1007_v38 = vpop.permute.xlu0 %1006  ;;  %v1015_v58 = vpop.permute.xlu1 %1014 }
 0x13a   : > { %v1107_v12 = vmul.f32 %v6788_v4, %v1007_v38  ;;  %v1109_v21 = vmul.f32 %v6788_v4, %v1015_v58 }
 0x13c   : > { %v1139_v11 = vadd.f32 %v1107_v12, %v943_v63  ;;  %1270 = vperm.xlu1 %6042, %v763_v16   ;;  %v1141_v16 = vadd.f32 %v1109_v21, %v945_v20  ;;  %v950_v21 = vmul.f32 %v6791_v6, %v6861_v18  ;;  %v1310_v18 = vmul.f32 %v6795_v9, %v6762_v55  ;;  %v6061_v55 = vld [vmem:[%s8608_s28 + $0x30] sm:$0xff]  }
 0x13d   : > { %v1019_v22 = vpop.permute.xlu0 %1018 }
 0x13e   : > { %v1335_v14 = vadd.f32 %v1303_v43, %v1139_v11  ;;  %v842_v31 = vpop.permute.xlu1 %841  ;;  %v1110_v49 = vmul.f32 %v6788_v4, %v1019_v22  ;;  %v1337_v32 = vadd.f32 %v1305_v23, %v1141_v16 }
 0x13f   : > { %v947_v50 = vmul.f32 %v6791_v6, %v842_v31  ;;  %v6055_v31 = vld [vmem:[%s8608_s28] sm:$0xff]  }
 0x140   : > { %v1374_v19 = vadd.f32 %v6821_v44, %v1335_v14  ;;  %6045 = vset.pattern.permute.xlu1 %v8523_v7  ;;  %v1376_v41 = vadd.f32 %v6821_v44, %v1337_v32  ;;  %5718 = vmatprep.subr.bf16.mxu1 %v6055_v31 }
 0x141   : > { %916 = vperm.xlu1 %6045, %v6725_v37   ;;  %v1023_v29 = vpop.permute.xlu0 %1022  ;;  %5719 = vmatpush3.bf16.msra.mxu1 %v6055_v31 }
 0x142   : > { %v1406_v52 = vmax.f32 %v1374_v19, 0.0  ;;  %v847_v47 = vpop.permute.xlu1 %846  ;;  %v1111_v39 = vmul.f32 %v6788_v4, %v1023_v29  ;;  %v1408_v58 = vmax.f32 %v1376_v41, 0.0 }
 0x143   : > { %v948_v5 = vmul.f32 %v6791_v6, %v847_v47 }
 0x144   : > { %v1433_v61 = vpack.c.bf16 %v1407_v26, %v1406_v52  ;;  %v6056_v52 = vld [vmem:[%s8608_s28 + $0x8] sm:$0xff]  }
 0x145   : > { %6046 = vset.pattern.permute.xlu1 %v6393_v0  ;;  %5720 = vmatprep.subr.bf16.mxu1 %v6056_v52 }
 0x146   : > { %1078 = vperm.xlu1 %6046, %v6691_v27   ;;  %5695 = vmatmul.mubr.msk.bf16.gmra.mrb[8].mxu0 %vm1483_vm0, %v1433_v61  ;;  %v946_v27 = vmul.f32 %v6791_v6, %v837_v45  ;;  %v1143_v45 = vadd.f32 %v1111_v39, %v947_v50  ;;  %v6060_v61 = vld [vmem:[%s8608_s28 + $0x28] sm:$0xff]  }
 0x147   : > { %v1027_v24 = vpop.permute.xlu1 %1026  ;;  %5721 = vmatpush3.bf16.msra.mxu1 %v6056_v52 }
 0x148   : > { %v1112_v25 = vmul.f32 %v6788_v4, %v1027_v24  ;;  %v1142_v36 = vadd.f32 %v1110_v49, %v946_v27  ;;  %v1039_v24 = vpop.permute.xlu0 %1038  ;;  %v951_v49 = vmul.f32 %v6791_v6, %v6867_v48 }
 0x14a   : > { %6047 = vset.pattern.permute.xlu1 %v8523_v7  ;;  %v1144_v15 = vadd.f32 %v1112_v25, %v948_v5 }
 0x14b   : > { %921 = vperm.xlu1 %6047, %v6732_v40  }
 0x14c   : > { %v1215_v51 = vpop.permute.xlu1 %1214  ;;  %v1340_v30 = vadd.f32 %v1308_v54, %v1144_v15  ;;  %v1115_v54 = vmul.f32 %v6788_v4, %v1039_v24 }
 0x14d   : > { %v1306_v34 = vmul.f32 %v6795_v9, %v1215_v51 }
 0x14e   : > { %v1379_v33 = vadd.f32 %v6821_v44, %v1340_v30  ;;  %v1147_v39 = vadd.f32 %v1115_v54, %v951_v49  ;;  %v6062_v30 = vld [vmem:[%s8608_s28 + $0x38] sm:$0xff]  }
 0x14f   : > { %v1338_v63 = vadd.f32 %v1306_v34, %v1142_v36  ;;  %926 = vperm.xlu1 %6047, %v6743_v46  }
 0x150   : > { %v1219_v53 = vpop.permute.xlu1 %1218  ;;  %v1411_v19 = vmax.f32 %v1379_v33, 0.0 }
 0x151   : > { %v1377_v10 = vadd.f32 %v6821_v44, %v1338_v63  ;;  %v1307_v38 = vmul.f32 %v6795_v9, %v1219_v53 }
 0x153   : > { %v1409_v12 = vmax.f32 %v1377_v10, 0.0  ;;  %v1339_v43 = vadd.f32 %v1307_v38, %v1143_v45  ;;  %6048 = vset.pattern.permute.xlu1 %v6393_v0 }
 0x154   : > { %1090 = vperm.xlu1 %6048, %v6743_v46  }
 0x155   : > { %v1378_v11 = vadd.f32 %v6821_v44, %v1339_v43  ;;  %v852_v13 = vpop.permute.xlu1 %851  ;;  %v1434_v14 = vpack.c.bf16 %v1409_v12, %v1408_v58 }
 0x156   : > { %v949_v5 = vmul.f32 %v6791_v6, %v852_v13 }
 0x157   : > { %v1410_v26 = vmax.f32 %v1378_v11, 0.0  ;;  %5698 = vmatprep.mubr.msk.bf16.mxu0 %vm1483_vm0, %v1434_v14 }
 0x158   : > { %6050 = vset.pattern.permute.xlu1 %v6395_v8  ;;  %v6057_v8 = vld [vmem:[%s8608_s28 + $0x10] sm:$0xff]  }
 0x159   : > { %1278 = vperm.xlu1 %6050, %v6725_v37   ;;  %v1435_v0 = vpack.c.bf16 %v1411_v19, %v1410_v26  ;;  %5722 = vmatprep.subr.bf16.mxu1 %v6057_v8  ;;  %v6058_v37 = vld [vmem:[%s8608_s28 + $0x18] sm:$0xff]  }
 0x15a   : > { %v1031_v46 = vpop.permute.xlu1 %1030  ;;  %5723 = vmatpush3.bf16.msra.mxu1 %v6057_v8  ;;  %v953_v8 = vmul.f32 %v6791_v6, %v6873_v28 }
 0x15b   : > { %5699 = vmatmul.mubr.msk.bf16.gmra.mrb[12].mxu0 %vm1483_vm0, %v1435_v0  ;;  %5724 = vmatprep.subr.bf16.mxu1 %v6058_v37  ;;  %v1113_v25 = vmul.f32 %v6788_v4, %v1031_v46 }
 0x15d   : > { %1282 = vperm.xlu1 %6050, %v6732_v40   ;;  %v6059_v40 = vld [vmem:[%s8608_s28 + $0x20] sm:$0xff]   ;;  %v1145_v32 = vadd.f32 %v1113_v25, %v949_v5  ;;  %v1316_v25 = vmul.f32 %v6795_v9, %v6771_v60 }
 0x15e   : > { %v1035_v47 = vpop.permute.xlu1 %1034  ;;  %5725 = vmatpush3.bf16.msra.mxu1 %v6058_v37  ;;  %v1051_v37 = vpop.permute.xlu0 %1050 }
 0x15f   : > { %v1114_v22 = vmul.f32 %v6788_v4, %v1035_v47  ;;  %5726 = vmatprep.subr.bf16.mxu1 %v6059_v40 }
 0x161   : > { %v1146_v23 = vadd.f32 %v1114_v22, %v950_v21 }
 0x162   : > { %5727 = vmatpush3.bf16.msra.mxu1 %v6059_v40  ;;  %v1313_v40 = vmul.f32 %v6795_v9, %v6764_v57  ;;  %v1055_v28 = vpop.permute.xlu0 %1054 }
 0x163   : > { %v867_v20 = vpop.permute.xlu1 %866  ;;  %5728 = vmatprep.subr.bf16.mxu1 %v6060_v61  ;;  %v1342_v29 = vadd.f32 %v1310_v18, %v1146_v23  ;;  %v1119_v5 = vmul.f32 %v6788_v4, %v1055_v28 }
 0x164   : > { %v952_v53 = vmul.f32 %v6791_v6, %v867_v20 }
 0x165   : > { %v1381_v51 = vadd.f32 %v6821_v44, %v1342_v29 }
 0x166   : > { %5729 = vmatpush3.bf16.msra.mxu1 %v6060_v61  ;;  %v1118_v61 = vmul.f32 %v6788_v4, %v1051_v37 }
 0x167   : > { %5730 = vmatprep.subr.bf16.mxu1 %v6061_v55  ;;  %v1413_v63 = vmax.f32 %v1381_v51, 0.0 }
 0x168   : > { %v1043_v16 = vpop.permute.xlu1 %1042 }
 0x169   : > { %v1116_v34 = vmul.f32 %v6788_v4, %v1043_v16 }
 0x16a   : > { %5731 = vmatpush3.bf16.msra.mxu1 %v6061_v55 }
 0x16b   : > { %5732 = vmatprep.subr.bf16.mxu1 %v6062_v30  ;;  %v1148_v58 = vadd.f32 %v1116_v34, %v952_v53 }
 0x16d   : > { %v1227_v27 = vpop.permute.xlu1 %1226 }
 0x16e   : > { %v1309_v15 = vmul.f32 %v6795_v9, %v1227_v27  ;;  %5733 = vmatpush3.bf16.msra.mxu1 %v6062_v30 }
 0x170   : > { %v1341_v36 = vadd.f32 %v1309_v15, %v1145_v32 }
 0x171   : > { %v1235_v48 = vpop.permute.xlu1 %1234 }
 0x172   : > { %v1380_v41 = vadd.f32 %v6821_v44, %v1341_v36  ;;  %v1311_v50 = vmul.f32 %v6795_v9, %v1235_v48 }
 0x174   : > { %v1412_v45 = vmax.f32 %v1380_v41, 0.0  ;;  %v1343_v10 = vadd.f32 %v1311_v50, %v1147_v39 }
 0x175   : > { %v1239_v38 = vpop.permute.xlu1 %1238 }
 0x176   : > { %v1312_v33 = vmul.f32 %v6795_v9, %v1239_v38  ;;  %v1436_v12 = vpack.c.bf16 %v1413_v63, %v1412_v45  ;;  %v1382_v43 = vadd.f32 %v6821_v44, %v1343_v10 }
 0x178   : > { %v1344_v11 = vadd.f32 %v1312_v33, %v1148_v58  ;;  %5702 = vmatprep.mubr.msk.bf16.mxu0 %vm1483_vm0, %v1436_v12  ;;  %v1414_v31 = vmax.f32 %v1382_v43, 0.0  ;;  %v958_v43 = vmul.f32 %v6791_v6, %v6878_v17 }
 0x17a   : > { %v1383_v13 = vadd.f32 %v6821_v44, %v1344_v11  ;;  %v877_v14 = vpop.permute.xlu1 %876 }
 0x17b   : > { %v954_v23 = vmul.f32 %v6791_v6, %v877_v14  ;;  %v1318_v14 = vmul.f32 %v6795_v9, %v6784_v3 }
 0x17c   : > { %v1415_v19 = vmax.f32 %v1383_v13, 0.0 }
 0x17d   : > { %v1150_v29 = vadd.f32 %v1118_v61, %v954_v23 }
 0x17e   : > { %v1437_v26 = vpack.c.bf16 %v1415_v19, %v1414_v31  ;;  %v1071_v19 = vpop.permute.xlu0 %1070 }
 0x17f   : > { %v1047_v0 = vpop.permute.xlu1 %1046 }
 0x180   : > { %5703 = vmatmul.mubr.msk.bf16.gmra.mrb[16].mxu0 %vm1483_vm0, %v1437_v26  ;;  %v1117_v47 = vmul.f32 %v6788_v4, %v1047_v0 }
 0x182   : > { %v1149_v20 = vadd.f32 %v1117_v47, %v953_v8  ;;  %v1123_v47 = vmul.f32 %v6788_v4, %v1071_v19 }
 0x184   : > { %v882_v46 = vpop.permute.xlu1 %881  ;;  %v1345_v24 = vadd.f32 %v1313_v40, %v1149_v20 }
 0x185   : > { %v955_v54 = vmul.f32 %v6791_v6, %v882_v46 }
 0x186   : > { %v1384_v27 = vadd.f32 %v6821_v44, %v1345_v24 }
 0x187   : > { %v1151_v51 = vadd.f32 %v1119_v5, %v955_v54 }
 0x188   : > { %v887_v52 = vpop.permute.xlu1 %886  ;;  %v1416_v60 = vmax.f32 %v1384_v27, 0.0 }
 0x189   : > { %v956_v16 = vmul.f32 %v6791_v6, %v887_v52  ;;  %v959_v52 = vmul.f32 %v6791_v6, %v6881_v42 }
 0x18b   : > { %v1155_v3 = vadd.f32 %v1123_v47, %v959_v52 }
 0x18d   : > { %v1059_v21 = vpop.permute.xlu1 %1058 }
 0x18e   : > { %v1120_v22 = vmul.f32 %v6788_v4, %v1059_v21 }
 0x190   : > { %v1152_v18 = vadd.f32 %v1120_v22, %v956_v16 }
 0x192   : > { %v1247_v49 = vpop.permute.xlu1 %1246  ;;  %v1348_v32 = vadd.f32 %v1316_v25, %v1152_v18 }
 0x193   : > { %v1314_v57 = vmul.f32 %v6795_v9, %v1247_v49 }
 0x194   : > { %v1387_v48 = vadd.f32 %v6821_v44, %v1348_v32 }
 0x195   : > { %v1346_v15 = vadd.f32 %v1314_v57, %v1150_v29 }
 0x196   : > { %v1251_v55 = vpop.permute.xlu1 %1250  ;;  %v1419_v53 = vmax.f32 %v1387_v48, 0.0 }
 0x197   : > { %v1385_v36 = vadd.f32 %v6821_v44, %v1346_v15  ;;  %v1315_v39 = vmul.f32 %v6795_v9, %v1251_v55 }
 0x199   : > { %v1417_v34 = vmax.f32 %v1385_v36, 0.0  ;;  %v1347_v41 = vadd.f32 %v1315_v39, %v1151_v51  ;;  %v1083_v51 = vpop.permute.xlu0 %1082 }
 0x19b   : > { %v1386_v50 = vadd.f32 %v6821_v44, %v1347_v41  ;;  %v892_v30 = vpop.permute.xlu1 %891  ;;  %v1438_v63 = vpack.c.bf16 %v1417_v34, %v1416_v60  ;;  %v961_v41 = vmul.f32 %v6791_v6, %v6886_v35 }
 0x19c   : > { %v957_v26 = vmul.f32 %v6791_v6, %v892_v30 }
 0x19d   : > { %v1418_v45 = vmax.f32 %v1386_v50, 0.0  ;;  %5706 = vmatprep.mubr.msk.bf16.mxu0 %vm1483_vm0, %v1438_v63  ;;  %v1087_v39 = vpop.permute.xlu0 %1086 }
 0x19f   : > { %v1439_v10 = vpack.c.bf16 %v1419_v53, %v1418_v45 }
 0x1a0   : > { %v1063_v38 = vpop.permute.xlu1 %1062 }
 0x1a1   : > { %5707 = vmatmul.mubr.msk.bf16.gmra.mrb[20].mxu0 %vm1483_vm0, %v1439_v10  ;;  %v1121_v31 = vmul.f32 %v6788_v4, %v1063_v38  ;;  %v1275_v34 = vpop.permute.xlu0 %1274 }
 0x1a2   : > { %v1321_v30 = vmul.f32 %v6795_v9, %v1275_v34 }
 0x1a3   : > { %v1153_v8 = vadd.f32 %v1121_v31, %v957_v26  ;;  %v1127_v31 = vmul.f32 %v6788_v4, %v1087_v39 }
 0x1a4   : > { %v1067_v58 = vpop.permute.xlu1 %1066 }
 0x1a5   : > { %v1122_v12 = vmul.f32 %v6788_v4, %v1067_v58  ;;  %v1287_v45 = vpop.permute.xlu0 %1286  ;;  %v1126_v58 = vmul.f32 %v6788_v4, %v1083_v51 }
 0x1a7   : > { %v1154_v11 = vadd.f32 %v1122_v12, %v958_v43  ;;  %v1324_v43 = vmul.f32 %v6795_v9, %v1287_v45 }
 0x1a9   : > { %v907_v33 = vpop.permute.xlu1 %906  ;;  %v1350_v0 = vadd.f32 %v1318_v14, %v1154_v11 }
 0x1aa   : > { %v960_v16 = vmul.f32 %v6791_v6, %v907_v33 }
 0x1ab   : > { %v1389_v37 = vadd.f32 %v6821_v44, %v1350_v0 }
 0x1ad   : > { %v1421_v23 = vmax.f32 %v1389_v37, 0.0 }
 0x1ae   : > { %v1075_v13 = vpop.permute.xlu1 %1074 }
 0x1af   : > { %v1124_v22 = vmul.f32 %v6788_v4, %v1075_v13 }
 0x1b1   : > { %v1156_v25 = vadd.f32 %v1124_v22, %v960_v16 }
 0x1b3   : > { %v1259_v46 = vpop.permute.xlu1 %1258 }
 0x1b4   : > { %v1317_v17 = vmul.f32 %v6795_v9, %v1259_v46 }
 0x1b6   : > { %v1349_v20 = vadd.f32 %v1317_v17, %v1153_v8 }
 0x1b7   : > { %v1267_v21 = vpop.permute.xlu1 %1266 }
 0x1b8   : > { %v1388_v40 = vadd.f32 %v6821_v44, %v1349_v20  ;;  %v1319_v61 = vmul.f32 %v6795_v9, %v1267_v21 }
 0x1ba   : > { %v1420_v42 = vmax.f32 %v1388_v40, 0.0  ;;  %v1351_v24 = vadd.f32 %v1319_v61, %v1155_v3  ;;  %v7039_v61 = vld [vmem:[%s8609_s1] ss:$0 sm:$0xff]  ;;  %s7486_s1 = sand.u32 1, %s6380_s30  }
 0x1bb   : > { %v1271_v18 = vpop.permute.xlu1 %1270  ;;  %s5274_s27 = sshll.u32 %s7486_s1, 8 }
 0x1bc   : > { %v1320_v28 = vmul.f32 %v6795_v9, %v1271_v18  ;;  %v1440_v49 = vpack.c.bf16 %v1421_v23, %v1420_v42  ;;  %v1390_v5 = vadd.f32 %v6821_v44, %v1351_v24  ;;  %s7500_s24 = scalar_lea.vmem [#allocation5], %s5274_s27  ;;  %s6398_s27 = smov [#allocation5]  }
 0x1bd   : > { %s6294_s0 = sshll.u32 %s6398_s27, 4  ;;  %s6295_s0 = int_to_ptr.vmem [resolvable:$false] %s6294_s0 }
 0x1be   : > { %v1352_v29 = vadd.f32 %v1320_v28, %v1156_v25  ;;  %5710 = vmatprep.mubr.msk.bf16.mxu0 %vm1483_vm0, %v1440_v49  ;;  %v1422_v27 = vmax.f32 %v1390_v5, 0.0 }
 0x1c0   : > { %v1391_v54 = vadd.f32 %v6821_v44, %v1352_v29  ;;  %v917_v57 = vpop.permute.xlu1 %916 }
 0x1c1   : > { %v962_v10 = vmul.f32 %v6791_v6, %v917_v57 }
 0x1c2   : > { %v1423_v32 = vmax.f32 %v1391_v54, 0.0 }
 0x1c3   : > { %v1158_v13 = vadd.f32 %v1126_v58, %v962_v10 }
 0x1c4   : > { %v1441_v15 = vpack.c.bf16 %v1423_v32, %v1422_v27 }
 0x1c5   : > { %v1079_v55 = vpop.permute.xlu1 %1078 }
 0x1c6   : > { %5711 = vmatmul.mubr.msk.bf16.gmra.mrb[24].mxu0 %vm1483_vm0, %v1441_v15  ;;  %v1125_v48 = vmul.f32 %v6788_v4, %v1079_v55 }
 0x1c8   : > { %v1157_v50 = vadd.f32 %v1125_v48, %v961_v41 }
 0x1ca   : > { %v922_v36 = vpop.permute.xlu1 %921  ;;  %v1353_v33 = vadd.f32 %v1321_v30, %v1157_v50 }
 0x1cb   : > { %v963_v35 = vmul.f32 %v6791_v6, %v922_v36 }
 0x1cc   : > { %v1392_v19 = vadd.f32 %v6821_v44, %v1353_v33 }
 0x1cd   : > { %v1159_v52 = vadd.f32 %v1127_v31, %v963_v35 }
 0x1ce   : > { %v927_v60 = vpop.permute.xlu1 %926  ;;  %v1424_v17 = vmax.f32 %v1392_v19, 0.0 }
 0x1cf   : > { %v964_v38 = vmul.f32 %v6791_v6, %v927_v60 }
 0x1d3   : > { %v1091_v63 = vpop.permute.xlu1 %1090 }
 0x1d4   : > { %v1128_v53 = vmul.f32 %v6788_v4, %v1091_v63 }
 0x1d6   : > { %v1160_v12 = vadd.f32 %v1128_v53, %v964_v38 }
 0x1d8   : > { %v1279_v11 = vpop.permute.xlu1 %1278  ;;  %v1356_v26 = vadd.f32 %v1324_v43, %v1160_v12 }
 0x1d9   : > { %v1322_v14 = vmul.f32 %v6795_v9, %v1279_v11 }
 0x1da   : > { %v1395_v37 = vadd.f32 %v6821_v44, %v1356_v26 }
 0x1db   : > { %v1354_v0 = vadd.f32 %v1322_v14, %v1158_v13 }
 0x1dc   : > { %v1283_v46 = vpop.permute.xlu1 %1282  ;;  %v1427_v22 = vmax.f32 %v1395_v37, 0.0 }
 0x1dd   : > { %v1393_v47 = vadd.f32 %v6821_v44, %v1354_v0  ;;  %v1323_v8 = vmul.f32 %v6795_v9, %v1283_v46 }
 0x1df   : > { %v1425_v20 = vmax.f32 %v1393_v47, 0.0  ;;  %v1355_v21 = vadd.f32 %v1323_v8, %v1159_v52 }
 0x1e1   : > { %v1394_v6 = vadd.f32 %v6821_v44, %v1355_v21  ;;  %v1442_v3 = vpack.c.bf16 %v1425_v20, %v1424_v17 }
 0x1e3   : > { %v1426_v4 = vmax.f32 %v1394_v6, 0.0  ;;  %5714 = vmatprep.mubr.msk.bf16.mxu0 %vm1483_vm0, %v1442_v3 }
 0x1e5   : > { %v1443_v40 = vpack.c.bf16 %v1427_v22, %v1426_v4 }
 0x1e7   : > { %5715 = vmatmul.mubr.msk.bf16.gmra.mrb[28].mxu0 %vm1483_vm0, %v1443_v40  ;;  %v6063_v40 = vld [vmem:[%s8610_s29] sm:$0xff]  }
 0x1e8   : > { %5766 = vmatprep.subr.bf16.mxu0 %v6063_v40 }
 0x1e9   : > { %5767 = vmatpush3.bf16.msra.mxu0 %v6063_v40 }
 0x1ec   : > { %v5688_v9 = vpop.f32.mrb[0].mxu0 }
 0x1ed   : > { %v1575_v23 = vadd.f32 %v5688_v9, %v7039_v61  ;;  %v1566_v16 = vpop.f32.mrb[1].mxu0  ;;  %v6064_v9 = vld [vmem:[%s8610_s29 + $0x8] sm:$0xff]  }
 0x1ee   : > { %v1567_v42 = vadd.f32 %v7039_v61, %v1566_v16  ;;  %v5689_v44 = vpop.f32.mrb[2].mxu0  ;;  %5768 = vmatprep.subr.bf16.mxu0 %v6064_v9  ;;  %v6066_v16 = vld [vmem:[%s8610_s29 + $0x18] sm:$0xff]  }
 0x1ef   : > { %v1578_v24 = vadd.f32 %v5689_v44, %v7039_v61  ;;  %v1569_v18 = vpop.f32.mrb[3].mxu0  ;;  %v1695_v28 = vmax.f32 %v1575_v23, 0.0  ;;  %5769 = vmatpush3.bf16.msra.mxu0 %v6064_v9  ;;  %v6065_v23 = vld [vmem:[%s8610_s29 + $0x10] sm:$0xff]  }
 0x1f0   : > { %v1570_v25 = vadd.f32 %v7039_v61, %v1569_v18  ;;  %v1693_v5 = vmax.f32 %v1567_v42, 0.0  ;;  %5770 = vmatprep.subr.bf16.mxu0 %v6065_v23 }
 0x1f1   : > { %v1696_v49 = vmax.f32 %v1578_v24, 0.0 }
 0x1f2   : > { %v1694_v29 = vmax.f32 %v1570_v25, 0.0 }
 0x1f3   : > { %v1726_v54 = vpack.c.bf16 %v1696_v49, %v1695_v28  ;;  %5771 = vmatpush3.bf16.msra.mxu0 %v6065_v23 }
 0x1f4   : > { %v5692_v57 = vpop.f32.mrb[4].mxu0  ;;  %v1725_v27 = vpack.c.bf16 %v1694_v29, %v1693_v5  ;;  %5772 = vmatprep.subr.bf16.mxu0 %v6066_v16 }
 0x1f5   : > { %v1591_v32 = vadd.f32 %v5692_v57, %v7039_v61  ;;  %v1582_v15 = vpop.f32.mrb[5].mxu0 }
 0x1f6   : > { %v1583_v55 = vadd.f32 %v7039_v61, %v1582_v15  ;;  %v5693_v51 = vpop.f32.mrb[6].mxu0  ;;  %5734 = vmatprep.mubr.bf16.mxu1 %v1725_v27 }
 0x1f7   : > { %v1594_v36 = vadd.f32 %v5693_v51, %v7039_v61  ;;  %v1585_v39 = vpop.f32.mrb[7].mxu0  ;;  %5735 = vmatmul.mubr.bf16.vlgmr.msra.gmra.mrb[0].mxu1 %v1726_v54  ;;  %v1699_v48 = vmax.f32 %v1591_v32, 0.0  ;;  %5773 = vmatpush3.bf16.msra.mxu0 %v6066_v16 }
 0x1f8   : > { %v1586_v60 = vadd.f32 %v7039_v61, %v1585_v39  ;;  %v1697_v41 = vmax.f32 %v1583_v55, 0.0  ;;  %5858 = vmatprep.subr.bf16.mxu0 %v6075_v62 }
 0x1f9   : > { %v1700_v34 = vmax.f32 %v1594_v36, 0.0 }
 0x1fa   : > { %v1698_v50 = vmax.f32 %v1586_v60, 0.0 }
 0x1fb   : > { %v1728_v30 = vpack.c.bf16 %v1700_v34, %v1699_v48 }
 0x1fc   : > { %v1727_v63 = vpack.c.bf16 %v1698_v50, %v1697_v41 }
 0x1fe   : > { %5738 = vmatprep.mubr.bf16.mxu1 %v1727_v63 }
 0x1ff   : > { %5739 = vmatmul.mubr.bf16.gmra.mrb[4].mxu1 %v1728_v30 }
 0x219   : > { %v5696_v53 = vpop.f32.mrb[8].mxu0 }
 0x21a   : > { %v1607_v45 = vadd.f32 %v5696_v53, %v7039_v61  ;;  %v1598_v10 = vpop.f32.mrb[9].mxu0 }
 0x21b   : > { %v1599_v38 = vadd.f32 %v7039_v61, %v1598_v10  ;;  %v5697_v58 = vpop.f32.mrb[10].mxu0 }
 0x21c   : > { %v1610_v33 = vadd.f32 %v5697_v58, %v7039_v61  ;;  %v1601_v12 = vpop.f32.mrb[11].mxu0  ;;  %v1703_v11 = vmax.f32 %v1607_v45, 0.0 }
 0x21d   : > { %v1602_v43 = vadd.f32 %v7039_v61, %v1601_v12  ;;  %v1701_v35 = vmax.f32 %v1599_v38, 0.0 }
 0x21e   : > { %v1704_v13 = vmax.f32 %v1610_v33, 0.0 }
 0x21f   : > { %v1702_v14 = vmax.f32 %v1602_v43, 0.0 }
 0x220   : > { %v1730_v31 = vpack.c.bf16 %v1704_v13, %v1703_v11 }
 0x221   : > { %v1729_v19 = vpack.c.bf16 %v1702_v14, %v1701_v35 }
 0x223   : > { %5742 = vmatprep.mubr.bf16.mxu1 %v1729_v19 }
 0x224   : > { %5743 = vmatmul.mubr.bf16.gmra.mrb[8].mxu1 %v1730_v31 }
 0x22e   : > { %v5700_v26 = vpop.f32.mrb[12].mxu0 }
 0x22f   : > { %v1623_v0 = vadd.f32 %v5700_v26, %v7039_v61  ;;  %v1614_v46 = vpop.f32.mrb[13].mxu0 }
 0x230   : > { %v1615_v52 = vadd.f32 %v7039_v61, %v1614_v46  ;;  %v5701_v47 = vpop.f32.mrb[14].mxu0 }
 0x231   : > { %v1626_v8 = vadd.f32 %v5701_v47, %v7039_v61  ;;  %v1617_v17 = vpop.f32.mrb[15].mxu0  ;;  %v1707_v20 = vmax.f32 %v1623_v0, 0.0 }
 0x232   : > { %v1618_v37 = vadd.f32 %v7039_v61, %v1617_v17  ;;  %v1705_v6 = vmax.f32 %v1615_v52, 0.0 }
 0x233   : > { %v1708_v21 = vmax.f32 %v1626_v8, 0.0 }
 0x234   : > { %v1706_v3 = vmax.f32 %v1618_v37, 0.0 }
 0x235   : > { %v1732_v22 = vpack.c.bf16 %v1708_v21, %v1707_v20 }
 0x236   : > { %v1731_v4 = vpack.c.bf16 %v1706_v3, %v1705_v6 }
 0x238   : > { %5746 = vmatprep.mubr.bf16.mxu1 %v1731_v4 }
 0x239   : > { %5747 = vmatmul.mubr.bf16.gmra.mrb[12].mxu1 %v1732_v22 }
 0x253   : > { %v5704_v42 = vpop.f32.mrb[16].mxu0 }
 0x254   : > { %v1639_v44 = vadd.f32 %v5704_v42, %v7039_v61  ;;  %v1630_v24 = vpop.f32.mrb[17].mxu0  ;;  %v7088_v42 = vld [vmem:[%s8611_s3] ss:$0 sm:$0xff]  ;;  %s6296_s3 = scalar_lea.vmem %s6295_s0, 8192 }
 0x255   : > { %v1631_v18 = vadd.f32 %v7039_v61, %v1630_v24  ;;  %v5705_v25 = vpop.f32.mrb[18].mxu0 }
 0x256   : > { %v1642_v28 = vadd.f32 %v5705_v25, %v7039_v61  ;;  %v1633_v49 = vpop.f32.mrb[19].mxu0  ;;  %v1711_v29 = vmax.f32 %v1639_v44, 0.0 }
 0x257   : > { %v1634_v5 = vadd.f32 %v7039_v61, %v1633_v49  ;;  %v1709_v57 = vmax.f32 %v1631_v18, 0.0 }
 0x258   : > { %v1712_v54 = vmax.f32 %v1642_v28, 0.0 }
 0x259   : > { %v1710_v27 = vmax.f32 %v1634_v5, 0.0 }
 0x25a   : > { %v1734_v32 = vpack.c.bf16 %v1712_v54, %v1711_v29 }
 0x25b   : > { %v1733_v15 = vpack.c.bf16 %v1710_v27, %v1709_v57 }
 0x25d   : > { %5750 = vmatprep.mubr.bf16.mxu1 %v1733_v15 }
 0x25e   : > { %5751 = vmatmul.mubr.bf16.gmra.mrb[16].mxu1 %v1734_v32 }
 0x274   : > { %v5708_v55 = vpop.f32.mrb[20].mxu0 }
 0x275   : > { %v1655_v51 = vadd.f32 %v5708_v55, %v7039_v61  ;;  %v1646_v36 = vpop.f32.mrb[21].mxu0 }
 0x276   : > { %v1647_v39 = vadd.f32 %v7039_v61, %v1646_v36  ;;  %v5709_v60 = vpop.f32.mrb[22].mxu0 }
 0x277   : > { %v1658_v48 = vadd.f32 %v5709_v60, %v7039_v61  ;;  %v1649_v34 = vpop.f32.mrb[23].mxu0  ;;  %v1715_v50 = vmax.f32 %v1655_v51, 0.0 }
 0x278   : > { %v1650_v41 = vadd.f32 %v7039_v61, %v1649_v34  ;;  %v1713_v63 = vmax.f32 %v1647_v39, 0.0  ;;  %v8526_v34 = vmov 0.0  }
 0x279   : > { %v1716_v30 = vmax.f32 %v1658_v48, 0.0  ;;  %v6067_v48 = vld [vmem:[%s8620_s8] sm:$0xff]   ;;  %5806 = vmatprep.subr.bf16.mxu1 %v8526_v34 }
 0x27a   : > { %v1714_v53 = vmax.f32 %v1650_v41, 0.0  ;;  %5807 = vmatpush3.bf16.msra.mxu1 %v6067_v48 }
 0x27b   : > { %v1736_v45 = vpack.c.bf16 %v1716_v30, %v1715_v50  ;;  %5808 = vmatprep.subr.bf16.mxu1 %v8526_v34 }
 0x27c   : > { %v1735_v10 = vpack.c.bf16 %v1714_v53, %v1713_v63 }
 0x27e   : > { %5754 = vmatprep.mubr.bf16.mxu1 %v1735_v10 }
 0x27f   : > { %5755 = vmatmul.mubr.bf16.gmra.mrb[20].mxu1 %v1736_v45 }
 0x299   : > { %v5712_v38 = vpop.f32.mrb[24].mxu0 }
 0x29a   : > { %v1671_v58 = vadd.f32 %v5712_v38, %v7039_v61  ;;  %v1662_v33 = vpop.f32.mrb[25].mxu0 }
 0x29b   : > { %v1663_v12 = vadd.f32 %v7039_v61, %v1662_v33  ;;  %v5713_v43 = vpop.f32.mrb[26].mxu0 }
 0x29c   : > { %v1674_v11 = vadd.f32 %v5713_v43, %v7039_v61  ;;  %v1665_v13 = vpop.f32.mrb[27].mxu0  ;;  %v1719_v14 = vmax.f32 %v1671_v58, 0.0  ;;  %v6069_v43 = vld [vmem:[%s8620_s8 + $0x10] sm:$0xff]  }
 0x29d   : > { %v1666_v35 = vadd.f32 %v7039_v61, %v1665_v13  ;;  %v1717_v19 = vmax.f32 %v1663_v12, 0.0  ;;  %v6068_v12 = vld [vmem:[%s8620_s8 + $0x8] sm:$0xff]  }
 0x29e   : > { %v1720_v31 = vmax.f32 %v1674_v11, 0.0  ;;  %5809 = vmatpush3.bf16.msra.mxu1 %v6068_v12 }
 0x29f   : > { %v1718_v26 = vmax.f32 %v1666_v35, 0.0  ;;  %5810 = vmatprep.subr.bf16.mxu1 %v8526_v34 }
 0x2a0   : > { %v1738_v0 = vpack.c.bf16 %v1720_v31, %v1719_v14 }
 0x2a1   : > { %v1737_v46 = vpack.c.bf16 %v1718_v26, %v1717_v19 }
 0x2a2   : > { %5811 = vmatpush3.bf16.msra.mxu1 %v6069_v43 }
 0x2a3   : > { %5758 = vmatprep.mubr.bf16.mxu1 %v1737_v46  ;;  %5812 = vmatprep.subr.bf16.mxu1 %v8526_v34 }
 0x2a4   : > { %5759 = vmatmul.mubr.bf16.gmra.mrb[24].mxu1 %v1738_v0 }
 0x2ba   : > { %v5716_v52 = vpop.f32.mrb[28].mxu0 }
 0x2bb   : > { %v1687_v47 = vadd.f32 %v5716_v52, %v7039_v61  ;;  %v1678_v8 = vpop.f32.mrb[29].mxu0 }
 0x2bc   : > { %v1679_v17 = vadd.f32 %v7039_v61, %v1678_v8  ;;  %v5717_v37 = vpop.f32.mrb[30].mxu0 }
 0x2bd   : > { %v1690_v20 = vadd.f32 %v5717_v37, %v7039_v61  ;;  %v1681_v21 = vpop.f32.mrb[31].mxu0  ;;  %v1723_v3 = vmax.f32 %v1687_v47, 0.0  ;;  %v6070_v47 = vld [vmem:[%s8620_s8 + $0x18] sm:$0xff]   ;;  %s5148_s8 = sshll.u32 %s7500_s24, 4  ;;  %s8401_s8 = int_to_ptr.vmem [resolvable:$true] %s5148_s8 }
 0x2be   : > { %v1682_v6 = vadd.f32 %v7039_v61, %v1681_v21  ;;  %v1721_v4 = vmax.f32 %v1679_v17, 0.0  ;;  %5813 = vmatpush3.bf16.msra.mxu1 %v6070_v47  ;;  %s6290_s4 = scalar_lea.vmem %s8401_s8, 4096  ;;  %p6297_p2 = scmp.lt.s32.totalorder %s8401_s8, %s6295_s0 }
 0x2bf   : > { %v1724_v22 = vmax.f32 %v1690_v20, 0.0  ;;  %p6291_p6 = scmp.ne.s32.totalorder %s8401_s8, %s6290_s4  ;;  %p6298_p3 = scmp.lt.s32.totalorder %s6296_s3, %s6290_s4 }
 0x2c0   : > { %v1722_v40 = vmax.f32 %v1682_v6, 0.0 }
 0x2c1   : > { %v1740_v9 = vpack.c.bf16 %v1724_v22, %v1723_v3  ;;  %p6292_p10 = pnand %p6291_p6, %p8706_p9  ;;  %p6299_p4 = por %p6298_p3, %p6297_p2 }
 0x2c2   : > { %v1739_v23 = vpack.c.bf16 %v1722_v40, %v1721_v4 }
 0x2c3   : > { %p6293_p12 = pneg %p6292_p10 }
 0x2c4   : > { %5762 = vmatprep.mubr.bf16.mxu1 %v1739_v23 }
 0x2c5   : > { %5763 = vmatmul.mubr.bf16.gmra.mrb[28].mxu1 %v1740_v9  ;;  %p6300_p7 = pnand %p6299_p4, %p6293_p12 }
 0x2c6   : > { %5814 = vmatprep.mubr.msk.bf16.mxu1 %vm6397_vm1, %v8526_v34 }
 0x2ca   : > { %v5736_v16 = vpop.f32.mrb[0].mxu1 }
 0x2cb   : > { %v1846_v44 = vpop.f32.mrb[1].mxu1  ;;  %v7100_v49 = vadd.f32 %v5736_v16, %v7088_v42 }
 0x2cc   : > { %v5737_v24 = vpop.f32.mrb[2].mxu1  ;;  %v7094_v25 = vadd.f32 %v7088_v42, %v1846_v44 }
 0x2cd   : > { %v7091_v18 = vadd.f32 %v5737_v24, %v7088_v42  ;;  %v1849_v61 = vpop.f32.mrb[3].mxu1  ;;  %8615 = vst [vmem:[#allocation22_spill] sm:$0xff] %v7100_v49  ;;  %v1975_v43 = vsel %vm1483_vm0, %v7100_v49, -inf }
 0x2ce   : > { %8613 = vst [vmem:[#allocation20_spill] sm:$0xff] %v7094_v25  ;;  %v7097_v28 = vadd.f32 %v7088_v42, %v1849_v61 }
 0x2cf   : > { %8612 = vst [vmem:[#allocation19_spill] sm:$0xff] %v7091_v18  ;;  %v2043_v29 = vpack.c.bf16 %v7091_v18, %v7100_v49 }
 0x2d0   : > { %8614 = vst [vmem:[#allocation21_spill] sm:$0xff] %v7097_v28  ;;  %v2042_v5 = vpack.c.bf16 %v7097_v28, %v7094_v25 }
 0x2d2   : > { %v5740_v54 = vpop.f32.mrb[4].mxu1  ;;  %5774 = vmatprep.mubr.msk.bf16.mxu0 %vm1483_vm0, %v2042_v5 }
 0x2d3   : > { %v1862_v57 = vpop.f32.mrb[5].mxu1  ;;  %5775 = vmatmul.mubr.msk.bf16.vlgmr.msra.gmra.mrb[32].mxu0 %vm1483_vm0, %v2043_v29  ;;  %v7118_v36 = vadd.f32 %v5740_v54, %v7088_v42 }
 0x2d4   : > { %v5741_v27 = vpop.f32.mrb[6].mxu1  ;;  %v7112_v55 = vadd.f32 %v7088_v42, %v1862_v57  ;;  %5859 = vmatpush3.bf16.msra.mxu0 %v6075_v62 }
 0x2d5   : > { %v7109_v32 = vadd.f32 %v5741_v27, %v7088_v42  ;;  %v1865_v15 = vpop.f32.mrb[7].mxu1  ;;  %8619 = vst [vmem:[#allocation26_spill] sm:$0xff] %v7118_v36 }
 0x2d6   : > { %8617 = vst [vmem:[#allocation24_spill] sm:$0xff] %v7112_v55  ;;  %v7115_v51 = vadd.f32 %v7088_v42, %v1865_v15  ;;  %v1977_v12 = vsel %vm1483_vm0, %v7112_v55, -inf }
 0x2d7   : > { %8616 = vst [vmem:[#allocation23_spill] sm:$0xff] %v7109_v32  ;;  %v2045_v60 = vpack.c.bf16 %v7109_v32, %v7118_v36 }
 0x2d8   : > { %8618 = vst [vmem:[#allocation25_spill] sm:$0xff] %v7115_v51  ;;  %v2044_v39 = vpack.c.bf16 %v7115_v51, %v7112_v55 }
 0x2da   : > { %5778 = vmatprep.mubr.msk.bf16.mxu0 %vm1483_vm0, %v2044_v39 }
 0x2db   : > { %5779 = vmatmul.mubr.msk.bf16.gmra.mrb[36].mxu0 %vm1483_vm0, %v2045_v60 }
 0x2f7   : > { %v5744_v41 = vpop.f32.mrb[8].mxu1 }
 0x2f8   : > { %v1878_v50 = vpop.f32.mrb[9].mxu1  ;;  %v7141_v38 = vadd.f32 %v5744_v41, %v7088_v42 }
 0x2f9   : > { %v5745_v30 = vpop.f32.mrb[10].mxu1  ;;  %v7135_v45 = vadd.f32 %v7088_v42, %v1878_v50 }
 0x2fa   : > { %v7132_v63 = vadd.f32 %v5745_v30, %v7088_v42  ;;  %v1881_v53 = vpop.f32.mrb[11].mxu1  ;;  %8624 = vst [vmem:[#allocation30_spill] sm:$0xff] %v7141_v38 }
 0x2fb   : > { %8622 = vst [vmem:[#allocation28_spill] sm:$0xff] %v7135_v45  ;;  %v7138_v10 = vadd.f32 %v7088_v42, %v1881_v53  ;;  %v1985_v47 = vsel %vm1483_vm0, %v7135_v45, -inf }
 0x2fc   : > { %8621 = vst [vmem:[#allocation27_spill] sm:$0xff] %v7132_v63  ;;  %v2047_v33 = vpack.c.bf16 %v7132_v63, %v7141_v38 }
 0x2fd   : > { %8623 = vst [vmem:[#allocation29_spill] sm:$0xff] %v7138_v10  ;;  %v2046_v58 = vpack.c.bf16 %v7138_v10, %v7135_v45 }
 0x2ff   : > { %5782 = vmatprep.mubr.msk.bf16.mxu0 %vm1483_vm0, %v2046_v58 }
 0x300   : > { %5783 = vmatmul.mubr.msk.bf16.gmra.mrb[40].mxu0 %vm1483_vm0, %v2047_v33  ;;  %v1981_v33 = vsel %vm1483_vm0, %v7118_v36, -inf }
 0x30c   : > { %v5748_v11 = vpop.f32.mrb[12].mxu1 }
 0x30d   : > { %v1894_v13 = vpop.f32.mrb[13].mxu1  ;;  %v7167_v0 = vadd.f32 %v5748_v11, %v7088_v42  ;;  %v1973_v11 = vsel %vm1483_vm0, %v7094_v25, -inf }
 0x30e   : > { %v5749_v35 = vpop.f32.mrb[14].mxu1  ;;  %v7161_v19 = vadd.f32 %v7088_v42, %v1894_v13  ;;  %v1983_v13 = vsel %vm1483_vm0, %v7109_v32, -inf }
 0x30f   : > { %v7158_v14 = vadd.f32 %v5749_v35, %v7088_v42  ;;  %v1897_v31 = vpop.f32.mrb[15].mxu1  ;;  %8628 = vst [vmem:[#allocation34_spill] sm:$0xff] %v7167_v0  ;;  %v1979_v35 = vsel %vm1483_vm0, %v7115_v51, -inf }
 0x310   : > { %8626 = vst [vmem:[#allocation32_spill] sm:$0xff] %v7161_v19  ;;  %v7164_v26 = vadd.f32 %v7088_v42, %v1897_v31  ;;  %v1976_v31 = vsel %vm1483_vm0, %v7091_v18, -inf }
 0x311   : > { %8625 = vst [vmem:[#allocation31_spill] sm:$0xff] %v7158_v14  ;;  %v2049_v52 = vpack.c.bf16 %v7158_v14, %v7167_v0 }
 0x312   : > { %8627 = vst [vmem:[#allocation33_spill] sm:$0xff] %v7164_v26  ;;  %v2048_v46 = vpack.c.bf16 %v7164_v26, %v7161_v19 }
 0x314   : > { %5786 = vmatprep.mubr.msk.bf16.mxu0 %vm1483_vm0, %v2048_v46  ;;  %v1974_v46 = vsel %vm1483_vm0, %v7097_v28, -inf }
 0x315   : > { %5787 = vmatmul.mubr.msk.bf16.gmra.mrb[44].mxu0 %vm1483_vm0, %v2049_v52  ;;  %v1989_v52 = vsel %vm1483_vm0, %v7141_v38, -inf }
 0x331   : > { %v5752_v8 = vpop.f32.mrb[16].mxu1 }
 0x332   : > { %v1910_v17 = vpop.f32.mrb[17].mxu1  ;;  %v7190_v22 = vadd.f32 %v5752_v8, %v7088_v42  ;;  %v1982_v8 = vmax.f32 %v1975_v43, %v1981_v33 }
 0x333   : > { %v5753_v37 = vpop.f32.mrb[18].mxu1  ;;  %v7184_v6 = vadd.f32 %v7088_v42, %v1910_v17  ;;  %v1978_v17 = vmax.f32 %v1973_v11, %v1977_v12 }
 0x334   : > { %v7181_v20 = vadd.f32 %v5753_v37, %v7088_v42  ;;  %v1913_v21 = vpop.f32.mrb[19].mxu1  ;;  %8632 = vst [vmem:[#allocation38_spill] sm:$0xff] %v7190_v22  ;;  %v1991_v37 = vsel %vm1483_vm0, %v7132_v63, -inf }
 0x335   : > { %8630 = vst [vmem:[#allocation36_spill] sm:$0xff] %v7184_v6  ;;  %v7187_v3 = vadd.f32 %v7088_v42, %v1913_v21  ;;  %v1987_v21 = vsel %vm1483_vm0, %v7138_v10, -inf }
 0x336   : > { %8629 = vst [vmem:[#allocation35_spill] sm:$0xff] %v7181_v20  ;;  %v2051_v40 = vpack.c.bf16 %v7181_v20, %v7190_v22  ;;  %v2007_v33 = vsel %vm1483_vm0, %v7181_v20, -inf }
 0x337   : > { %8631 = vst [vmem:[#allocation37_spill] sm:$0xff] %v7187_v3  ;;  %v2050_v4 = vpack.c.bf16 %v7187_v3, %v7184_v6  ;;  %v2003_v12 = vsel %vm1483_vm0, %v7187_v3, -inf }
 0x339   : > { %5790 = vmatprep.mubr.msk.bf16.mxu0 %vm1483_vm0, %v2050_v4  ;;  %v1984_v4 = vmax.f32 %v1976_v31, %v1983_v13 }
 0x33a   : > { %5791 = vmatmul.mubr.msk.bf16.gmra.mrb[48].mxu0 %vm1483_vm0, %v2051_v40  ;;  %v1980_v40 = vmax.f32 %v1974_v46, %v1979_v35 }
 0x352   : > { %v5756_v9 = vpop.f32.mrb[20].mxu1 }
 0x353   : > { %v1926_v23 = vpop.f32.mrb[21].mxu1  ;;  %v7208_v29 = vadd.f32 %v5756_v9, %v7088_v42  ;;  %v1997_v9 = vsel %vm1483_vm0, %v7167_v0, -inf }
 0x354   : > { %v5757_v16 = vpop.f32.mrb[22].mxu1  ;;  %v7202_v61 = vadd.f32 %v7088_v42, %v1926_v23  ;;  %v1993_v23 = vsel %vm1483_vm0, %v7161_v19, -inf }
 0x355   : > { %v7199_v44 = vadd.f32 %v5757_v16, %v7088_v42  ;;  %v1929_v24 = vpop.f32.mrb[23].mxu1  ;;  %8636 = vst [vmem:[#allocation42_spill] sm:$0xff] %v7208_v29  ;;  %v1990_v16 = vmax.f32 %v1982_v8, %v1989_v52  ;;  %v2013_v13 = vsel %vm1483_vm0, %v7208_v29, -inf }
 0x356   : > { %8634 = vst [vmem:[#allocation40_spill] sm:$0xff] %v7202_v61  ;;  %v7205_v5 = vadd.f32 %v7088_v42, %v1929_v24  ;;  %v1986_v24 = vmax.f32 %v1978_v17, %v1985_v47  ;;  %v2009_v8 = vsel %vm1483_vm0, %v7202_v61, -inf }
 0x357   : > { %8633 = vst [vmem:[#allocation39_spill] sm:$0xff] %v7199_v44  ;;  %v2053_v57 = vpack.c.bf16 %v7199_v44, %v7208_v29  ;;  %v2015_v46 = vsel %vm1483_vm0, %v7199_v44, -inf }
 0x358   : > { %8635 = vst [vmem:[#allocation41_spill] sm:$0xff] %v7205_v5  ;;  %v2052_v54 = vpack.c.bf16 %v7205_v5, %v7202_v61  ;;  %v2011_v17 = vsel %vm1483_vm0, %v7205_v5, -inf }
 0x35a   : > { %5794 = vmatprep.mubr.msk.bf16.mxu0 %vm1483_vm0, %v2052_v54  ;;  %v1999_v54 = vsel %vm1483_vm0, %v7158_v14, -inf }
 0x35b   : > { %5795 = vmatmul.mubr.msk.bf16.gmra.mrb[52].mxu0 %vm1483_vm0, %v2053_v57  ;;  %v1995_v57 = vsel %vm1483_vm0, %v7164_v26, -inf }
 0x377   : > { %v5760_v27 = vpop.f32.mrb[24].mxu1 }
 0x378   : > { %v1942_v15 = vpop.f32.mrb[25].mxu1  ;;  %v7226_v30 = vadd.f32 %v5760_v27, %v7088_v42  ;;  %v1992_v27 = vmax.f32 %v1984_v4, %v1991_v37 }
 0x379   : > { %v5761_v39 = vpop.f32.mrb[26].mxu1  ;;  %v7220_v41 = vadd.f32 %v7088_v42, %v1942_v15  ;;  %v1988_v15 = vmax.f32 %v1980_v40, %v1987_v21 }
 0x37a   : > { %v7217_v60 = vadd.f32 %v5761_v39, %v7088_v42  ;;  %v1945_v48 = vpop.f32.mrb[27].mxu1  ;;  %8640 = vst [vmem:[#allocation46_spill] sm:$0xff] %v7226_v30  ;;  %v2005_v39 = vsel %vm1483_vm0, %v7190_v22, -inf  ;;  %v2000_v43 = vmax.f32 %v1992_v27, %v1999_v54  ;;  %v2021_v4 = vsel %vm1483_vm0, %v7226_v30, -inf }
 0x37b   : > { %8638 = vst [vmem:[#allocation44_spill] sm:$0xff] %v7220_v41  ;;  %v7223_v50 = vadd.f32 %v7088_v42, %v1945_v48  ;;  %v2001_v48 = vsel %vm1483_vm0, %v7184_v6, -inf  ;;  %v1996_v11 = vmax.f32 %v1988_v15, %v1995_v57 }
 0x37c   : > { %8637 = vst [vmem:[#allocation43_spill] sm:$0xff] %v7217_v60  ;;  %v2055_v58 = vpack.c.bf16 %v7217_v60, %v7226_v30  ;;  %v2008_v52 = vmax.f32 %v2000_v43, %v2007_v33  ;;  %v2023_v40 = vsel %vm1483_vm0, %v7217_v60, -inf }
 0x37d   : > { %8639 = vst [vmem:[#allocation45_spill] sm:$0xff] %v7223_v50  ;;  %v2054_v53 = vpack.c.bf16 %v7223_v50, %v7220_v41  ;;  %v2004_v47 = vmax.f32 %v1996_v11, %v2003_v12  ;;  %v2019_v54 = vsel %vm1483_vm0, %v7223_v50, -inf }
 0x37f   : > { %5798 = vmatprep.mubr.msk.bf16.mxu0 %vm1483_vm0, %v2054_v53  ;;  %v1998_v53 = vmax.f32 %v1990_v16, %v1997_v9  ;;  %v2016_v16 = vmax.f32 %v2008_v52, %v2015_v46 }
 0x380   : > { %5799 = vmatmul.mubr.msk.bf16.gmra.mrb[56].mxu0 %vm1483_vm0, %v2055_v58  ;;  %v1994_v58 = vmax.f32 %v1986_v24, %v1993_v23  ;;  %v2017_v24 = vsel %vm1483_vm0, %v7220_v41, -inf }
 0x381   : > { %v2006_v35 = vmax.f32 %v1998_v53, %v2005_v39  ;;  %v2012_v39 = vmax.f32 %v2004_v47, %v2011_v17  ;;  %v2024_v12 = vmax.f32 %v2016_v16, %v2023_v40 }
 0x382   : > { %v2002_v31 = vmax.f32 %v1994_v58, %v2001_v48 }
 0x383   : > { %v2014_v21 = vmax.f32 %v2006_v35, %v2013_v13  ;;  %v2020_v35 = vmax.f32 %v2012_v39, %v2019_v54 }
 0x384   : > { %v2010_v15 = vmax.f32 %v2002_v31, %v2009_v8 }
 0x385   : > { %v2022_v33 = vmax.f32 %v2014_v21, %v2021_v4 }
 0x386   : > { %v2018_v13 = vmax.f32 %v2010_v15, %v2017_v24 }
 0x398   : > { %v5764_v37 = vpop.f32.mrb[28].mxu1 }
 0x399   : > { %v7287_v9 = vadd.f32 %v5764_v37, %v7088_v42  ;;  %v1958_v23 = vpop.f32.mrb[29].mxu1 }
 0x39a   : > { %v7294_v57 = vadd.f32 %v7088_v42, %v1958_v23  ;;  %v5765_v27 = vpop.f32.mrb[30].mxu1 }
 0x39b   : > { %8641 = vst [vmem:[#allocation47_spill] sm:$0xff] %v7287_v9  ;;  %v2029_v48 = vsel %vm1483_vm0, %v7287_v9, -inf  ;;  %v7299_v53 = vadd.f32 %v5765_v27, %v7088_v42  ;;  %v1961_v58 = vpop.f32.mrb[31].mxu1 }
 0x39c   : > { %8642 = vst [vmem:[#allocation48_spill] sm:$0xff] %v7294_v57  ;;  %v2025_v43 = vsel %vm1483_vm0, %v7294_v57, -inf  ;;  %v7304_v11 = vadd.f32 %v7088_v42, %v1961_v58  ;;  %v2030_v46 = vmax.f32 %v2022_v33, %v2029_v48 }
 0x39d   : > { %8643 = vst [vmem:[#allocation49_spill] sm:$0xff] %v7299_v53  ;;  %v2031_v31 = vsel %vm1483_vm0, %v7299_v53, -inf  ;;  %v2026_v17 = vmax.f32 %v2018_v13, %v2025_v43  ;;  %v2057_v37 = vpack.c.bf16 %v7299_v53, %v7287_v9 }
 0x39e   : > { %8644 = vst [vmem:[#allocation50_spill] sm:$0xff] %v7304_v11  ;;  %v2032_v52 = vmax.f32 %v2024_v12, %v2031_v31  ;;  %v2027_v47 = vsel %vm1483_vm0, %v7304_v11, -inf  ;;  %v2056_v8 = vpack.c.bf16 %v7304_v11, %v7294_v57 }
 0x39f   : > { %v2028_v21 = vmax.f32 %v2020_v35, %v2027_v47 }
 0x3a0   : > { %v2034_v42 = vmax.f32 %v2030_v46, %v2032_v52  ;;  %5802 = vmatprep.mubr.msk.bf16.mxu0 %vm1483_vm0, %v2056_v8 }
 0x3a1   : > { %v2033_v4 = vmax.f32 %v2026_v17, %v2028_v21  ;;  %5803 = vmatmul.mubr.msk.bf16.gmra.mrb[60].mxu0 %vm1483_vm0, %v2057_v37 }
 0x3a3   : > { %v2035_v40 = vmax.f32 %v2033_v4, %v2034_v42  ;;  %v6071_v4 = vld [vmem:[%s8645_s10] sm:$0xff]  }
 0x3a4   : > { %5818 = vmatprep.subr.bf16.mxu1 %v6071_v4 }
 0x3a5   : > { %v2036_v23 = vrot.slane %v2035_v40, 4 }
 0x3a6   : > { %v7316_v16 = vpop.f32.mrb[32].mxu0 }
 0x3a7   : > { %v2037_v24 = vmax.f32 %v2035_v40, %v2036_v23  ;;  %v2172_v54 = vpop.f32.mrb[33].mxu0 }
 0x3a8   : > { %v5777_v27 = vpop.f32.mrb[34].mxu0 }
 0x3a9   : > { %v2038_v15 = vrot.slane %v2037_v24, 2  ;;  %v2175_v39 = vpop.f32.mrb[35].mxu0 }
 0x3ab   : > { %v2039_v48 = vmax.f32 %v2037_v24, %v2038_v15 }
 0x3ad   : > { %v2040_v58 = vrot.slane %v2039_v48, 1 }
 0x3ae   : > { %v5780_v33 = vpop.f32.mrb[36].mxu0 }
 0x3af   : > { %v2041_v12 = vmax.f32 %v2039_v48, %v2040_v58  ;;  %v2188_v43 = vpop.f32.mrb[37].mxu0  ;;  %v6072_v48 = vld [vmem:[%s8645_s10 + $0x8] sm:$0xff]   ;;  %v6073_v58 = vld [vmem:[%s8645_s10 + $0x10] sm:$0xff]  }
 0x3b0   : > { %v5781_v13 = vpop.f32.mrb[38].mxu0 }
 0x3b1   : > { %v2299_v35 = vpack.c.bf16 %v2041_v12, %v2041_v12  ;;  %v2191_v31 = vpop.f32.mrb[39].mxu0  ;;  %v6074_v12 = vld [vmem:[%s8645_s10 + $0x18] sm:$0xff]   ;;  %s5548_s10 = sshll.u32 %s6544_s5, 12 }
 0x3b2   : > { %s8398_s6 = scalar_lea.hbm %s8509_s22, %s5548_s10 }
 0x3b3   : > { %5815 = vmatmul.mubr.msk.bf16.vlgmr.msra.gmra.mrb[32].mxu1 %vm1483_vm0, %v2299_v35 }
 0x3b4   : > { %5819 = vmatpush3.bf16.msra.mxu1 %v6071_v4 }
 0x3b5   : > { %5820 = vmatprep.subr.bf16.mxu1 %v6072_v48 }
 0x3b8   : > { %5821 = vmatpush3.bf16.msra.mxu1 %v6072_v48 }
 0x3b9   : > { %5822 = vmatprep.subr.bf16.mxu1 %v6073_v58 }
 0x3bc   : > { %5823 = vmatpush3.bf16.msra.mxu1 %v6073_v58  ;;  %v6076_v58 = vld [vmem:[%s8499_s12 + $0x8] sm:$0xff]  }
 0x3bd   : > { %5824 = vmatprep.subr.bf16.mxu1 %v6074_v12  ;;  %5860 = vmatprep.subr.bf16.mxu0 %v6076_v58 }
 0x3be   : > { %5861 = vmatpush3.bf16.msra.mxu0 %v6076_v58 }
 0x3c0   : > { %5825 = vmatpush3.bf16.msra.mxu1 %v6074_v12  ;;  %v8646_v12 = vmov 0.0  }
 0x3c1   : > { %5928 = vmatprep.subr.bf16.mxu0 %v8646_v12 }
 0x3d3   : > { %v5784_v46 = vpop.f32.mrb[40].mxu0 }
 0x3d4   : > { %v2204_v52 = vpop.f32.mrb[41].mxu0 }
 0x3d5   : > { %v5785_v47 = vpop.f32.mrb[42].mxu0 }
 0x3d6   : > { %v2207_v8 = vpop.f32.mrb[43].mxu0 }
 0x3e8   : > { %v5788_v17 = vpop.f32.mrb[44].mxu0 }
 0x3e9   : > { %v2220_v37 = vpop.f32.mrb[45].mxu0 }
 0x3ea   : > { %v5789_v21 = vpop.f32.mrb[46].mxu0 }
 0x3eb   : > { %v2223_v42 = vpop.f32.mrb[47].mxu0 }
 0x40d   : > { %v5792_v40 = vpop.f32.mrb[48].mxu0 }
 0x40e   : > { %v2236_v23 = vpop.f32.mrb[49].mxu0 }
 0x40f   : > { %v5793_v24 = vpop.f32.mrb[50].mxu0 }
 0x410   : > { %v2239_v15 = vpop.f32.mrb[51].mxu0 }
 0x42e   : > { %v5796_v35 = vpop.f32.mrb[52].mxu0 }
 0x42f   : > { %v2252_v4 = vpop.f32.mrb[53].mxu0 }
 0x430   : > { %v5797_v2 = vpop.f32.mrb[54].mxu0 }
 0x431   : > { %v2255_v7 = vpop.f32.mrb[55].mxu0 }
 0x453   : > { %v5800_v56 = vpop.f32.mrb[56].mxu0 }
 0x454   : > { %v2268_v34 = vpop.f32.mrb[57].mxu0 }
 0x455   : > { %v5801_v59 = vpop.f32.mrb[58].mxu0 }
 0x456   : > { %v2271_v48 = vpop.f32.mrb[59].mxu0 }
 0x474   : > { %v5804_v53 = vpop.f32.mrb[60].mxu0 }
 0x475   : > { %v2284_v11 = vpop.f32.mrb[61].mxu0 }
 0x476   : > { %v5805_v9 = vpop.f32.mrb[62].mxu0 }
 0x477   : > { %v2287_v50 = vpop.f32.mrb[63].mxu0 }
 0x486   : > { %v2369_v57 = vpop.f32.mrb[32].mxu1 }
 0x487   : > { %v2378_v60 = vrot.slane %v2369_v57, %v6780_v1  ;;  %v5816_v41 = vpop.f32.mrb[33].mxu1 }
 0x488   : > { %v2372_v5 = vpop.f32.mrb[34].mxu1 }
 0x489   : > { %v2379_v30 = vadd.f32 %v2378_v60, %v2172_v54  ;;  %v2380_v44 = vadd.f32 %v2378_v60, %v2175_v39  ;;  %v2381_v61 = vadd.f32 %v7316_v16, %v2378_v60  ;;  %v2382_v3 = vadd.f32 %v5777_v27, %v2378_v60  ;;  %v5817_v29 = vpop.f32.mrb[35].mxu1 }
 0x48a   : > { %v2383_v62 = vadd.f32 %v2378_v60, %v2188_v43  ;;  %v2384_v20 = vadd.f32 %v2378_v60, %v2191_v31  ;;  %v2385_v58 = vadd.f32 %v5780_v33, %v2378_v60  ;;  %v2386_v6 = vadd.f32 %v5781_v13, %v2378_v60  ;;  %v5333_v29 = vld [vmem:[%s8647_s9] ss:$0 sm:$0xff]  ;;  %s5130_s9 = scalar_lea.sflag [#allocation4], %s7486_s1 }
 0x48b   : > { %v2387_v26 = vadd.f32 %v2378_v60, %v2204_v52  ;;  %v2388_v22 = vadd.f32 %v2378_v60, %v2207_v8  ;;  %v2389_v14 = vadd.f32 %v5784_v46, %v2378_v60  ;;  %v2390_v19 = vadd.f32 %v5785_v47, %v2378_v60 }
 0x48c   : > { %v2391_v10 = vadd.f32 %v2378_v60, %v2220_v37  ;;  %v2392_v0 = vadd.f32 %v2378_v60, %v2223_v42  ;;  %v2393_v63 = vadd.f32 %v5788_v17, %v2378_v60  ;;  %v2394_v57 = vadd.f32 %v5789_v21, %v2378_v60 }
 0x48d   : > { %v2395_v41 = vadd.f32 %v2378_v60, %v2236_v23  ;;  %v2396_v5 = vadd.f32 %v2378_v60, %v2239_v15  ;;  %v2397_v54 = vadd.f32 %v5792_v40, %v2378_v60  ;;  %v2398_v39 = vadd.f32 %v5793_v24, %v2378_v60 }
 0x48e   : > { %v2399_v16 = vadd.f32 %v2378_v60, %v2252_v4  ;;  %v2400_v27 = vadd.f32 %v2378_v60, %v2255_v7  ;;  %v2401_v33 = vadd.f32 %v5796_v35, %v2378_v60  ;;  %v2402_v43 = vadd.f32 %v5797_v2, %v2378_v60 }
 0x48f   : > { %v2403_v13 = vadd.f32 %v2378_v60, %v2268_v34  ;;  %v2404_v31 = vadd.f32 %v2378_v60, %v2271_v48  ;;  %v2405_v46 = vadd.f32 %v5800_v56, %v2378_v60  ;;  %v2406_v52 = vadd.f32 %v5801_v59, %v2378_v60 }
 0x490   : > { %v2407_v47 = vadd.f32 %v2378_v60, %v2284_v11  ;;  %v2408_v8 = vadd.f32 %v2378_v60, %v2287_v50  ;;  %v2409_v17 = vadd.f32 %v5804_v53, %v2378_v60  ;;  %v2410_v37 = vadd.f32 %v5805_v9, %v2378_v60 }
 0x491   : > { %v7343_v21 = vadd.f32 %v5333_v29, %v2379_v30  ;;  %v7345_v42 = vadd.f32 %v5333_v29, %v2380_v44  ;;  %v7347_v40 = vadd.f32 %v5333_v29, %v2381_v61  ;;  %v7349_v23 = vadd.f32 %v5333_v29, %v2382_v3 }
 0x492   : > { %v7351_v24 = vadd.f32 %v5333_v29, %v2383_v62  ;;  %v2423_v7 = vadd.f32 %v5333_v29, %v2384_v20  ;;  %v2424_v2 = vadd.f32 %v5333_v29, %v2385_v58  ;;  %v2425_v34 = vadd.f32 %v5333_v29, %v2386_v6 }
 0x493   : > { %v2426_v15 = vadd.f32 %v5333_v29, %v2387_v26  ;;  %v2427_v56 = vadd.f32 %v5333_v29, %v2388_v22  ;;  %v2428_v59 = vadd.f32 %v5333_v29, %v2389_v14  ;;  %v2429_v11 = vadd.f32 %v5333_v29, %v2390_v19 }
 0x494   : > { %v2430_v50 = vadd.f32 %v5333_v29, %v2391_v10  ;;  %v2431_v53 = vadd.f32 %v5333_v29, %v2392_v0  ;;  %v2432_v60 = vadd.f32 %v5333_v29, %v2393_v63  ;;  %v2433_v30 = vadd.f32 %v5333_v29, %v2394_v57 }
 0x495   : > { %v2434_v9 = vadd.f32 %v5333_v29, %v2395_v41  ;;  %v2435_v44 = vadd.f32 %v5333_v29, %v2396_v5  ;;  %v2436_v35 = vadd.f32 %v5333_v29, %v2397_v54  ;;  %v2437_v61 = vadd.f32 %v5333_v29, %v2398_v39 }
 0x496   : > { %v2438_v4 = vadd.f32 %v5333_v29, %v2399_v16  ;;  %v2439_v3 = vadd.f32 %v5333_v29, %v2400_v27  ;;  %v2440_v48 = vadd.f32 %v5333_v29, %v2401_v33  ;;  %v2441_v62 = vadd.f32 %v5333_v29, %v2402_v43 }
 0x497   : > { %v2442_v1 = vadd.f32 %v5333_v29, %v2403_v13  ;;  %v2443_v20 = vadd.f32 %v5333_v29, %v2404_v31  ;;  %v2444_v58 = vadd.f32 %v5333_v29, %v2405_v46  ;;  %v2445_v6 = vadd.f32 %v5333_v29, %v2406_v52 }
 0x498   : > { %v2446_v26 = vadd.f32 %v5333_v29, %v2407_v47  ;;  %v2447_v22 = vadd.f32 %v5333_v29, %v2408_v8  ;;  %v2448_v14 = vadd.f32 %v5333_v29, %v2409_v17  ;;  %v2449_v19 = vadd.f32 %v5333_v29, %v2410_v37 }
 0x499   : > { %v2450_v10 = vmax.f32 %v7343_v21, 0.0  ;;  %v2451_v63 = vmax.f32 %v7345_v42, 0.0  ;;  %v2452_v0 = vmax.f32 %v7347_v40, 0.0  ;;  %v2453_v57 = vmax.f32 %v7349_v23, 0.0 }
 0x49a   : > { %v2454_v41 = vmax.f32 %v7351_v24, 0.0  ;;  %v2455_v5 = vmax.f32 %v2423_v7, 0.0  ;;  %v2456_v54 = vmax.f32 %v2424_v2, 0.0  ;;  %v2457_v39 = vmax.f32 %v2425_v34, 0.0 }
 0x49b   : > { %v2458_v16 = vmax.f32 %v2426_v15, 0.0  ;;  %v2459_v27 = vmax.f32 %v2427_v56, 0.0  ;;  %v2460_v33 = vmax.f32 %v2428_v59, 0.0  ;;  %v2461_v43 = vmax.f32 %v2429_v11, 0.0 }
 0x49c   : > { %v2462_v13 = vmax.f32 %v2430_v50, 0.0  ;;  %v2463_v31 = vmax.f32 %v2431_v53, 0.0  ;;  %v2464_v29 = vmax.f32 %v2432_v60, 0.0  ;;  %v2465_v46 = vmax.f32 %v2433_v30, 0.0 }
 0x49d   : > { %v2466_v52 = vmax.f32 %v2434_v9, 0.0  ;;  %v2467_v47 = vmax.f32 %v2435_v44, 0.0  ;;  %v2468_v8 = vmax.f32 %v2436_v35, 0.0  ;;  %v2469_v17 = vmax.f32 %v2437_v61, 0.0 }
 0x49e   : > { %v2470_v37 = vmax.f32 %v2438_v4, 0.0  ;;  %v2471_v21 = vmax.f32 %v2439_v3, 0.0  ;;  %v2472_v42 = vmax.f32 %v2440_v48, 0.0  ;;  %v2473_v40 = vmax.f32 %v2441_v62, 0.0 }
 0x49f   : > { %v2474_v23 = vmax.f32 %v2442_v1, 0.0  ;;  %v2475_v24 = vmax.f32 %v2443_v20, 0.0  ;;  %v2476_v7 = vmax.f32 %v2444_v58, 0.0  ;;  %v2477_v2 = vmax.f32 %v2445_v6, 0.0  ;;  %v6077_v6 = vld [vmem:[%s8501_s14] sm:$0xff]  }
 0x4a0   : > { %v2478_v34 = vmax.f32 %v2446_v26, 0.0  ;;  %v2479_v15 = vmax.f32 %v2447_v22, 0.0  ;;  %v2480_v56 = vmax.f32 %v2448_v14, 0.0  ;;  %v2481_v59 = vmax.f32 %v2449_v19, 0.0  ;;  %5894 = vmatprep.subr.bf16.mxu1 %v6077_v6  ;;  %v7380_v26 = vld [vmem:[%s8648_s11] ss:$0 sm:$0xff] }
 0x4a1   : > { %v2482_v11 = vpack.c.bf16 %v2451_v63, %v2450_v10  ;;  %v2483_v50 = vpack.c.bf16 %v2453_v57, %v2452_v0  ;;  %v2484_v53 = vpack.c.bf16 %v2455_v5, %v2454_v41  ;;  %v2485_v60 = vpack.c.bf16 %v2457_v39, %v2456_v54 }
 0x4a2   : > { %v2486_v30 = vpack.c.bf16 %v2459_v27, %v2458_v16  ;;  %v2487_v9 = vpack.c.bf16 %v2461_v43, %v2460_v33  ;;  %v2488_v44 = vpack.c.bf16 %v2463_v31, %v2462_v13  ;;  %v2489_v35 = vpack.c.bf16 %v2465_v46, %v2464_v29 }
 0x4a3   : > { %v2490_v61 = vpack.c.bf16 %v2467_v47, %v2466_v52  ;;  %v2491_v4 = vpack.c.bf16 %v2469_v17, %v2468_v8  ;;  %v2492_v3 = vpack.c.bf16 %v2471_v21, %v2470_v37  ;;  %v2493_v48 = vpack.c.bf16 %v2473_v40, %v2472_v42  ;;  %5826 = vmatprep.mubr.msk.bf16.mxu1 %vm1483_vm0, %v2482_v11 }
 0x4a4   : > { %v2494_v1 = vpack.c.bf16 %v2475_v24, %v2474_v23  ;;  %v2495_v62 = vpack.c.bf16 %v2477_v2, %v2476_v7  ;;  %v2496_v20 = vpack.c.bf16 %v2479_v15, %v2478_v34  ;;  %v2497_v58 = vpack.c.bf16 %v2481_v59, %v2480_v56  ;;  %5827 = vmatmul.mubr.msk.bf16.vlgmr.msra.gmra.mrb[36].mxu1 %vm1483_vm0, %v2483_v50 }
 0x4a5   : > { %5830 = vmatprep.mubr.msk.bf16.mxu1 %vm1483_vm0, %v2484_v53  ;;  %5895 = vmatpush3.bf16.msra.mxu1 %v6077_v6 }
 0x4ac   : > { %5831 = vmatmul.mubr.msk.bf16.gmra.mrb[40].mxu1 %vm1483_vm0, %v2485_v60 }
 0x4ad   : > { %5834 = vmatprep.mubr.msk.bf16.mxu1 %vm1483_vm0, %v2486_v30 }
 0x4b4   : > { %5835 = vmatmul.mubr.msk.bf16.gmra.mrb[44].mxu1 %vm1483_vm0, %v2487_v9 }
 0x4b5   : > { %5838 = vmatprep.mubr.msk.bf16.mxu1 %vm1483_vm0, %v2488_v44 }
 0x4bc   : > { %5839 = vmatmul.mubr.msk.bf16.gmra.mrb[48].mxu1 %vm1483_vm0, %v2489_v35 }
 0x4bd   : > { %5842 = vmatprep.mubr.msk.bf16.mxu1 %vm1483_vm0, %v2490_v61 }
 0x4c4   : > { %5843 = vmatmul.mubr.msk.bf16.gmra.mrb[52].mxu1 %vm1483_vm0, %v2491_v4 }
 0x4c5   : > { %5846 = vmatprep.mubr.msk.bf16.mxu1 %vm1483_vm0, %v2492_v3 }
 0x4cc   : > { %5847 = vmatmul.mubr.msk.bf16.gmra.mrb[56].mxu1 %vm1483_vm0, %v2493_v48 }
 0x4cd   : > { %5850 = vmatprep.mubr.msk.bf16.mxu1 %vm1483_vm0, %v2494_v1 }
 0x4d4   : > { %5851 = vmatmul.mubr.msk.bf16.gmra.mrb[60].mxu1 %vm1483_vm0, %v2495_v62 }
 0x4d5   : > { %5854 = vmatprep.mubr.msk.bf16.mxu1 %vm1483_vm0, %v2496_v20 }
 0x4dc   : > { %5855 = vmatmul.mubr.msk.bf16.gmra.mrb[64].mxu1 %vm1483_vm0, %v2497_v58 }
 0x577   : > { %v5828_v22 = vpop.f32.mrb[36].mxu1 }
 0x578   : > { %v2628_v14 = vadd.f32 %v5828_v22, %v7380_v26  ;;  %v2619_v19 = vpop.f32.mrb[37].mxu1 }
 0x579   : > { %v2620_v10 = vadd.f32 %v7380_v26, %v2619_v19  ;;  %v5829_v63 = vpop.f32.mrb[38].mxu1 }
 0x57a   : > { %v2631_v0 = vadd.f32 %v5829_v63, %v7380_v26  ;;  %v2622_v57 = vpop.f32.mrb[39].mxu1  ;;  %v2748_v5 = vmax.f32 %v2628_v14, 0.0 }
 0x57b   : > { %v2623_v41 = vadd.f32 %v7380_v26, %v2622_v57  ;;  %v2746_v39 = vmax.f32 %v2620_v10, 0.0 }
 0x57c   : > { %v2749_v54 = vmax.f32 %v2631_v0, 0.0 }
 0x57d   : > { %v2747_v16 = vmax.f32 %v2623_v41, 0.0 }
 0x57e   : > { %v2779_v27 = vpack.c.bf16 %v2749_v54, %v2748_v5 }
 0x57f   : > { %v2778_v33 = vpack.c.bf16 %v2747_v16, %v2746_v39  ;;  %v5832_v43 = vpop.f32.mrb[40].mxu1 }
 0x580   : > { %v2644_v13 = vadd.f32 %v5832_v43, %v7380_v26  ;;  %v2635_v31 = vpop.f32.mrb[41].mxu1 }
 0x581   : > { %v2636_v29 = vadd.f32 %v7380_v26, %v2635_v31  ;;  %v5833_v46 = vpop.f32.mrb[42].mxu1  ;;  %5862 = vmatprep.mubr.msk.bf16.mxu0 %vm2817_vm2, %v2778_v33 }
 0x582   : > { %v2647_v52 = vadd.f32 %v5833_v46, %v7380_v26  ;;  %v2638_v47 = vpop.f32.mrb[43].mxu1  ;;  %5863 = vmatmul.mubr.msk.bf16.vlgmr.msra.gmra.mrb[64].mxu0 %vm2817_vm2, %v2779_v27  ;;  %v2752_v17 = vmax.f32 %v2644_v13, 0.0 }
 0x583   : > { %v2639_v8 = vadd.f32 %v7380_v26, %v2638_v47  ;;  %v2750_v21 = vmax.f32 %v2636_v29, 0.0 }
 0x584   : > { %v2753_v37 = vmax.f32 %v2647_v52, 0.0 }
 0x585   : > { %v2751_v42 = vmax.f32 %v2639_v8, 0.0 }
 0x586   : > { %v2781_v40 = vpack.c.bf16 %v2753_v37, %v2752_v17 }
 0x587   : > { %v2780_v23 = vpack.c.bf16 %v2751_v42, %v2750_v21  ;;  %v5836_v24 = vpop.f32.mrb[44].mxu1 }
 0x588   : > { %v2660_v7 = vadd.f32 %v5836_v24, %v7380_v26  ;;  %v2651_v2 = vpop.f32.mrb[45].mxu1 }
 0x589   : > { %v2652_v34 = vadd.f32 %v7380_v26, %v2651_v2  ;;  %v5837_v15 = vpop.f32.mrb[46].mxu1  ;;  %5866 = vmatprep.mubr.msk.bf16.mxu0 %vm2817_vm2, %v2780_v23 }
 0x58a   : > { %v2663_v56 = vadd.f32 %v5837_v15, %v7380_v26  ;;  %v2654_v59 = vpop.f32.mrb[47].mxu1  ;;  %5867 = vmatmul.mubr.msk.bf16.gmra.mrb[68].mxu0 %vm2817_vm2, %v2781_v40  ;;  %v2756_v50 = vmax.f32 %v2660_v7, 0.0 }
 0x58b   : > { %v2655_v11 = vadd.f32 %v7380_v26, %v2654_v59  ;;  %v2754_v60 = vmax.f32 %v2652_v34, 0.0 }
 0x58c   : > { %v2757_v53 = vmax.f32 %v2663_v56, 0.0 }
 0x58d   : > { %v2755_v30 = vmax.f32 %v2655_v11, 0.0 }
 0x58e   : > { %v2783_v9 = vpack.c.bf16 %v2757_v53, %v2756_v50 }
 0x58f   : > { %v2782_v44 = vpack.c.bf16 %v2755_v30, %v2754_v60  ;;  %v5840_v35 = vpop.f32.mrb[48].mxu1 }
 0x590   : > { %v2676_v61 = vadd.f32 %v5840_v35, %v7380_v26  ;;  %v2667_v4 = vpop.f32.mrb[49].mxu1 }
 0x591   : > { %v2668_v3 = vadd.f32 %v7380_v26, %v2667_v4  ;;  %v5841_v48 = vpop.f32.mrb[50].mxu1  ;;  %5870 = vmatprep.mubr.msk.bf16.mxu0 %vm2817_vm2, %v2782_v44 }
 0x592   : > { %v2679_v1 = vadd.f32 %v5841_v48, %v7380_v26  ;;  %v2670_v62 = vpop.f32.mrb[51].mxu1  ;;  %5871 = vmatmul.mubr.msk.bf16.gmra.mrb[72].mxu0 %vm2817_vm2, %v2783_v9  ;;  %v2760_v58 = vmax.f32 %v2676_v61, 0.0 }
 0x593   : > { %v2671_v20 = vadd.f32 %v7380_v26, %v2670_v62  ;;  %v2758_v22 = vmax.f32 %v2668_v3, 0.0 }
 0x594   : > { %v2761_v6 = vmax.f32 %v2679_v1, 0.0 }
 0x595   : > { %v2759_v14 = vmax.f32 %v2671_v20, 0.0 }
 0x596   : > { %v2785_v19 = vpack.c.bf16 %v2761_v6, %v2760_v58 }
 0x597   : > { %v2784_v10 = vpack.c.bf16 %v2759_v14, %v2758_v22  ;;  %v5844_v63 = vpop.f32.mrb[52].mxu1 }
 0x598   : > { %v2692_v0 = vadd.f32 %v5844_v63, %v7380_v26  ;;  %v2683_v57 = vpop.f32.mrb[53].mxu1 }
 0x599   : > { %v2684_v41 = vadd.f32 %v7380_v26, %v2683_v57  ;;  %v5845_v5 = vpop.f32.mrb[54].mxu1  ;;  %5874 = vmatprep.mubr.msk.bf16.mxu0 %vm2817_vm2, %v2784_v10 }
 0x59a   : > { %v2695_v54 = vadd.f32 %v5845_v5, %v7380_v26  ;;  %v2686_v39 = vpop.f32.mrb[55].mxu1  ;;  %5875 = vmatmul.mubr.msk.bf16.gmra.mrb[76].mxu0 %vm2817_vm2, %v2785_v19  ;;  %v2764_v27 = vmax.f32 %v2692_v0, 0.0  ;;  %v7435_v5 = vld [vmem:[%s8500_s13] ss:$0 sm:$0xff] }
 0x59b   : > { %v2687_v16 = vadd.f32 %v7380_v26, %v2686_v39  ;;  %v2762_v43 = vmax.f32 %v2684_v41, 0.0 }
 0x59c   : > { %v2765_v33 = vmax.f32 %v2695_v54, 0.0 }
 0x59d   : > { %v2763_v13 = vmax.f32 %v2687_v16, 0.0 }
 0x59e   : > { %v2787_v31 = vpack.c.bf16 %v2765_v33, %v2764_v27 }
 0x59f   : > { %v2786_v29 = vpack.c.bf16 %v2763_v13, %v2762_v43  ;;  %v5848_v46 = vpop.f32.mrb[56].mxu1 }
 0x5a0   : > { %v2708_v52 = vadd.f32 %v5848_v46, %v7380_v26  ;;  %v2699_v47 = vpop.f32.mrb[57].mxu1 }
 0x5a1   : > { %v2700_v8 = vadd.f32 %v7380_v26, %v2699_v47  ;;  %v5849_v17 = vpop.f32.mrb[58].mxu1  ;;  %5878 = vmatprep.mubr.msk.bf16.mxu0 %vm2817_vm2, %v2786_v29 }
 0x5a2   : > { %v2711_v37 = vadd.f32 %v5849_v17, %v7380_v26  ;;  %v2702_v21 = vpop.f32.mrb[59].mxu1  ;;  %5879 = vmatmul.mubr.msk.bf16.gmra.mrb[80].mxu0 %vm2817_vm2, %v2787_v31  ;;  %v2768_v40 = vmax.f32 %v2708_v52, 0.0 }
 0x5a3   : > { %v2703_v42 = vadd.f32 %v7380_v26, %v2702_v21  ;;  %v2766_v24 = vmax.f32 %v2700_v8, 0.0 }
 0x5a4   : > { %v2769_v23 = vmax.f32 %v2711_v37, 0.0 }
 0x5a5   : > { %v2767_v7 = vmax.f32 %v2703_v42, 0.0 }
 0x5a6   : > { %v2789_v2 = vpack.c.bf16 %v2769_v23, %v2768_v40 }
 0x5a7   : > { %v2788_v34 = vpack.c.bf16 %v2767_v7, %v2766_v24  ;;  %v5852_v15 = vpop.f32.mrb[60].mxu1 }
 0x5a8   : > { %v2724_v56 = vadd.f32 %v5852_v15, %v7380_v26  ;;  %v2715_v59 = vpop.f32.mrb[61].mxu1 }
 0x5a9   : > { %v2716_v11 = vadd.f32 %v7380_v26, %v2715_v59  ;;  %v5853_v50 = vpop.f32.mrb[62].mxu1  ;;  %5882 = vmatprep.mubr.msk.bf16.mxu0 %vm2817_vm2, %v2788_v34 }
 0x5aa   : > { %v2727_v53 = vadd.f32 %v5853_v50, %v7380_v26  ;;  %v2718_v60 = vpop.f32.mrb[63].mxu1  ;;  %5883 = vmatmul.mubr.msk.bf16.gmra.mrb[84].mxu0 %vm2817_vm2, %v2789_v2  ;;  %v2772_v9 = vmax.f32 %v2724_v56, 0.0 }
 0x5ab   : > { %v2719_v30 = vadd.f32 %v7380_v26, %v2718_v60  ;;  %v2770_v35 = vmax.f32 %v2716_v11, 0.0 }
 0x5ac   : > { %v2773_v44 = vmax.f32 %v2727_v53, 0.0 }
 0x5ad   : > { %v2771_v61 = vmax.f32 %v2719_v30, 0.0 }
 0x5ae   : > { %v2791_v4 = vpack.c.bf16 %v2773_v44, %v2772_v9 }
 0x5af   : > { %v2790_v3 = vpack.c.bf16 %v2771_v61, %v2770_v35  ;;  %v5856_v48 = vpop.f32.mrb[64].mxu1 }
 0x5b0   : > { %v2740_v1 = vadd.f32 %v5856_v48, %v7380_v26  ;;  %v2731_v62 = vpop.f32.mrb[65].mxu1 }
 0x5b1   : > { %v2732_v20 = vadd.f32 %v7380_v26, %v2731_v62  ;;  %v5857_v58 = vpop.f32.mrb[66].mxu1  ;;  %5886 = vmatprep.mubr.msk.bf16.mxu0 %vm2817_vm2, %v2790_v3 }
 0x5b2   : > { %v2743_v6 = vadd.f32 %v5857_v58, %v7380_v26  ;;  %v2734_v22 = vpop.f32.mrb[67].mxu1  ;;  %5887 = vmatmul.mubr.msk.bf16.gmra.mrb[88].mxu0 %vm2817_vm2, %v2791_v4  ;;  %v2776_v19 = vmax.f32 %v2740_v1, 0.0 }
 0x5b3   : > { %v2735_v14 = vadd.f32 %v7380_v26, %v2734_v22  ;;  %v2774_v63 = vmax.f32 %v2732_v20, 0.0 }
 0x5b4   : > { %v2777_v10 = vmax.f32 %v2743_v6, 0.0 }
 0x5b5   : > { %v2775_v0 = vmax.f32 %v2735_v14, 0.0 }
 0x5b6   : > { %v2793_v57 = vpack.c.bf16 %v2777_v10, %v2776_v19 }
 0x5b7   : > { %v2792_v41 = vpack.c.bf16 %v2775_v0, %v2774_v63 }
 0x5b9   : > { %5890 = vmatprep.mubr.msk.bf16.mxu0 %vm2817_vm2, %v2792_v41 }
 0x5ba   : > { %5891 = vmatmul.mubr.msk.bf16.gmra.mrb[92].mxu0 %vm2817_vm2, %v2793_v57 }
 0x5bb   : > { %5936 = vmatprep.mubr.msk.bf16.mxu0 %vm6397_vm1, %v8646_v12 }
 0x655   : > { %v5864_v54 = vpop.f32.mrb[64].mxu0 }
 0x656   : > { %v2909_v26 = vadd.f32 %v5864_v54, %v7435_v5  ;;  %v2900_v39 = vpop.f32.mrb[65].mxu0 }
 0x657   : > { %v2901_v16 = vadd.f32 %v7435_v5, %v2900_v39  ;;  %v5865_v27 = vpop.f32.mrb[66].mxu0 }
 0x658   : > { %v2912_v33 = vadd.f32 %v5865_v27, %v7435_v5  ;;  %v2903_v43 = vpop.f32.mrb[67].mxu0  ;;  %v3029_v31 = vmax.f32 %v2909_v26, 0.0 }
 0x659   : > { %v2904_v13 = vadd.f32 %v7435_v5, %v2903_v43  ;;  %v3027_v46 = vmax.f32 %v2901_v16, 0.0 }
 0x65a   : > { %v3030_v29 = vmax.f32 %v2912_v33, 0.0 }
 0x65b   : > { %v3028_v52 = vmax.f32 %v2904_v13, 0.0 }
 0x65c   : > { %v3060_v47 = vpack.c.bf16 %v3030_v29, %v3029_v31 }
 0x65d   : > { %v3059_v8 = vpack.c.bf16 %v3028_v52, %v3027_v46  ;;  %v5868_v17 = vpop.f32.mrb[68].mxu0 }
 0x65e   : > { %v2925_v37 = vadd.f32 %v5868_v17, %v7435_v5  ;;  %v2916_v21 = vpop.f32.mrb[69].mxu0 }
 0x65f   : > { %v2917_v42 = vadd.f32 %v7435_v5, %v2916_v21  ;;  %v5869_v40 = vpop.f32.mrb[70].mxu0  ;;  %5896 = vmatprep.mubr.msk.bf16.mxu1 %vm3090_vm3, %v3059_v8 }
 0x660   : > { %v2928_v23 = vadd.f32 %v5869_v40, %v7435_v5  ;;  %v2919_v24 = vpop.f32.mrb[71].mxu0  ;;  %5897 = vmatmul.mubr.msk.bf16.vlgmr.msra.gmra.mrb[68].mxu1 %vm3090_vm3, %v3060_v47  ;;  %v3033_v2 = vmax.f32 %v2925_v37, 0.0 }
 0x661   : > { %v2920_v7 = vadd.f32 %v7435_v5, %v2919_v24  ;;  %v3031_v15 = vmax.f32 %v2917_v42, 0.0 }
 0x662   : > { %v3034_v34 = vmax.f32 %v2928_v23, 0.0 }
 0x663   : > { %v3032_v56 = vmax.f32 %v2920_v7, 0.0 }
 0x664   : > { %v3062_v59 = vpack.c.bf16 %v3034_v34, %v3033_v2 }
 0x665   : > { %v3061_v11 = vpack.c.bf16 %v3032_v56, %v3031_v15  ;;  %v5872_v50 = vpop.f32.mrb[72].mxu0 }
 0x666   : > { %v2941_v53 = vadd.f32 %v5872_v50, %v7435_v5  ;;  %v2932_v60 = vpop.f32.mrb[73].mxu0 }
 0x667   : > { %v2933_v30 = vadd.f32 %v7435_v5, %v2932_v60  ;;  %v5873_v9 = vpop.f32.mrb[74].mxu0  ;;  %5900 = vmatprep.mubr.msk.bf16.mxu1 %vm3090_vm3, %v3061_v11 }
 0x668   : > { %v2944_v44 = vadd.f32 %v5873_v9, %v7435_v5  ;;  %v2935_v35 = vpop.f32.mrb[75].mxu0  ;;  %5901 = vmatmul.mubr.msk.bf16.gmra.mrb[72].mxu1 %vm3090_vm3, %v3062_v59  ;;  %v3037_v4 = vmax.f32 %v2941_v53, 0.0 }
 0x669   : > { %v2936_v61 = vadd.f32 %v7435_v5, %v2935_v35  ;;  %v3035_v48 = vmax.f32 %v2933_v30, 0.0 }
 0x66a   : > { %v3038_v3 = vmax.f32 %v2944_v44, 0.0 }
 0x66b   : > { %v3036_v1 = vmax.f32 %v2936_v61, 0.0 }
 0x66c   : > { %v3064_v62 = vpack.c.bf16 %v3038_v3, %v3037_v4 }
 0x66d   : > { %v3063_v20 = vpack.c.bf16 %v3036_v1, %v3035_v48  ;;  %v5876_v58 = vpop.f32.mrb[76].mxu0 }
 0x66e   : > { %v2957_v6 = vadd.f32 %v5876_v58, %v7435_v5  ;;  %v2948_v22 = vpop.f32.mrb[77].mxu0 }
 0x66f   : > { %v2949_v14 = vadd.f32 %v7435_v5, %v2948_v22  ;;  %v5877_v19 = vpop.f32.mrb[78].mxu0  ;;  %5904 = vmatprep.mubr.msk.bf16.mxu1 %vm3090_vm3, %v3063_v20 }
 0x670   : > { %v2960_v10 = vadd.f32 %v5877_v19, %v7435_v5  ;;  %v2951_v63 = vpop.f32.mrb[79].mxu0  ;;  %5905 = vmatmul.mubr.msk.bf16.gmra.mrb[76].mxu1 %vm3090_vm3, %v3064_v62  ;;  %v3041_v57 = vmax.f32 %v2957_v6, 0.0 }
 0x671   : > { %v2952_v0 = vadd.f32 %v7435_v5, %v2951_v63  ;;  %v3039_v54 = vmax.f32 %v2949_v14, 0.0 }
 0x672   : > { %v3042_v41 = vmax.f32 %v2960_v10, 0.0 }
 0x673   : > { %v3040_v26 = vmax.f32 %v2952_v0, 0.0 }
 0x674   : > { %v3066_v39 = vpack.c.bf16 %v3042_v41, %v3041_v57 }
 0x675   : > { %v3065_v16 = vpack.c.bf16 %v3040_v26, %v3039_v54  ;;  %v5880_v27 = vpop.f32.mrb[80].mxu0 }
 0x676   : > { %v2973_v33 = vadd.f32 %v5880_v27, %v7435_v5  ;;  %v2964_v43 = vpop.f32.mrb[81].mxu0 }
 0x677   : > { %v2965_v13 = vadd.f32 %v7435_v5, %v2964_v43  ;;  %v5881_v31 = vpop.f32.mrb[82].mxu0  ;;  %5908 = vmatprep.mubr.msk.bf16.mxu1 %vm3090_vm3, %v3065_v16 }
 0x678   : > { %v2976_v29 = vadd.f32 %v5881_v31, %v7435_v5  ;;  %v2967_v46 = vpop.f32.mrb[83].mxu0  ;;  %5909 = vmatmul.mubr.msk.bf16.gmra.mrb[80].mxu1 %vm3090_vm3, %v3066_v39  ;;  %v3045_v47 = vmax.f32 %v2973_v33, 0.0  ;;  %v7492_v31 = vld [vmem:[%s8502_s15] ss:$0 sm:$0xff] }
 0x679   : > { %v2968_v52 = vadd.f32 %v7435_v5, %v2967_v46  ;;  %v3043_v17 = vmax.f32 %v2965_v13, 0.0 }
 0x67a   : > { %v3046_v8 = vmax.f32 %v2976_v29, 0.0 }
 0x67b   : > { %v3044_v37 = vmax.f32 %v2968_v52, 0.0 }
 0x67c   : > { %v3068_v21 = vpack.c.bf16 %v3046_v8, %v3045_v47 }
 0x67d   : > { %v3067_v42 = vpack.c.bf16 %v3044_v37, %v3043_v17  ;;  %v5884_v40 = vpop.f32.mrb[84].mxu0 }
 0x67e   : > { %v2989_v23 = vadd.f32 %v5884_v40, %v7435_v5  ;;  %v2980_v24 = vpop.f32.mrb[85].mxu0 }
 0x67f   : > { %v2981_v7 = vadd.f32 %v7435_v5, %v2980_v24  ;;  %v5885_v2 = vpop.f32.mrb[86].mxu0  ;;  %5912 = vmatprep.mubr.msk.bf16.mxu1 %vm3090_vm3, %v3067_v42 }
 0x680   : > { %v2992_v34 = vadd.f32 %v5885_v2, %v7435_v5  ;;  %v2983_v15 = vpop.f32.mrb[87].mxu0  ;;  %5913 = vmatmul.mubr.msk.bf16.gmra.mrb[84].mxu1 %vm3090_vm3, %v3068_v21  ;;  %v3049_v59 = vmax.f32 %v2989_v23, 0.0 }
 0x681   : > { %v2984_v56 = vadd.f32 %v7435_v5, %v2983_v15  ;;  %v3047_v50 = vmax.f32 %v2981_v7, 0.0 }
 0x682   : > { %v3050_v11 = vmax.f32 %v2992_v34, 0.0 }
 0x683   : > { %v3048_v53 = vmax.f32 %v2984_v56, 0.0 }
 0x684   : > { %v3070_v60 = vpack.c.bf16 %v3050_v11, %v3049_v59 }
 0x685   : > { %v3069_v30 = vpack.c.bf16 %v3048_v53, %v3047_v50  ;;  %v5888_v9 = vpop.f32.mrb[88].mxu0 }
 0x686   : > { %v3005_v44 = vadd.f32 %v5888_v9, %v7435_v5  ;;  %v2996_v35 = vpop.f32.mrb[89].mxu0 }
 0x687   : > { %v2997_v61 = vadd.f32 %v7435_v5, %v2996_v35  ;;  %v5889_v4 = vpop.f32.mrb[90].mxu0  ;;  %5916 = vmatprep.mubr.msk.bf16.mxu1 %vm3090_vm3, %v3069_v30 }
 0x688   : > { %v3008_v3 = vadd.f32 %v5889_v4, %v7435_v5  ;;  %v2999_v48 = vpop.f32.mrb[91].mxu0  ;;  %5917 = vmatmul.mubr.msk.bf16.gmra.mrb[88].mxu1 %vm3090_vm3, %v3070_v60  ;;  %v3053_v62 = vmax.f32 %v3005_v44, 0.0 }
 0x689   : > { %v3000_v1 = vadd.f32 %v7435_v5, %v2999_v48  ;;  %v3051_v58 = vmax.f32 %v2997_v61, 0.0 }
 0x68a   : > { %v3054_v20 = vmax.f32 %v3008_v3, 0.0 }
 0x68b   : > { %v3052_v6 = vmax.f32 %v3000_v1, 0.0 }
 0x68c   : > { %v3072_v22 = vpack.c.bf16 %v3054_v20, %v3053_v62 }
 0x68d   : > { %v3071_v14 = vpack.c.bf16 %v3052_v6, %v3051_v58  ;;  %v5892_v19 = vpop.f32.mrb[92].mxu0 }
 0x68e   : > { %v3021_v10 = vadd.f32 %v5892_v19, %v7435_v5  ;;  %v3012_v63 = vpop.f32.mrb[93].mxu0 }
 0x68f   : > { %v3013_v0 = vadd.f32 %v7435_v5, %v3012_v63  ;;  %v5893_v57 = vpop.f32.mrb[94].mxu0  ;;  %5920 = vmatprep.mubr.msk.bf16.mxu1 %vm3090_vm3, %v3071_v14 }
 0x690   : > { %v3024_v41 = vadd.f32 %v5893_v57, %v7435_v5  ;;  %v3015_v54 = vpop.f32.mrb[95].mxu0  ;;  %5921 = vmatmul.mubr.msk.bf16.gmra.mrb[92].mxu1 %vm3090_vm3, %v3072_v22  ;;  %v3057_v39 = vmax.f32 %v3021_v10, 0.0 }
 0x691   : > { %v3016_v26 = vadd.f32 %v7435_v5, %v3015_v54  ;;  %v3055_v27 = vmax.f32 %v3013_v0, 0.0 }
 0x692   : > { %v3058_v16 = vmax.f32 %v3024_v41, 0.0 }
 0x693   : > { %v3056_v33 = vmax.f32 %v3016_v26, 0.0 }
 0x694   : > { %v3074_v43 = vpack.c.bf16 %v3058_v16, %v3057_v39 }
 0x695   : > { %v3073_v13 = vpack.c.bf16 %v3056_v33, %v3055_v27 }
 0x697   : > { %5924 = vmatprep.mubr.msk.bf16.mxu1 %vm3090_vm3, %v3073_v13 }
 0x698   : > { %5925 = vmatmul.mubr.msk.bf16.gmra.mrb[96].mxu1 %vm3090_vm3, %v3074_v43 }
 0x733   : > { %v5898_v5 = vpop.f32.mrb[68].mxu1 }
 0x734   : > { %v7495_v29 = vadd.f32 %v5898_v5, %v7492_v31  ;;  %v3173_v46 = vpop.f32.mrb[69].mxu1 }
 0x735   : > { %v7498_v52 = vadd.f32 %v7492_v31, %v3173_v46  ;;  %v5899_v47 = vpop.f32.mrb[70].mxu1 }
 0x736   : > { %3302 = vst [vmem:[%s7500_s24 + $0x10] sm:$0xff] %v7495_v29  ;;  %v7505_v8 = vadd.f32 %v5899_v47, %v7492_v31  ;;  %3336 = vmax.xlane.f32.xlu0 %v7495_v29  ;;  %v3176_v17 = vpop.f32.mrb[71].mxu1 }
 0x737   : > { %3300 = vst [vmem:[%s7500_s24] sm:$0xff] %v7498_v52  ;;  %v7511_v37 = vadd.f32 %v7492_v31, %v3176_v17  ;;  %3332 = vmax.xlane.f32.xlu1 %v7498_v52 }
 0x738   : > { %3303 = vst [vmem:[%s7500_s24 + $0x18] sm:$0xff] %v7505_v8 }
 0x739   : > { %3301 = vst [vmem:[%s7500_s24 + $0x8] sm:$0xff] %v7511_v37 }
 0x73a   : > { %3334 = vmax.xlane.f32.xlu0 %v7511_v37 }
 0x73b   : > { %v5902_v21 = vpop.f32.mrb[72].mxu1  ;;  %3338 = vmax.xlane.f32.xlu1 %v7505_v8 }
 0x73c   : > { %v7521_v42 = vadd.f32 %v5902_v21, %v7492_v31  ;;  %v3189_v40 = vpop.f32.mrb[73].mxu1 }
 0x73d   : > { %v7524_v23 = vadd.f32 %v7492_v31, %v3189_v40  ;;  %v5903_v24 = vpop.f32.mrb[74].mxu1 }
 0x73e   : > { %3306 = vst [vmem:[%s7500_s24 + $0x30] sm:$0xff] %v7521_v42  ;;  %v7529_v7 = vadd.f32 %v5903_v24, %v7492_v31  ;;  %v3192_v2 = vpop.f32.mrb[75].mxu1  ;;  %3344 = vmax.xlane.f32.xlu0 %v7521_v42 }
 0x73f   : > { %3304 = vst [vmem:[%s7500_s24 + $0x20] sm:$0xff] %v7524_v23  ;;  %v7535_v34 = vadd.f32 %v7492_v31, %v3192_v2 }
 0x740   : > { %3307 = vst [vmem:[%s7500_s24 + $0x38] sm:$0xff] %v7529_v7  ;;  %3346 = vmax.xlane.f32.xlu1 %v7529_v7 }
 0x741   : > { %3305 = vst [vmem:[%s7500_s24 + $0x28] sm:$0xff] %v7535_v34 }
 0x742   : > { %3340 = vmax.xlane.f32.xlu0 %v7524_v23 }
 0x743   : > { %v5906_v15 = vpop.f32.mrb[76].mxu1 }
 0x744   : > { %v7544_v56 = vadd.f32 %v5906_v15, %v7492_v31  ;;  %v3205_v59 = vpop.f32.mrb[77].mxu1  ;;  %3342 = vmax.xlane.f32.xlu1 %v7535_v34 }
 0x745   : > { %v7548_v11 = vadd.f32 %v7492_v31, %v3205_v59  ;;  %v5907_v50 = vpop.f32.mrb[78].mxu1 }
 0x746   : > { %3310 = vst [vmem:[%s7500_s24 + $0x50] sm:$0xff] %v7544_v56  ;;  %v7553_v53 = vadd.f32 %v5907_v50, %v7492_v31  ;;  %v3208_v60 = vpop.f32.mrb[79].mxu1  ;;  %3352 = vmax.xlane.f32.xlu0 %v7544_v56 }
 0x747   : > { %3308 = vst [vmem:[%s7500_s24 + $0x40] sm:$0xff] %v7548_v11  ;;  %v7559_v30 = vadd.f32 %v7492_v31, %v3208_v60 }
 0x748   : > { %3311 = vst [vmem:[%s7500_s24 + $0x58] sm:$0xff] %v7553_v53  ;;  %3354 = vmax.xlane.f32.xlu1 %v7553_v53 }
 0x749   : > { %3309 = vst [vmem:[%s7500_s24 + $0x48] sm:$0xff] %v7559_v30 }
 0x74a   : > { %3348 = vmax.xlane.f32.xlu0 %v7548_v11 }
 0x74b   : > { %v5910_v9 = vpop.f32.mrb[80].mxu1 }
 0x74c   : > { %v7568_v44 = vadd.f32 %v5910_v9, %v7492_v31  ;;  %v3221_v35 = vpop.f32.mrb[81].mxu1  ;;  %3350 = vmax.xlane.f32.xlu1 %v7559_v30  ;;  %v8649_v9 = vlaneseq }
 0x74d   : > { %v7572_v61 = vadd.f32 %v7492_v31, %v3221_v35  ;;  %v5911_v4 = vpop.f32.mrb[82].mxu1 }
 0x74e   : > { %3314 = vst [vmem:[%s7500_s24 + $0x70] sm:$0xff] %v7568_v44  ;;  %v7577_v3 = vadd.f32 %v5911_v4, %v7492_v31  ;;  %v3224_v48 = vpop.f32.mrb[83].mxu1  ;;  %3360 = vmax.xlane.f32.xlu0 %v7568_v44  ;;  %v7689_v35 = vand.u32 127, %v8649_v9 }
 0x74f   : > { %3312 = vst [vmem:[%s7500_s24 + $0x60] sm:$0xff] %v7572_v61  ;;  %v7583_v1 = vadd.f32 %v7492_v31, %v3224_v48 }
 0x750   : > { %3315 = vst [vmem:[%s7500_s24 + $0x78] sm:$0xff] %v7577_v3  ;;  %3362 = vmax.xlane.f32.xlu1 %v7577_v3 }
 0x751   : > { %3313 = vst [vmem:[%s7500_s24 + $0x68] sm:$0xff] %v7583_v1 }
 0x752   : > { %3356 = vmax.xlane.f32.xlu0 %v7572_v61 }
 0x753   : > { %v5914_v62 = vpop.f32.mrb[84].mxu1 }
 0x754   : > { %v7592_v20 = vadd.f32 %v5914_v62, %v7492_v31  ;;  %v3237_v58 = vpop.f32.mrb[85].mxu1  ;;  %3358 = vmax.xlane.f32.xlu1 %v7583_v1 }
 0x755   : > { %v7596_v6 = vadd.f32 %v7492_v31, %v3237_v58  ;;  %v5915_v22 = vpop.f32.mrb[86].mxu1 }
 0x756   : > { %3318 = vst [vmem:[%s7500_s24 + $0x90] sm:$0xff] %v7592_v20  ;;  %v7601_v14 = vadd.f32 %v5915_v22, %v7492_v31  ;;  %v3240_v19 = vpop.f32.mrb[87].mxu1  ;;  %3368 = vmax.xlane.f32.xlu0 %v7592_v20 }
 0x757   : > { %3316 = vst [vmem:[%s7500_s24 + $0x80] sm:$0xff] %v7596_v6  ;;  %v7607_v10 = vadd.f32 %v7492_v31, %v3240_v19 }
 0x758   : > { %3319 = vst [vmem:[%s7500_s24 + $0x98] sm:$0xff] %v7601_v14  ;;  %3370 = vmax.xlane.f32.xlu1 %v7601_v14 }
 0x759   : > { %3317 = vst [vmem:[%s7500_s24 + $0x88] sm:$0xff] %v7607_v10 }
 0x75a   : > { %3364 = vmax.xlane.f32.xlu0 %v7596_v6 }
 0x75b   : > { %v5918_v63 = vpop.f32.mrb[88].mxu1 }
 0x75c   : > { %v7616_v0 = vadd.f32 %v5918_v63, %v7492_v31  ;;  %v3253_v57 = vpop.f32.mrb[89].mxu1  ;;  %3366 = vmax.xlane.f32.xlu1 %v7607_v10 }
 0x75d   : > { %v7620_v41 = vadd.f32 %v7492_v31, %v3253_v57  ;;  %v5919_v54 = vpop.f32.mrb[90].mxu1 }
 0x75e   : > { %3322 = vst [vmem:[%s7500_s24 + $0xb0] sm:$0xff] %v7616_v0  ;;  %v7625_v26 = vadd.f32 %v5919_v54, %v7492_v31  ;;  %v3256_v39 = vpop.f32.mrb[91].mxu1  ;;  %3376 = vmax.xlane.f32.xlu0 %v7616_v0 }
 0x75f   : > { %3320 = vst [vmem:[%s7500_s24 + $0xa0] sm:$0xff] %v7620_v41  ;;  %v7631_v16 = vadd.f32 %v7492_v31, %v3256_v39 }
 0x760   : > { %3323 = vst [vmem:[%s7500_s24 + $0xb8] sm:$0xff] %v7625_v26  ;;  %3378 = vmax.xlane.f32.xlu1 %v7625_v26 }
 0x761   : > { %3321 = vst [vmem:[%s7500_s24 + $0xa8] sm:$0xff] %v7631_v16 }
 0x762   : > { %3372 = vmax.xlane.f32.xlu0 %v7620_v41 }
 0x763   : > { %v5922_v27 = vpop.f32.mrb[92].mxu1 }
 0x764   : > { %v7640_v33 = vadd.f32 %v5922_v27, %v7492_v31  ;;  %v3269_v43 = vpop.f32.mrb[93].mxu1  ;;  %3374 = vmax.xlane.f32.xlu1 %v7631_v16 }
 0x765   : > { %v7644_v13 = vadd.f32 %v7492_v31, %v3269_v43  ;;  %v5923_v5 = vpop.f32.mrb[94].mxu1 }
 0x766   : > { %3326 = vst [vmem:[%s7500_s24 + $0xd0] sm:$0xff] %v7640_v33  ;;  %v7649_v46 = vadd.f32 %v5923_v5, %v7492_v31  ;;  %v3272_v47 = vpop.f32.mrb[95].mxu1  ;;  %3384 = vmax.xlane.f32.xlu0 %v7640_v33 }
 0x767   : > { %3324 = vst [vmem:[%s7500_s24 + $0xc0] sm:$0xff] %v7644_v13  ;;  %v7655_v17 = vadd.f32 %v7492_v31, %v3272_v47 }
 0x768   : > { %3327 = vst [vmem:[%s7500_s24 + $0xd8] sm:$0xff] %v7649_v46  ;;  %3386 = vmax.xlane.f32.xlu1 %v7649_v46 }
 0x769   : > { %3325 = vst [vmem:[%s7500_s24 + $0xc8] sm:$0xff] %v7655_v17 }
 0x76a   : > { %3380 = vmax.xlane.f32.xlu0 %v7644_v13 }
 0x76b   : > { %v5926_v21 = vpop.f32.mrb[96].mxu1 }
 0x76c   : > { %v7664_v40 = vadd.f32 %v5926_v21, %v7492_v31  ;;  %v3285_v24 = vpop.f32.mrb[97].mxu1  ;;  %3382 = vmax.xlane.f32.xlu1 %v7655_v17 }
 0x76d   : > { %v7668_v2 = vadd.f32 %v7492_v31, %v3285_v24  ;;  %v5927_v15 = vpop.f32.mrb[98].mxu1 }
 0x76e   : > { %3330 = vst [vmem:[%s7500_s24 + $0xf0] sm:$0xff] %v7664_v40  ;;  %v7673_v59 = vadd.f32 %v5927_v15, %v7492_v31  ;;  %v3288_v50 = vpop.f32.mrb[99].mxu1 }
 0x76f   : > { %3328 = vst [vmem:[%s7500_s24 + $0xe0] sm:$0xff] %v7668_v2  ;;  %v7678_v60 = vadd.f32 %v7492_v31, %v3288_v50  ;;  %3388 = vmax.xlane.f32.xlu0 %v7668_v2 }
 0x770   : > { %3331 = vst [vmem:[%s7500_s24 + $0xf8] sm:$0xff] %v7673_v59 }
 0x771   : > { %3329 = vst [vmem:[%s7500_s24 + $0xe8] sm:$0xff] %v7678_v60  ;;  %3390 = vmax.xlane.f32.xlu1 %v7678_v60 }
 0x773   : > { %3392 = vmax.xlane.f32.xlu0 %v7664_v40 }
 0x775   : > { %3394 = vmax.xlane.f32.xlu1 %v7673_v59 }
 0x7c3   : > { %v3337_v4 = vpop.xlane.xlu0 %3336 }
 0x7c4   : > { %vm3400_vm4 = vcmp.eq.f32.partialorder %v7495_v29, %v3337_v4  ;;  %v3333_v31 = vpop.xlane.xlu1 %3332 }
 0x7c5   : > { %v7693_v48 = vsel %vm3400_vm4, %v7689_v35, 128  ;;  %vm3398_vm5 = vcmp.eq.f32.partialorder %v7498_v52, %v3333_v31 }
 0x7c6   : > { %v3491_v62 = vshra.s32 %v7693_v48, 16  ;;  %v7698_v58 = vsel %vm3398_vm5, %v7689_v35, 128 }
 0x7c7   : > { %v3335_v22 = vpop.xlane.xlu0 %3334  ;;  %v3463_v63 = vshra.s32 %v7698_v58, 16 }
 0x7c8   : > { %v7700_v19 = vcvt.s32.f32 %v3491_v62  ;;  %vm3399_vm6 = vcmp.eq.f32.partialorder %v7511_v37, %v3335_v22  ;;  %v3339_v57 = vpop.xlane.xlu1 %3338 }
 0x7c9   : > { %vm3401_vm7 = vcmp.eq.f32.partialorder %v7505_v8, %v3339_v57  ;;  %v7706_v29 = vsel %vm3399_vm6, %v7689_v35, 128  ;;  %v7713_v27 = vcvt.s32.f32 %v3463_v63 }
 0x7ca   : > { %v7709_v52 = vsel %vm3401_vm7, %v7689_v35, 128  ;;  %3494 = vmin.xlane.f32.xlu0 %v7700_v19  ;;  %v3477_v37 = vshra.s32 %v7706_v29, 16 }
 0x7cb   : > { %v3505_v54 = vshra.s32 %v7709_v52, 16  ;;  %v3345_v39 = vpop.xlane.xlu0 %3344 }
 0x7cc   : > { %vm3404_vm8 = vcmp.eq.f32.partialorder %v7521_v42, %v3345_v39  ;;  %v7731_v15 = vcvt.s32.f32 %v3477_v37 }
 0x7cd   : > { %v7717_v43 = vcvt.s32.f32 %v3505_v54  ;;  %v7720_v8 = vsel %vm3404_vm8, %v7689_v35, 128  ;;  %v3347_v5 = vpop.xlane.xlu1 %3346 }
 0x7ce   : > { %v3547_v47 = vshra.s32 %v7720_v8, 16  ;;  %vm3405_vm9 = vcmp.eq.f32.partialorder %v7529_v7, %v3347_v5  ;;  %3466 = vmin.xlane.f32.xlu0 %v7713_v27 }
 0x7cf   : > { %v7726_v21 = vsel %vm3405_vm9, %v7689_v35, 128  ;;  %v3341_v24 = vpop.xlane.xlu0 %3340  ;;  %3508 = vmin.xlane.f32.xlu1 %v7717_v43 }
 0x7d0   : > { %v7729_v42 = vcvt.s32.f32 %v3547_v47  ;;  %v3561_v50 = vshra.s32 %v7726_v21, 16  ;;  %vm3402_vm10 = vcmp.eq.f32.partialorder %v7524_v23, %v3341_v24 }
 0x7d1   : > { %v3343_v4 = vpop.xlane.xlu1 %3342  ;;  %v7736_v31 = vsel %vm3402_vm10, %v7689_v35, 128 }
 0x7d2   : > { %vm3403_vm11 = vcmp.eq.f32.partialorder %v7535_v34, %v3343_v4  ;;  %3550 = vmin.xlane.f32.xlu0 %v7729_v42  ;;  %v3519_v7 = vshra.s32 %v7736_v31, 16  ;;  %v7746_v63 = vcvt.s32.f32 %v3561_v50 }
 0x7d3   : > { %v7742_v62 = vsel %vm3403_vm11, %v7689_v35, 128  ;;  %v3353_v22 = vpop.xlane.xlu0 %3352  ;;  %3480 = vmin.xlane.f32.xlu1 %v7731_v15 }
 0x7d4   : > { %vm3408_vm12 = vcmp.eq.f32.partialorder %v7544_v56, %v3353_v22  ;;  %v7748_v23 = vcvt.s32.f32 %v3519_v7  ;;  %v3533_v57 = vshra.s32 %v7742_v62, 16 }
 0x7d5   : > { %v7752_v34 = vsel %vm3408_vm12, %v7689_v35, 128  ;;  %v3355_v54 = vpop.xlane.xlu1 %3354 }
 0x7d6   : > { %v3603_v39 = vshra.s32 %v7752_v34, 16  ;;  %vm3409_vm13 = vcmp.eq.f32.partialorder %v7553_v53, %v3355_v54  ;;  %3522 = vmin.xlane.f32.xlu0 %v7748_v23  ;;  %v7764_v47 = vcvt.s32.f32 %v3533_v57 }
 0x7d7   : > { %v3349_v37 = vpop.xlane.xlu0 %3348  ;;  %3564 = vmin.xlane.f32.xlu1 %v7746_v63  ;;  %v7761_v5 = vsel %vm3409_vm13, %v7689_v35, 128 }
 0x7d8   : > { %v7758_v56 = vcvt.s32.f32 %v3603_v39  ;;  %vm3406_vm14 = vcmp.eq.f32.partialorder %v7548_v11, %v3349_v37  ;;  %v3617_v24 = vshra.s32 %v7761_v5, 16 }
 0x7d9   : > { %v7768_v50 = vsel %vm3406_vm14, %v7689_v35, 128  ;;  %v3351_v53 = vpop.xlane.xlu1 %3350 }
 0x7da   : > { %v3575_v4 = vshra.s32 %v7768_v50, 16  ;;  %vm3407_vm15 = vcmp.eq.f32.partialorder %v7559_v30, %v3351_v53  ;;  %3606 = vmin.xlane.f32.xlu0 %v7758_v56  ;;  %v7779_v57 = vcvt.s32.f32 %v3617_v24 }
 0x7db   : > { %v7773_v7 = vsel %vm3407_vm15, %v7689_v35, 128  ;;  %v3361_v22 = vpop.xlane.xlu0 %3360  ;;  %3536 = vmin.xlane.f32.xlu1 %v7764_v47 }
 0x7dc   : > { %v7777_v11 = vcvt.s32.f32 %v3575_v4  ;;  %v3589_v54 = vshra.s32 %v7773_v7, 16  ;;  %vm3412_vm1 = vcmp.eq.f32.partialorder %v7568_v44, %v3361_v22 }
 0x7dd   : > { %v3363_v39 = vpop.xlane.xlu1 %3362  ;;  %v7784_v37 = vsel %vm3412_vm1, %v7689_v35, 128 }
 0x7de   : > { %vm3413_vm2 = vcmp.eq.f32.partialorder %v7577_v3, %v3363_v39  ;;  %v3659_v30 = vshra.s32 %v7784_v37, 16  ;;  %3578 = vmin.xlane.f32.xlu0 %v7777_v11  ;;  %v7794_v24 = vcvt.s32.f32 %v3589_v54 }
 0x7df   : > { %v7789_v53 = vsel %vm3413_vm2, %v7689_v35, 128  ;;  %v3357_v4 = vpop.xlane.xlu0 %3356  ;;  %3620 = vmin.xlane.f32.xlu1 %v7779_v57 }
 0x7e0   : > { %vm3410_vm3 = vcmp.eq.f32.partialorder %v7572_v61, %v3357_v4  ;;  %v7796_v44 = vcvt.s32.f32 %v3659_v30  ;;  %v3673_v22 = vshra.s32 %v7789_v53, 16 }
 0x7e1   : > { %v7800_v3 = vsel %vm3410_vm3, %v7689_v35, 128  ;;  %v3359_v39 = vpop.xlane.xlu1 %3358 }
 0x7e2   : > { %v3631_v9 = vshra.s32 %v7800_v3, 16  ;;  %vm3411_vm4 = vcmp.eq.f32.partialorder %v7583_v1, %v3359_v39  ;;  %3662 = vmin.xlane.f32.xlu0 %v7796_v44  ;;  %v7812_v30 = vcvt.s32.f32 %v3673_v22 }
 0x7e3   : > { %v3369_v45 = vpop.xlane.xlu0 %3368  ;;  %3592 = vmin.xlane.f32.xlu1 %v7794_v24  ;;  %v7809_v54 = vsel %vm3411_vm4, %v7689_v35, 128 }
 0x7e4   : > { %v7806_v61 = vcvt.s32.f32 %v3631_v9  ;;  %vm3416_vm5 = vcmp.eq.f32.partialorder %v7592_v20, %v3369_v45  ;;  %v3645_v4 = vshra.s32 %v7809_v54, 16 }
 0x7e5   : > { %v7816_v51 = vsel %vm3416_vm5, %v7689_v35, 128  ;;  %v3371_v1 = vpop.xlane.xlu1 %3370 }
 0x7e6   : > { %v3715_v39 = vshra.s32 %v7816_v51, 16  ;;  %vm3417_vm6 = vcmp.eq.f32.partialorder %v7601_v14, %v3371_v1  ;;  %3634 = vmin.xlane.f32.xlu0 %v7806_v61  ;;  %v7827_v20 = vcvt.s32.f32 %v3645_v4 }
 0x7e7   : > { %v7821_v9 = vsel %vm3417_vm6, %v7689_v35, 128  ;;  %v3365_v38 = vpop.xlane.xlu0 %3364  ;;  %3676 = vmin.xlane.f32.xlu1 %v7812_v30 }
 0x7e8   : > { %v7825_v45 = vcvt.s32.f32 %v3715_v39  ;;  %v3729_v22 = vshra.s32 %v7821_v9, 16  ;;  %vm3414_vm7 = vcmp.eq.f32.partialorder %v7596_v6, %v3365_v38 }
 0x7e9   : > { %v3367_v32 = vpop.xlane.xlu1 %3366  ;;  %v7832_v28 = vsel %vm3414_vm7, %v7689_v35, 128 }
 0x7ea   : > { %vm3415_vm8 = vcmp.eq.f32.partialorder %v7607_v10, %v3367_v32  ;;  %v3687_v14 = vshra.s32 %v7832_v28, 16  ;;  %3718 = vmin.xlane.f32.xlu0 %v7825_v45  ;;  %v7842_v4 = vcvt.s32.f32 %v3729_v22 }
 0x7eb   : > { %v7837_v1 = vsel %vm3415_vm8, %v7689_v35, 128  ;;  %v3377_v39 = vpop.xlane.xlu0 %3376  ;;  %3648 = vmin.xlane.f32.xlu1 %v7827_v20 }
 0x7ec   : > { %vm3420_vm9 = vcmp.eq.f32.partialorder %v7616_v0, %v3377_v39  ;;  %v7844_v38 = vcvt.s32.f32 %v3687_v14  ;;  %v3701_v6 = vshra.s32 %v7837_v1, 16 }
 0x7ed   : > { %v7848_v32 = vsel %vm3420_vm9, %v7689_v35, 128  ;;  %v3379_v10 = vpop.xlane.xlu1 %3378 }
 0x7ee   : > { %v3771_v55 = vshra.s32 %v7848_v32, 16  ;;  %vm3421_vm10 = vcmp.eq.f32.partialorder %v7625_v26, %v3379_v10  ;;  %3690 = vmin.xlane.f32.xlu0 %v7844_v38  ;;  %v7860_v14 = vcvt.s32.f32 %v3701_v6 }
 0x7ef   : > { %v3373_v18 = vpop.xlane.xlu0 %3372  ;;  %3732 = vmin.xlane.f32.xlu1 %v7842_v4  ;;  %v7857_v22 = vsel %vm3421_vm10, %v7689_v35, 128 }
 0x7f0   : > { %v7854_v0 = vcvt.s32.f32 %v3771_v55  ;;  %vm3418_vm11 = vcmp.eq.f32.partialorder %v7620_v41, %v3373_v18  ;;  %v3785_v39 = vshra.s32 %v7857_v22, 16 }
 0x7f1   : > { %v7864_v25 = vsel %vm3418_vm11, %v7689_v35, 128  ;;  %v3375_v26 = vpop.xlane.xlu1 %3374 }
 0x7f2   : > { %v3743_v10 = vshra.s32 %v7864_v25, 16  ;;  %vm3419_vm12 = vcmp.eq.f32.partialorder %v7631_v16, %v3375_v26  ;;  %3774 = vmin.xlane.f32.xlu0 %v7854_v0  ;;  %v7875_v41 = vcvt.s32.f32 %v3785_v39 }
 0x7f3   : > { %v7869_v55 = vsel %vm3419_vm12, %v7689_v35, 128  ;;  %v3385_v36 = vpop.xlane.xlu0 %3384  ;;  %3704 = vmin.xlane.f32.xlu1 %v7860_v14 }
 0x7f4   : > { %v7873_v18 = vcvt.s32.f32 %v3743_v10  ;;  %8650 = vst [vmem:[#allocation51_spill] sm:$0xff] %v7875_v41  ;;  %v3757_v6 = vshra.s32 %v7869_v55, 16  ;;  %vm3424_vm13 = vcmp.eq.f32.partialorder %v7640_v33, %v3385_v36 }
 0x7f5   : > { %v3387_v49 = vpop.xlane.xlu1 %3386  ;;  %v7880_v12 = vsel %vm3424_vm13, %v7689_v35, 128 }
 0x7f6   : > { %8651 = vst [vmem:[#allocation52_spill] sm:$0xff] %v7880_v12  ;;  %vm3425_vm14 = vcmp.eq.f32.partialorder %v7649_v46, %v3387_v49  ;;  %v3827_v16 = vshra.s32 %v7880_v12, 16  ;;  %3746 = vmin.xlane.f32.xlu0 %v7873_v18  ;;  %v7890_v39 = vcvt.s32.f32 %v3757_v6 }
 0x7f7   : > { %v7885_v26 = vsel %vm3425_vm14, %v7689_v35, 128  ;;  %v3381_v10 = vpop.xlane.xlu0 %3380  ;;  %3788 = vmin.xlane.f32.xlu1 %v7875_v41 }
 0x7f8   : > { %vm3422_vm15 = vcmp.eq.f32.partialorder %v7644_v13, %v3381_v10  ;;  %8652 = vst [vmem:[#allocation53_spill] sm:$0xff] %v7890_v39  ;;  %v7892_v36 = vcvt.s32.f32 %v3827_v16  ;;  %v3841_v33 = vshra.s32 %v7885_v26, 16 }
 0x7f9   : > { %v7896_v49 = vsel %vm3422_vm15, %v7689_v35, 128  ;;  %v3383_v46 = vpop.xlane.xlu1 %3382 }
 0x7fa   : > { %8653 = vst [vmem:[#allocation54_spill] sm:$0xff] %v7896_v49  ;;  %v3799_v12 = vshra.s32 %v7896_v49, 16  ;;  %vm3423_vm1 = vcmp.eq.f32.partialorder %v7655_v17, %v3383_v46  ;;  %3830 = vmin.xlane.f32.xlu0 %v7892_v36  ;;  %v7907_v16 = vcvt.s32.f32 %v3841_v33 }
 0x7fb   : > { %3760 = vmin.xlane.f32.xlu1 %v7890_v39  ;;  %v7905_v13 = vsel %vm3423_vm1, %v7689_v35, 128 }
 0x7fc   : > { %v7902_v41 = vcvt.s32.f32 %v3799_v12  ;;  %8655 = vst [vmem:[#allocation56_spill] sm:$0xff] %v7905_v13  ;;  %v3389_v6 = vpop.xlane.xlu0 %3388  ;;  %8656 = vst [vmem:[#allocation57_spill] sm:$0xff] %v7907_v16  ;;  %v3813_v10 = vshra.s32 %v7905_v13, 16 }
 0x7fd   : > { %vm3426_vm2 = vcmp.eq.f32.partialorder %v7668_v2, %v3389_v6 }
 0x7fe   : > { %8654 = vst [vmem:[#allocation55_spill] sm:$0xff] %v7902_v41  ;;  %v7912_v49 = vsel %vm3426_vm2, %v7689_v35, 128  ;;  %v3391_v17 = vpop.xlane.xlu1 %3390  ;;  %3802 = vmin.xlane.f32.xlu0 %v7902_v41  ;;  %v7918_v39 = vcvt.s32.f32 %v3813_v10 }
 0x7ff   : > { %v3855_v46 = vshra.s32 %v7912_v49, 16  ;;  %3844 = vmin.xlane.f32.xlu1 %v7907_v16  ;;  %vm3427_vm3 = vcmp.eq.f32.partialorder %v7678_v60, %v3391_v17 }
 0x800   : > { %v3393_v12 = vpop.xlane.xlu0 %3392  ;;  %v7923_v13 = vsel %vm3427_vm3, %v7689_v35, 128 }
 0x801   : > { %v7920_v33 = vcvt.s32.f32 %v3855_v46  ;;  %vm3428_vm4 = vcmp.eq.f32.partialorder %v7664_v40, %v3393_v12  ;;  %v3869_v2 = vshra.s32 %v7923_v13, 16 }
 0x802   : > { %v7928_v6 = vsel %vm3428_vm4, %v7689_v35, 128  ;;  %v3395_v41 = vpop.xlane.xlu1 %3394 }
 0x803   : > { %v3883_v16 = vshra.s32 %v7928_v6, 16  ;;  %vm3429_vm5 = vcmp.eq.f32.partialorder %v7673_v59, %v3395_v41  ;;  %3858 = vmin.xlane.f32.xlu0 %v7920_v33  ;;  %3816 = vmin.xlane.f32.xlu1 %v7918_v39  ;;  %v7937_v10 = vcvt.s32.f32 %v3869_v2  ;;  %v3490_v59 = vand.u32 65535, %v7693_v48 }
 0x804   : > { %v7935_v60 = vsel %vm3429_vm5, %v7689_v35, 128  ;;  %v3462_v35 = vand.u32 65535, %v7698_v58 }
 0x805   : > { %8657 = vst [vmem:[#allocation58_spill] sm:$0xff] %v7937_v10  ;;  %v7939_v40 = vcvt.s32.f32 %v3883_v16  ;;  %v3897_v17 = vshra.s32 %v7935_v60, 16  ;;  %v3492_v41 = vcvt.s32.f32 %v3490_v59  ;;  %v3504_v16 = vand.u32 65535, %v7709_v52 }
 0x807   : > { %8658 = vst [vmem:[#allocation59_spill] sm:$0xff] %v7939_v40  ;;  %3886 = vmin.xlane.f32.xlu0 %v7939_v40  ;;  %3872 = vmin.xlane.f32.xlu1 %v7937_v10  ;;  %v7944_v46 = vcvt.s32.f32 %v3897_v17  ;;  %v3464_v40 = vcvt.s32.f32 %v3462_v35  ;;  %v3546_v17 = vand.u32 65535, %v7720_v8  ;;  %v3506_v48 = vcvt.s32.f32 %v3504_v16 }
 0x808   : > { %v3560_v35 = vand.u32 65535, %v7726_v21  ;;  %v3602_v21 = vand.u32 65535, %v7752_v34  ;;  %v3574_v34 = vand.u32 65535, %v7768_v50  ;;  %v3658_v50 = vand.u32 65535, %v7784_v37 }
 0x809   : > { %8659 = vst [vmem:[#allocation60_spill] sm:$0xff] %v7944_v46  ;;  %v3548_v59 = vcvt.s32.f32 %v3546_v17  ;;  %v3630_v37 = vand.u32 65535, %v7800_v3  ;;  %v3714_v3 = vand.u32 65535, %v7816_v51  ;;  %v3686_v51 = vand.u32 65535, %v7832_v28 }
 0x80a   : > { %v3562_v16 = vcvt.s32.f32 %v3560_v35  ;;  %v3576_v35 = vcvt.s32.f32 %v3574_v34  ;;  %v3770_v28 = vand.u32 65535, %v7848_v32  ;;  %v3742_v32 = vand.u32 65535, %v7864_v25 }
 0x80b   : > { %3900 = vmin.xlane.f32.xlu1 %v7944_v46  ;;  %v3476_v46 = vand.u32 65535, %v7706_v29  ;;  %v3518_v29 = vand.u32 65535, %v7736_v31 }
 0x80d   : > { %v3478_v8 = vcvt.s32.f32 %v3476_v46  ;;  %v3532_v46 = vand.u32 65535, %v7742_v62  ;;  %v3616_v62 = vand.u32 65535, %v7761_v5  ;;  %v3588_v5 = vand.u32 65535, %v7773_v7 }
 0x80e   : > { %v3672_v7 = vand.u32 65535, %v7789_v53  ;;  %v3644_v53 = vand.u32 65535, %v7809_v54  ;;  %v3728_v54 = vand.u32 65535, %v7821_v9  ;;  %v3700_v9 = vand.u32 65535, %v7837_v1 }
 0x80f   : > { %v3784_v1 = vand.u32 65535, %v7857_v22  ;;  %v3756_v22 = vand.u32 65535, %v7869_v55  ;;  %v3840_v55 = vand.u32 65535, %v7885_v26 }
 0x857   : > { %v7949_v12 = vpop.xlane.xlu0 %3494 }
 0x858   : > { %vm3496_vm6 = vcmp.eq.f32.partialorder %v7700_v19, %v7949_v12 }
 0x859   : > { %v3497_v2 = vsel %vm3496_vm6, %v3492_v41, inf }
 0x85a   : > { %3498 = vmin.xlane.f32.xlu0 %v3497_v2  ;;  %v3520_v2 = vcvt.s32.f32 %v3518_v29 }
 0x85b   : > { %v7955_v10 = vpop.xlane.xlu0 %3466 }
 0x85c   : > { %vm3468_vm7 = vcmp.eq.f32.partialorder %v7713_v27, %v7955_v10  ;;  %v7960_v58 = vpop.xlane.xlu1 %3508 }
 0x85d   : > { %vm3510_vm8 = vcmp.eq.f32.partialorder %v7717_v43, %v7960_v58  ;;  %v3469_v52 = vsel %vm3468_vm7, %v3464_v40, inf }
 0x85e   : > { %3470 = vmin.xlane.f32.xlu0 %v3469_v52  ;;  %v3511_v19 = vsel %vm3510_vm8, %v3506_v48, inf  ;;  %v3534_v48 = vcvt.s32.f32 %v3532_v46  ;;  %v3604_v52 = vcvt.s32.f32 %v3602_v21  ;;  %v3674_v21 = vcvt.s32.f32 %v3672_v7 }
 0x85f   : > { %v7964_v41 = vpop.xlane.xlu0 %3550  ;;  %3512 = vmin.xlane.f32.xlu1 %v3511_v19  ;;  %v3744_v7 = vcvt.s32.f32 %v3742_v32 }
 0x860   : > { %vm3552_vm9 = vcmp.eq.f32.partialorder %v7729_v42, %v7964_v41  ;;  %v7970_v27 = vpop.xlane.xlu1 %3480 }
 0x861   : > { %vm3482_vm10 = vcmp.eq.f32.partialorder %v7731_v15, %v7970_v27  ;;  %v3553_v43 = vsel %vm3552_vm9, %v3548_v59, inf }
 0x862   : > { %3554 = vmin.xlane.f32.xlu0 %v3553_v43  ;;  %v3483_v40 = vsel %vm3482_vm10, %v3478_v8, inf  ;;  %v3618_v8 = vcvt.s32.f32 %v3616_v62  ;;  %v3716_v62 = vcvt.s32.f32 %v3714_v3  ;;  %v8662_v3 = vld [vmem:[#allocation54_spill] sm:$0xff] }
 0x863   : > { %3484 = vmin.xlane.f32.xlu1 %v3483_v40  ;;  %v7976_v17 = vpop.xlane.xlu0 %3522  ;;  %v3590_v40 = vcvt.s32.f32 %v3588_v5 }
 0x864   : > { %v7978_v31 = vpop.xlane.xlu1 %3564  ;;  %vm3524_vm11 = vcmp.eq.f32.partialorder %v7748_v23, %v7976_v17 }
 0x865   : > { %vm3566_vm12 = vcmp.eq.f32.partialorder %v7746_v63, %v7978_v31  ;;  %v3525_v42 = vsel %vm3524_vm11, %v3520_v2, inf }
 0x866   : > { %v3567_v15 = vsel %vm3566_vm12, %v3562_v16, inf  ;;  %3526 = vmin.xlane.f32.xlu0 %v3525_v42  ;;  %v3660_v16 = vcvt.s32.f32 %v3658_v50  ;;  %v3632_v42 = vcvt.s32.f32 %v3630_v37  ;;  %v3702_v50 = vcvt.s32.f32 %v3700_v9  ;;  %v8660_v37 = vld [vmem:[#allocation52_spill] sm:$0xff] }
 0x867   : > { %3568 = vmin.xlane.f32.xlu1 %v3567_v15  ;;  %v7986_v19 = vpop.xlane.xlu0 %3606  ;;  %v3826_v25 = vand.u32 65535, %v8660_v37 }
 0x868   : > { %v7988_v59 = vpop.xlane.xlu1 %3536  ;;  %vm3608_vm13 = vcmp.eq.f32.partialorder %v7758_v56, %v7986_v19 }
 0x869   : > { %vm3538_vm14 = vcmp.eq.f32.partialorder %v7764_v47, %v7988_v59  ;;  %v3609_v63 = vsel %vm3608_vm13, %v3604_v52, inf  ;;  %v3646_v52 = vcvt.s32.f32 %v3644_v53  ;;  %v3828_v53 = vcvt.s32.f32 %v3826_v25 }
 0x86a   : > { %v3539_v23 = vsel %vm3538_vm14, %v3534_v48, inf  ;;  %3610 = vmin.xlane.f32.xlu0 %v3609_v63 }
 0x86b   : > { %3540 = vmin.xlane.f32.xlu1 %v3539_v23  ;;  %v7996_v29 = vpop.xlane.xlu0 %3578  ;;  %v3730_v23 = vcvt.s32.f32 %v3728_v54 }
 0x86c   : > { %v7998_v43 = vpop.xlane.xlu1 %3620  ;;  %vm3580_vm15 = vcmp.eq.f32.partialorder %v7777_v11, %v7996_v29 }
 0x86d   : > { %vm3622_vm1 = vcmp.eq.f32.partialorder %v7779_v57, %v7998_v43  ;;  %v3581_v56 = vsel %vm3580_vm15, %v3576_v35, inf }
 0x86e   : > { %v3623_v47 = vsel %vm3622_vm1, %v3618_v8, inf  ;;  %3582 = vmin.xlane.f32.xlu0 %v3581_v56  ;;  %v3688_v8 = vcvt.s32.f32 %v3686_v51  ;;  %v3772_v56 = vcvt.s32.f32 %v3770_v28  ;;  %v3842_v51 = vcvt.s32.f32 %v3840_v55  ;;  %v8665_v28 = vld [vmem:[#allocation55_spill] sm:$0xff] }
 0x86f   : > { %3624 = vmin.xlane.f32.xlu1 %v3623_v47  ;;  %v8006_v2 = vpop.xlane.xlu0 %3662 }
 0x870   : > { %v8008_v46 = vpop.xlane.xlu1 %3592  ;;  %vm3664_vm2 = vcmp.eq.f32.partialorder %v7796_v44, %v8006_v2 }
 0x871   : > { %vm3594_vm3 = vcmp.eq.f32.partialorder %v7794_v24, %v8008_v46  ;;  %v3665_v11 = vsel %vm3664_vm2, %v3660_v16, inf  ;;  %v3786_v16 = vcvt.s32.f32 %v3784_v1  ;;  %v3868_v1 = vand.u32 65535, %v7923_v13 }
 0x872   : > { %v3595_v57 = vsel %vm3594_vm3, %v3590_v40, inf  ;;  %3666 = vmin.xlane.f32.xlu0 %v3665_v11 }
 0x873   : > { %3596 = vmin.xlane.f32.xlu1 %v3595_v57  ;;  %v8016_v15 = vpop.xlane.xlu0 %3634  ;;  %v3870_v13 = vcvt.s32.f32 %v3868_v1 }
 0x874   : > { %v8018_v48 = vpop.xlane.xlu1 %3676  ;;  %vm3636_vm4 = vcmp.eq.f32.partialorder %v7806_v61, %v8016_v15 }
 0x875   : > { %vm3678_vm5 = vcmp.eq.f32.partialorder %v7812_v30, %v8018_v48  ;;  %v3637_v24 = vsel %vm3636_vm4, %v3632_v42, inf  ;;  %v3758_v42 = vcvt.s32.f32 %v3756_v22  ;;  %v3896_v22 = vand.u32 65535, %v7935_v60  ;;  %v8670_v60 = vld [vmem:[#allocation60_spill] sm:$0xff] }
 0x876   : > { %v3679_v44 = vsel %vm3678_vm5, %v3674_v21, inf  ;;  %3638 = vmin.xlane.f32.xlu0 %v3637_v24  ;;  %v3798_v24 = vand.u32 65535, %v8662_v3  ;;  %v6079_v3 = vld [vmem:[%s8503_s16 + $0x8] sm:$0xff]  }
 0x877   : > { %3680 = vmin.xlane.f32.xlu1 %v3679_v44  ;;  %v8026_v34 = vpop.xlane.xlu0 %3718 }
 0x878   : > { %v8028_v63 = vpop.xlane.xlu1 %3648  ;;  %vm3720_vm6 = vcmp.eq.f32.partialorder %v7825_v45, %v8026_v34 }
 0x879   : > { %vm3650_vm7 = vcmp.eq.f32.partialorder %v7827_v20, %v8028_v63  ;;  %v3721_v61 = vsel %vm3720_vm6, %v3716_v62, inf }
 0x87a   : > { %v3651_v30 = vsel %vm3650_vm7, %v3646_v52, inf  ;;  %3722 = vmin.xlane.f32.xlu0 %v3721_v61  ;;  %v3800_v61 = vcvt.s32.f32 %v3798_v24  ;;  %v6080_v24 = vld [vmem:[%s8503_s16 + $0x10] sm:$0xff]  }
 0x87b   : > { %3652 = vmin.xlane.f32.xlu1 %v3651_v30  ;;  %v8036_v35 = vpop.xlane.xlu0 %3690  ;;  %v8664_v30 = vld [vmem:[#allocation56_spill] sm:$0xff] }
 0x87c   : > { %v8038_v5 = vpop.xlane.xlu1 %3732  ;;  %vm3692_vm8 = vcmp.eq.f32.partialorder %v7844_v38, %v8036_v35  ;;  %v3812_v26 = vand.u32 65535, %v8664_v30  ;;  %v3557_v30 = vcvt.f32.s32 %v7964_v41 }
 0x87d   : > { %vm3734_vm9 = vcmp.eq.f32.partialorder %v7842_v4, %v8038_v5  ;;  %v3693_v45 = vsel %vm3692_vm8, %v3688_v8, inf }
 0x87e   : > { %v3735_v20 = vsel %vm3734_vm9, %v3730_v23, inf  ;;  %3694 = vmin.xlane.f32.xlu0 %v3693_v45  ;;  %v3854_v23 = vand.u32 65535, %v7912_v49  ;;  %v3882_v49 = vand.u32 65535, %v7928_v6 }
 0x87f   : > { %3736 = vmin.xlane.f32.xlu1 %v3735_v20  ;;  %v8046_v47 = vpop.xlane.xlu0 %3774 }
 0x880   : > { %v8048_v40 = vpop.xlane.xlu1 %3704  ;;  %vm3776_vm10 = vcmp.eq.f32.partialorder %v7854_v0, %v8046_v47  ;;  %v8661_v0 = vld [vmem:[#allocation51_spill] sm:$0xff]  ;;  %v3884_v6 = vcvt.s32.f32 %v3882_v49  ;;  %v3558_v49 = vshll.u32 %v3557_v30, 16 }
 0x881   : > { %vm3706_vm11 = vcmp.eq.f32.partialorder %v7860_v14, %v8048_v40  ;;  %v3777_v4 = vsel %vm3776_vm10, %v3772_v56, inf  ;;  %v3856_v56 = vcvt.s32.f32 %v3854_v23  ;;  %v3529_v23 = vcvt.f32.s32 %v7976_v17 }
 0x882   : > { %v3707_v38 = vsel %vm3706_vm11, %v3702_v50, inf  ;;  %3778 = vmin.xlane.f32.xlu0 %v3777_v4  ;;  %v3814_v50 = vcvt.s32.f32 %v3812_v26  ;;  %v3487_v26 = vcvt.f32.s32 %v7970_v27  ;;  %v3669_v17 = vcvt.f32.s32 %v8006_v2 }
 0x883   : > { %3708 = vmin.xlane.f32.xlu1 %v3707_v38  ;;  %v8056_v11 = vpop.xlane.xlu0 %3746 }
 0x884   : > { %v8058_v57 = vpop.xlane.xlu1 %3788  ;;  %vm3748_vm12 = vcmp.eq.f32.partialorder %v7873_v18, %v8056_v11  ;;  %v8663_v18 = vld [vmem:[#allocation53_spill] sm:$0xff]  ;;  %v3488_v27 = vshll.u32 %v3487_v26, 16 }
 0x885   : > { %vm3790_vm13 = vcmp.eq.f32.partialorder %v8661_v0, %v8058_v57  ;;  %v3749_v14 = vsel %vm3748_vm12, %v3744_v7, inf  ;;  %v6078_v7 = vld [vmem:[%s8503_s16] sm:$0xff]   ;;  %v8669_v0 = vmov 0.0  }
 0x886   : > { %v3791_v21 = vsel %vm3790_vm13, %v3786_v16, inf  ;;  %3750 = vmin.xlane.f32.xlu0 %v3749_v14  ;;  %5929 = vmatpush3.bf16.msra.mxu0 %v6078_v7 }
 0x887   : > { %3792 = vmin.xlane.f32.xlu1 %v3791_v21  ;;  %v8066_v44 = vpop.xlane.xlu0 %3830  ;;  %5930 = vmatprep.subr.bf16.mxu0 %v8669_v0 }
 0x888   : > { %v8068_v52 = vpop.xlane.xlu1 %3760  ;;  %vm3832_vm14 = vcmp.eq.f32.partialorder %v7892_v36, %v8066_v44  ;;  %v8666_v36 = vld [vmem:[#allocation57_spill] sm:$0xff] }
 0x889   : > { %vm3762_vm15 = vcmp.eq.f32.partialorder %v8663_v18, %v8068_v52  ;;  %v3833_v62 = vsel %vm3832_vm14, %v3828_v53, inf  ;;  %v6081_v18 = vld [vmem:[%s8503_s16 + $0x18] sm:$0xff]  }
 0x88a   : > { %v3763_v54 = vsel %vm3762_vm15, %v3758_v42, inf  ;;  %3834 = vmin.xlane.f32.xlu0 %v3833_v62  ;;  %v3898_v42 = vcvt.s32.f32 %v3896_v22  ;;  %5931 = vmatpush3.bf16.msra.mxu0 %v6079_v3  ;;  %v6084_v62 = vld [vmem:[%s8505_s18 + $0x4] ss:$8 sps:$4 sm:$0xff]   ;;  %v3697_v3 = vcvt.f32.s32 %v8036_v35  ;;  %v3711_v35 = vcvt.f32.s32 %v8048_v40  ;;  %v8672_v40 = vld [vmem:[#allocation26_spill] sm:$0xff] }
 0x88b   : > { %3764 = vmin.xlane.f32.xlu1 %v3763_v54  ;;  %v8076_v8 = vpop.xlane.xlu0 %3802  ;;  %5932 = vmatprep.subr.bf16.mxu0 %v8669_v0  ;;  %v3501_v54 = vcvt.f32.s32 %v7949_v12  ;;  %v3585_v12 = vcvt.f32.s32 %v7996_v29 }
 0x88c   : > { %v8078_v9 = vpop.xlane.xlu1 %3844  ;;  %vm3804_vm1 = vcmp.eq.f32.partialorder %v8665_v28, %v8076_v8 }
 0x88d   : > { %vm3846_vm2 = vcmp.eq.f32.partialorder %v8666_v36, %v8078_v9  ;;  %v3805_v45 = vsel %vm3804_vm1, %v3800_v61, inf  ;;  %v3515_v61 = vcvt.f32.s32 %v7960_v58  ;;  %v3502_v36 = vshll.u32 %v3501_v54, 16 }
 0x88e   : > { %v3847_v20 = vsel %vm3846_vm2, %v3842_v51, inf  ;;  %3806 = vmin.xlane.f32.xlu0 %v3805_v45  ;;  %5933 = vmatpush3.bf16.msra.mxu0 %v6080_v24  ;;  %v3473_v51 = vcvt.f32.s32 %v7955_v10  ;;  %v3571_v45 = vcvt.f32.s32 %v7978_v31  ;;  %v3627_v58 = vcvt.f32.s32 %v7998_v43 }
 0x88f   : > { %3848 = vmin.xlane.f32.xlu1 %v3847_v20  ;;  %5934 = vmatprep.subr.bf16.mxu0 %v8669_v0  ;;  %v3516_v1 = vshll.u32 %v3515_v61, 16  ;;  %v3599_v31 = vcvt.f32.s32 %v8008_v46  ;;  %v8143_v22 = vshll.u32 %v3585_v12, 16  ;;  %v3725_v46 = vcvt.f32.s32 %v8026_v34 }
 0x890   : > { %v8086_v32 = vpop.xlane.xlu0 %3858  ;;  %v8088_v4 = vpop.xlane.xlu1 %3816  ;;  %v3474_v10 = vshll.u32 %v3473_v51, 16  ;;  %v3572_v7 = vshll.u32 %v3571_v45, 16  ;;  %v3781_v34 = vcvt.f32.s32 %v8046_v47 }
 0x891   : > { %vm3860_vm3 = vcmp.eq.f32.partialorder %v7920_v33, %v8086_v32  ;;  %vm3818_vm4 = vcmp.eq.f32.partialorder %v7918_v39, %v8088_v4  ;;  %v8667_v33 = vld [vmem:[#allocation59_spill] sm:$0xff]  ;;  %v8668_v39 = vld [vmem:[#allocation58_spill] sm:$0xff]  ;;  %v8162_v61 = vshll.u32 %v3725_v46, 16 }
 0x892   : > { %v3861_v38 = vsel %vm3860_vm3, %v3856_v56, inf  ;;  %v3819_v16 = vsel %vm3818_vm4, %v3814_v50, inf  ;;  %5935 = vmatpush3.bf16.msra.mxu0 %v6081_v18  ;;  %v3613_v50 = vcvt.f32.s32 %v7986_v19  ;;  %v3543_v56 = vcvt.f32.s32 %v7988_v59 }
 0x893   : > { %3862 = vmin.xlane.f32.xlu0 %v3861_v38  ;;  %3820 = vmin.xlane.f32.xlu1 %v3819_v16  ;;  %v3530_v38 = vshll.u32 %v3529_v23, 16  ;;  %v3641_v19 = vcvt.f32.s32 %v8016_v15  ;;  %v3655_v15 = vcvt.f32.s32 %v8028_v63  ;;  %v8167_v23 = vshll.u32 %v3697_v3, 16 }
 0x894   : > { %v8098_v37 = vpop.xlane.xlu0 %3886  ;;  %v8100_v25 = vpop.xlane.xlu1 %3872  ;;  %4295 = vmatprep.subr.bf16.mxu0 %v6084_v62  ;;  %v8141_v29 = vshll.u32 %v3543_v56, 16 }
 0x895   : > { %vm3888_vm5 = vcmp.eq.f32.partialorder %v8667_v33, %v8098_v37  ;;  %vm3874_vm6 = vcmp.eq.f32.partialorder %v8668_v39, %v8100_v25  ;;  %v8145_v33 = vshll.u32 %v3627_v58, 16  ;;  %v3683_v39 = vcvt.f32.s32 %v8018_v48 }
 0x896   : > { %v3889_v14 = vsel %vm3888_vm5, %v3884_v6, inf  ;;  %v3875_v21 = vsel %vm3874_vm6, %v3870_v13, inf  ;;  %v8139_v6 = vshll.u32 %v3613_v50, 16  ;;  %v3739_v48 = vcvt.f32.s32 %v8038_v5  ;;  %v8671_v5 = vld [vmem:[#allocation22_spill] sm:$0xff] }
 0x897   : > { %3890 = vmin.xlane.f32.xlu0 %v3889_v14  ;;  %3876 = vmin.xlane.f32.xlu1 %v3875_v21  ;;  %v8148_v14 = vshll.u32 %v3669_v17, 16  ;;  %v8159_v51 = vshll.u32 %v3683_v39, 16  ;;  %v8164_v30 = vshll.u32 %v3655_v15, 16 }
 0x898   : > { %v8107_v53 = vpop.xlane.xlu1 %3900  ;;  %v8171_v50 = vshll.u32 %v3739_v48, 16 }
 0x899   : > { %vm3902_vm7 = vcmp.eq.f32.partialorder %v8670_v60, %v8107_v53  ;;  %v8152_v60 = vshll.u32 %v3599_v31, 16 }
 0x89a   : > { %v3903_v55 = vsel %vm3902_vm7, %v3898_v42, inf }
 0x89b   : > { %3904 = vmin.xlane.f32.xlu1 %v3903_v55  ;;  %v8154_v55 = vshll.u32 %v3641_v19, 16  ;;  %v8674_v19 = vld [vmem:[#allocation19_spill] sm:$0xff] }
 0x8e7   : > { %v3499_v28 = vpop.xlane.xlu0 %3498 }
 0x8e8   : > { %v3500_v20 = vcvt.f32.s32 %v3499_v28 }
 0x8ea   : > { %v3503_v41 = vadd.s32 %v3502_v36, %v3500_v20 }
 0x8eb   : > { %v3471_v16 = vpop.xlane.xlu0 %3470 }
 0x8ec   : > { %v3472_v13 = vcvt.f32.s32 %v3471_v16  ;;  %v3513_v59 = vpop.xlane.xlu1 %3512  ;;  %vm3912_vm8 = vcmp.ge.s32.totalorder %v3503_v41, 1  ;;  %v8178_v41 = vshll.u32 %v3711_v35, 16 }
 0x8ed   : > { %v3514_v43 = vcvt.f32.s32 %v3513_v59  ;;  %v5394_v62 = vsel %vm3912_vm8, 1.0, %v8669_v0 }
 0x8ee   : > { %v3475_v2 = vadd.s32 %v3474_v10, %v3472_v13  ;;  %v4008_v28 = vmul.f32 %v5394_v62, %v8671_v5  ;;  %v8175_v10 = vshll.u32 %v3781_v34, 16 }
 0x8ef   : > { %v3517_v21 = vadd.s32 %v3516_v1, %v3514_v43  ;;  %v3555_v42 = vpop.xlane.xlu0 %3554 }
 0x8f0   : > { %v3556_v24 = vcvt.f32.s32 %v3555_v42  ;;  %v3485_v18 = vpop.xlane.xlu1 %3484  ;;  %vm3910_vm9 = vcmp.ge.s32.totalorder %v3475_v2, 1  ;;  %v4040_v31 = vsel %vm1483_vm0, %v4008_v28, -inf  ;;  %v3795_v42 = vcvt.f32.s32 %v8058_v57 }
 0x8f1   : > { %v3486_v54 = vcvt.f32.s32 %v3485_v18  ;;  %vm3913_vm10 = vcmp.ge.s32.totalorder %v3517_v21, 1  ;;  %v5392_v36 = vsel %vm3910_vm9, 1.0, %v8669_v0 }
 0x8f2   : > { %v3559_v63 = vadd.s32 %v3558_v49, %v3556_v24  ;;  %v5395_v47 = vsel %vm3913_vm10, 1.0, %v8669_v0  ;;  %v3753_v49 = vcvt.f32.s32 %v8056_v11  ;;  %v8675_v24 = vld [vmem:[#allocation24_spill] sm:$0xff] }
 0x8f3   : > { %v3489_v26 = vadd.s32 %v3488_v27, %v3486_v54  ;;  %v3527_v45 = vpop.xlane.xlu0 %3526  ;;  %v8673_v27 = vld [vmem:[#allocation20_spill] sm:$0xff]  ;;  %v4009_v13 = vmul.f32 %v5395_v47, %v8674_v19  ;;  %v8676_v54 = vld [vmem:[#allocation21_spill] sm:$0xff] }
 0x8f4   : > { %vm3916_vm11 = vcmp.ge.s32.totalorder %v3559_v63, 1  ;;  %v3569_v20 = vpop.xlane.xlu1 %3568  ;;  %v3528_v12 = vcvt.f32.s32 %v3527_v45  ;;  %v4006_v17 = vmul.f32 %v5392_v36, %v8673_v27  ;;  %v8677_v63 = vld [vmem:[#allocation23_spill] sm:$0xff] }
 0x8f5   : > { %v5398_v56 = vsel %vm3916_vm11, 1.0, %v8669_v0  ;;  %vm3911_vm12 = vcmp.ge.s32.totalorder %v3489_v26, 1  ;;  %v3570_v58 = vcvt.f32.s32 %v3569_v20  ;;  %v4041_v62 = vsel %vm1483_vm0, %v4009_v13, -inf }
 0x8f6   : > { %v4012_v1 = vmul.f32 %v5398_v56, %v8672_v40  ;;  %v3531_v16 = vadd.s32 %v3530_v38, %v3528_v12  ;;  %v5393_v15 = vsel %vm3911_vm12, 1.0, %v8669_v0  ;;  %v4038_v3 = vsel %vm1483_vm0, %v4006_v17, -inf  ;;  %v8678_v12 = vld [vmem:[#allocation30_spill] sm:$0xff]  ;;  %v8679_v17 = vld [vmem:[#allocation25_spill] sm:$0xff] }
 0x8f7   : > { %v3573_v43 = vadd.s32 %v3572_v7, %v3570_v58  ;;  %v3611_v39 = vpop.xlane.xlu0 %3610  ;;  %v4007_v34 = vmul.f32 %v5393_v15, %v8676_v54  ;;  %v8202_v58 = vshll.u32 %v3753_v49, 16 }
 0x8f8   : > { %v4046_v59 = vsel %vm1483_vm0, %v4012_v1, -inf  ;;  %v3541_v2 = vpop.xlane.xlu1 %3540  ;;  %vm3914_vm13 = vcmp.ge.s32.totalorder %v3531_v16, 1  ;;  %v3612_v21 = vcvt.f32.s32 %v3611_v39 }
 0x8f9   : > { %v4047_v46 = vmax.f32 %v4040_v31, %v4046_v59  ;;  %v5396_v11 = vsel %vm3914_vm13, 1.0, %v8669_v0  ;;  %vm3917_vm14 = vcmp.ge.s32.totalorder %v3573_v43, 1  ;;  %v3542_v38 = vcvt.f32.s32 %v3541_v2 }
 0x8fa   : > { %v4010_v18 = vmul.f32 %v5396_v11, %v8675_v24  ;;  %v5399_v48 = vsel %vm3917_vm14, 1.0, %v8669_v0  ;;  %v3615_v7 = vadd.s32 %v8139_v6, %v3612_v21  ;;  %v4039_v27 = vsel %vm1483_vm0, %v4007_v34, -inf  ;;  %v8680_v21 = vld [vmem:[#allocation28_spill] sm:$0xff] }
 0x8fb   : > { %v4013_v35 = vmul.f32 %v5399_v48, %v8677_v63  ;;  %v3545_v57 = vadd.s32 %v8141_v29, %v3542_v38  ;;  %v3583_v26 = vpop.xlane.xlu0 %3582  ;;  %v3837_v24 = vcvt.f32.s32 %v8066_v44  ;;  %v8682_v44 = vld [vmem:[#allocation34_spill] sm:$0xff] }
 0x8fc   : > { %v3625_v5 = vpop.xlane.xlu1 %3624  ;;  %v4042_v28 = vsel %vm1483_vm0, %v4010_v18, -inf  ;;  %vm3920_vm15 = vcmp.ge.s32.totalorder %v3615_v7, 1  ;;  %v3584_v36 = vcvt.f32.s32 %v3583_v26  ;;  %v8681_v18 = vld [vmem:[#allocation27_spill] sm:$0xff] }
 0x8fd   : > { %v3626_v45 = vcvt.f32.s32 %v3625_v5  ;;  %v4043_v20 = vmax.f32 %v4038_v3, %v4042_v28  ;;  %v4048_v47 = vsel %vm1483_vm0, %v4013_v35, -inf  ;;  %v5402_v6 = vsel %vm3920_vm15, 1.0, %v8669_v0 }
 0x8fe   : > { %vm3915_vm1 = vcmp.ge.s32.totalorder %v3545_v57, 1  ;;  %v4049_v56 = vmax.f32 %v4041_v62, %v4048_v47  ;;  %v4016_v40 = vmul.f32 %v5402_v6, %v8678_v12  ;;  %v3587_v29 = vadd.s32 %v8143_v22, %v3584_v36 }
 0x8ff   : > { %v5397_v1 = vsel %vm3915_vm1, 1.0, %v8669_v0  ;;  %v3629_v31 = vadd.s32 %v8145_v33, %v3626_v45  ;;  %v3667_v19 = vpop.xlane.xlu0 %3666  ;;  %v8215_v3 = vshll.u32 %v3795_v42, 16  ;;  %v8230_v28 = vshll.u32 %v3837_v24, 16  ;;  %v8683_v45 = vld [vmem:[#allocation29_spill] sm:$0xff] }
 0x900   : > { %v4011_v16 = vmul.f32 %v5397_v1, %v8679_v17  ;;  %v3597_v13 = vpop.xlane.xlu1 %3596  ;;  %v4054_v59 = vsel %vm1483_vm0, %v4016_v40, -inf  ;;  %vm3918_vm2 = vcmp.ge.s32.totalorder %v3587_v29, 1  ;;  %v3668_v43 = vcvt.f32.s32 %v3667_v19 }
 0x901   : > { %v3598_v39 = vcvt.f32.s32 %v3597_v13  ;;  %v8208_v2 = vmax.f32 %v4047_v46, %v4054_v59  ;;  %v5400_v22 = vsel %vm3918_vm2, 1.0, %v8669_v0  ;;  %vm3921_vm3 = vcmp.ge.s32.totalorder %v3629_v31, 1  ;;  %v8685_v59 = vld [vmem:[#allocation31_spill] sm:$0xff] }
 0x902   : > { %v4044_v15 = vsel %vm1483_vm0, %v4011_v16, -inf  ;;  %v4014_v11 = vmul.f32 %v5400_v22, %v8680_v21  ;;  %v5403_v38 = vsel %vm3921_vm3, 1.0, %v8669_v0  ;;  %v3671_v33 = vadd.s32 %v8148_v14, %v3668_v43 }
 0x903   : > { %v4045_v49 = vmax.f32 %v4039_v27, %v4044_v15  ;;  %v4017_v48 = vmul.f32 %v5403_v38, %v8681_v18  ;;  %v3601_v46 = vadd.s32 %v8152_v60, %v3598_v39  ;;  %v3639_v7 = vpop.xlane.xlu0 %3638  ;;  %v3767_v36 = vcvt.f32.s32 %v8068_v52  ;;  %v8684_v52 = vld [vmem:[#allocation32_spill] sm:$0xff] }
 0x904   : > { %v3681_v62 = vpop.xlane.xlu1 %3680  ;;  %v4050_v54 = vsel %vm1483_vm0, %v4014_v11, -inf  ;;  %vm3924_vm4 = vcmp.ge.s32.totalorder %v3671_v33, 1  ;;  %v3640_v34 = vcvt.f32.s32 %v3639_v7  ;;  %v3809_v13 = vcvt.f32.s32 %v8076_v8  ;;  %v8686_v33 = vld [vmem:[#allocation38_spill] sm:$0xff]  ;;  %v8687_v7 = vld [vmem:[#allocation33_spill] sm:$0xff] }
 0x905   : > { %v3682_v63 = vcvt.f32.s32 %v3681_v62  ;;  %v8221_v35 = vmax.f32 %v4043_v20, %v4050_v54  ;;  %v4056_v57 = vsel %vm1483_vm0, %v4017_v48, -inf  ;;  %v5406_v14 = vsel %vm3924_vm4, 1.0, %v8669_v0 }
 0x906   : > { %vm3919_vm5 = vcmp.ge.s32.totalorder %v3601_v46, 1  ;;  %v8225_v42 = vmax.f32 %v4049_v56, %v4056_v57  ;;  %v4020_v26 = vmul.f32 %v5406_v14, %v8682_v44  ;;  %v3643_v5 = vadd.s32 %v8154_v55, %v3640_v34 }
 0x907   : > { %v5401_v60 = vsel %vm3919_vm5, 1.0, %v8669_v0  ;;  %v3685_v47 = vadd.s32 %v8159_v51, %v3682_v63  ;;  %v3723_v6 = vpop.xlane.xlu0 %3722  ;;  %v8244_v19 = vshll.u32 %v3767_v36, 16  ;;  %v8257_v48 = vshll.u32 %v3809_v13, 16  ;;  %v8691_v13 = vld [vmem:[#allocation37_spill] sm:$0xff] }
 0x908   : > { %v4015_v20 = vmul.f32 %v5401_v60, %v8683_v45  ;;  %v3653_v12 = vpop.xlane.xlu1 %3652  ;;  %v4062_v40 = vsel %vm1483_vm0, %v4020_v26, -inf  ;;  %vm3922_vm6 = vcmp.ge.s32.totalorder %v3643_v5, 1  ;;  %v3724_v56 = vcvt.f32.s32 %v3723_v6  ;;  %v8688_v26 = vld [vmem:[#allocation36_spill] sm:$0xff] }
 0x909   : > { %v3654_v1 = vcvt.f32.s32 %v3653_v12  ;;  %v4063_v29 = vmax.f32 %v8208_v2, %v4062_v40  ;;  %v5404_v55 = vsel %vm3922_vm6, 1.0, %v8669_v0  ;;  %vm3925_vm7 = vcmp.ge.s32.totalorder %v3685_v47, 1 }
 0x90a   : > { %v4052_v27 = vsel %vm1483_vm0, %v4015_v20, -inf  ;;  %v4018_v16 = vmul.f32 %v5404_v55, %v8684_v52  ;;  %v5407_v51 = vsel %vm3925_vm7, 1.0, %v8669_v0  ;;  %v3727_v31 = vadd.s32 %v8162_v61, %v3724_v56  ;;  %v8689_v20 = vld [vmem:[#allocation35_spill] sm:$0xff] }
 0x90b   : > { %v8239_v17 = vmax.f32 %v4045_v49, %v4052_v27  ;;  %v4021_v43 = vmul.f32 %v5407_v51, %v8685_v59  ;;  %v3657_v39 = vadd.s32 %v8164_v30, %v3654_v1  ;;  %v3695_v2 = vpop.xlane.xlu0 %3694  ;;  %v3851_v46 = vcvt.f32.s32 %v8078_v9 }
 0x90c   : > { %v3737_v15 = vpop.xlane.xlu1 %3736  ;;  %v4058_v22 = vsel %vm1483_vm0, %v4018_v16, -inf  ;;  %vm3928_vm8 = vcmp.ge.s32.totalorder %v3727_v31, 1  ;;  %v3696_v49 = vcvt.f32.s32 %v3695_v2  ;;  %v3865_v45 = vcvt.f32.s32 %v8086_v32  ;;  %v8690_v32 = vld [vmem:[#allocation42_spill] sm:$0xff] }
 0x90d   : > { %v3738_v21 = vcvt.f32.s32 %v3737_v15  ;;  %v4059_v11 = vmax.f32 %v8221_v35, %v4058_v22  ;;  %v4064_v38 = vsel %vm1483_vm0, %v4021_v43, -inf  ;;  %v5410_v61 = vsel %vm3928_vm8, 1.0, %v8669_v0 }
 0x90e   : > { %vm3923_vm9 = vcmp.ge.s32.totalorder %v3657_v39, 1  ;;  %v4065_v8 = vmax.f32 %v8225_v42, %v4064_v38  ;;  %v4024_v24 = vmul.f32 %v5410_v61, %v8686_v33  ;;  %v3699_v18 = vadd.s32 %v8167_v23, %v3696_v49 }
 0x90f   : > { %v5405_v30 = vsel %vm3923_vm9, 1.0, %v8669_v0  ;;  %v3741_v54 = vadd.s32 %v8171_v50, %v3738_v21  ;;  %v3779_v34 = vpop.xlane.xlu0 %3778  ;;  %v3852_v36 = vshll.u32 %v3851_v46, 16  ;;  %v3866_v51 = vshll.u32 %v3865_v45, 16 }
 0x910   : > { %v4019_v62 = vmul.f32 %v5405_v30, %v8687_v7  ;;  %v3709_v63 = vpop.xlane.xlu1 %3708  ;;  %v4070_v35 = vsel %vm1483_vm0, %v4024_v24, -inf  ;;  %vm3926_vm10 = vcmp.ge.s32.totalorder %v3699_v18, 1  ;;  %v3780_v57 = vcvt.f32.s32 %v3779_v34  ;;  %v8693_v30 = vld [vmem:[#allocation39_spill] sm:$0xff] }
 0x911   : > { %v3710_v14 = vcvt.f32.s32 %v3709_v63  ;;  %v8263_v42 = vmax.f32 %v4063_v29, %v4070_v35  ;;  %v5408_v23 = vsel %vm3926_vm10, 1.0, %v8669_v0  ;;  %vm3929_vm11 = vcmp.ge.s32.totalorder %v3741_v54, 1 }
 0x912   : > { %v4060_v44 = vsel %vm1483_vm0, %v4019_v62, -inf  ;;  %v4022_v60 = vmul.f32 %v5408_v23, %v8688_v26  ;;  %v5411_v50 = vsel %vm3929_vm11, 1.0, %v8669_v0  ;;  %v3783_v5 = vadd.s32 %v8175_v10, %v3780_v57  ;;  %v8695_v26 = vld [vmem:[#allocation41_spill] sm:$0xff] }
 0x913   : > { %v4061_v9 = vmax.f32 %v8239_v17, %v4060_v44  ;;  %v4025_v47 = vmul.f32 %v5411_v50, %v8689_v20  ;;  %v3713_v6 = vadd.s32 %v8178_v41, %v3710_v14  ;;  %v3751_v12 = vpop.xlane.xlu0 %3750  ;;  %v3823_v31 = vcvt.f32.s32 %v8088_v4  ;;  %v8692_v4 = vld [vmem:[#allocation40_spill] sm:$0xff]  ;;  %v8694_v14 = vld [vmem:[#allocation46_spill] sm:$0xff] }
 0x914   : > { %v3793_v40 = vpop.xlane.xlu1 %3792  ;;  %v4066_v56 = vsel %vm1483_vm0, %v4022_v60, -inf  ;;  %vm3932_vm12 = vcmp.ge.s32.totalorder %v3783_v5, 1  ;;  %v3752_v1 = vcvt.f32.s32 %v3751_v12  ;;  %v3893_v24 = vcvt.f32.s32 %v8098_v37 }
 0x915   : > { %v3794_v29 = vcvt.f32.s32 %v3793_v40  ;;  %v8275_v27 = vmax.f32 %v4059_v11, %v4066_v56  ;;  %v4072_v55 = vsel %vm1483_vm0, %v4025_v47, -inf  ;;  %v5414_v10 = vsel %vm3932_vm12, 1.0, %v8669_v0 }
 0x916   : > { %vm3927_vm13 = vcmp.ge.s32.totalorder %v3713_v6, 1  ;;  %v8279_v17 = vmax.f32 %v4065_v8, %v4072_v55  ;;  %v4028_v52 = vmul.f32 %v5414_v10, %v8690_v32  ;;  %v3755_v16 = vadd.s32 %v8202_v58, %v3752_v1  ;;  %v8696_v1 = vld [vmem:[#allocation44_spill] sm:$0xff]  ;;  %v8697_v10 = vld [vmem:[#allocation43_spill] sm:$0xff] }
 0x917   : > { %v5409_v41 = vsel %vm3927_vm13, 1.0, %v8669_v0  ;;  %v3797_v43 = vadd.s32 %v8215_v3, %v3794_v29  ;;  %v3835_v39 = vpop.xlane.xlu0 %3834  ;;  %v3824_v33 = vshll.u32 %v3823_v31, 16  ;;  %v3894_v23 = vshll.u32 %v3893_v24, 16 }
 0x918   : > { %v4023_v59 = vmul.f32 %v5409_v41, %v8691_v13  ;;  %v3765_v2 = vpop.xlane.xlu1 %3764  ;;  %v4078_v15 = vsel %vm1483_vm0, %v4028_v52, -inf  ;;  %vm3930_vm14 = vcmp.ge.s32.totalorder %v3755_v16, 1  ;;  %v3836_v22 = vcvt.f32.s32 %v3835_v39 }
 0x919   : > { %v3766_v49 = vcvt.f32.s32 %v3765_v2  ;;  %v4079_v21 = vmax.f32 %v8263_v42, %v4078_v15  ;;  %v5412_v58 = vsel %vm3930_vm14, 1.0, %v8669_v0  ;;  %vm3933_vm15 = vcmp.ge.s32.totalorder %v3797_v43, 1  ;;  %v8698_v2 = vld [vmem:[#allocation48_spill] sm:$0xff] }
 0x91a   : > { %v4068_v11 = vsel %vm1483_vm0, %v4023_v59, -inf  ;;  %v4026_v61 = vmul.f32 %v5412_v58, %v8692_v4  ;;  %v5415_v3 = vsel %vm3933_vm15, 1.0, %v8669_v0  ;;  %v3839_v8 = vadd.s32 %v8230_v28, %v3836_v22 }
 0x91b   : > { %v8291_v38 = vmax.f32 %v4061_v9, %v4068_v11  ;;  %v4029_v18 = vmul.f32 %v5415_v3, %v8693_v30  ;;  %v3769_v46 = vadd.s32 %v8244_v19, %v3766_v49  ;;  %v3807_v7 = vpop.xlane.xlu0 %3806  ;;  %v3879_v9 = vcvt.f32.s32 %v8100_v25  ;;  %v8699_v49 = vld [vmem:[#allocation45_spill] sm:$0xff]  ;;  %v8700_v30 = vld [vmem:[#allocation47_spill] sm:$0xff] }
 0x91c   : > { %v3849_v62 = vpop.xlane.xlu1 %3848  ;;  %v4074_v54 = vsel %vm1483_vm0, %v4026_v61, -inf  ;;  %vm3936_vm1 = vcmp.ge.s32.totalorder %v3839_v8, 1  ;;  %v3808_v34 = vcvt.f32.s32 %v3807_v7  ;;  %v3907_v55 = vcvt.f32.s32 %v8107_v53 }
 0x91d   : > { %v3850_v63 = vcvt.f32.s32 %v3849_v62  ;;  %v4075_v35 = vmax.f32 %v8275_v27, %v4074_v54  ;;  %v4080_v57 = vsel %vm1483_vm0, %v4029_v18, -inf  ;;  %v5418_v28 = vsel %vm3936_vm1, 1.0, %v8669_v0  ;;  %v8701_v62 = vld [vmem:[#allocation50_spill] sm:$0xff] }
 0x91e   : > { %vm3931_vm2 = vcmp.ge.s32.totalorder %v3769_v46, 1  ;;  %v4081_v37 = vmax.f32 %v8279_v17, %v4080_v57  ;;  %v4032_v42 = vmul.f32 %v5418_v28, %v8694_v14  ;;  %v3811_v44 = vadd.s32 %v8257_v48, %v3808_v34  ;;  %v8702_v28 = vld [vmem:[#allocation49_spill] sm:$0xff] }
 0x91f   : > { %v5413_v19 = vsel %vm3931_vm2, 1.0, %v8669_v0  ;;  %v3853_v50 = vadd.s32 %v3852_v36, %v3850_v63  ;;  %v3880_v27 = vshll.u32 %v3879_v9, 16 }
 0x920   : > { %v4027_v60 = vmul.f32 %v5413_v19, %v8695_v26  ;;  %v3863_v5 = vpop.xlane.xlu0 %3862  ;;  %v3821_v45 = vpop.xlane.xlu1 %3820  ;;  %v4086_v20 = vsel %vm1483_vm0, %v4032_v42, -inf  ;;  %vm3934_vm3 = vcmp.ge.s32.totalorder %v3811_v44, 1 }
 0x921   : > { %v3864_v47 = vcvt.f32.s32 %v3863_v5  ;;  %v3822_v6 = vcvt.f32.s32 %v3821_v45  ;;  %v4087_v12 = vmax.f32 %v4079_v21, %v4086_v20  ;;  %v5416_v56 = vsel %vm3934_vm3, 1.0, %v8669_v0 }
 0x922   : > { %v4076_v40 = vsel %vm1483_vm0, %v4027_v60, -inf  ;;  %vm3937_vm4 = vcmp.ge.s32.totalorder %v3853_v50, 1  ;;  %v4030_v25 = vmul.f32 %v5416_v56, %v8696_v1  ;;  %v8703_v56 = vmov 0   ;;  %v6088_v1 = vld [vmem:[%s8505_s18 + $0x20] ss:$8 sps:$4 sm:$0xff]  }
 0x923   : > { %v4077_v48 = vmax.f32 %v8291_v38, %v4076_v40  ;;  %v5419_v29 = vsel %vm3937_vm4, 1.0, %v8669_v0  ;;  %v3867_v36 = vadd.s32 %v3866_v51, %v3864_v47  ;;  %v3825_v32 = vadd.s32 %v3824_v33, %v3822_v6  ;;  %v6087_v40 = vld [vmem:[%s8505_s18 + $0x14] ss:$8 sps:$4 sm:$0xff]  }
 0x924   : > { %v4033_v17 = vmul.f32 %v5419_v29, %v8697_v10  ;;  %v3891_v52 = vpop.xlane.xlu0 %3890  ;;  %v3877_v41 = vpop.xlane.xlu1 %3876  ;;  %v4082_v16 = vsel %vm1483_vm0, %v4030_v25, -inf  ;;  %v3908_v38 = vshll.u32 %v3907_v55, 16  ;;  %v6093_v25 = vld [vmem:[%s8505_s18 + $0x34] ss:$8 sps:$4 sm:$0xff]   ;;  %v6091_v29 = vld [vmem:[%s8505_s18 + $0x30] ss:$8 sps:$4 sm:$0xff]  }
 0x925   : > { %vm3938_vm5 = vcmp.ge.s32.totalorder %v3867_v36, 1  ;;  %v3892_v31 = vcvt.f32.s32 %v3891_v52  ;;  %v3878_v13 = vcvt.f32.s32 %v3877_v41  ;;  %v4083_v59 = vmax.f32 %v4075_v35, %v4082_v16  ;;  %v6096_v36 = vld [vmem:[%s8505_s18 + $0x44] ss:$8 sps:$4 sm:$0xff]   ;;  %v6099_v55 = vld [vmem:[%s8505_s18 + $0x54] ss:$8 sps:$4 sm:$0xff]  }
 0x926   : > { %v4088_v43 = vsel %vm1483_vm0, %v4033_v17, -inf  ;;  %v5420_v39 = vsel %vm3938_vm5, 1.0, %v8669_v0  ;;  %vm3935_vm6 = vcmp.ge.s32.totalorder %v3825_v32, 1  ;;  %v6097_v10 = vld [vmem:[%s8505_s18 + $0x50] ss:$8 sps:$4 sm:$0xff]  }
 0x927   : > { %v4089_v51 = vmax.f32 %v4081_v37, %v4088_v43  ;;  %v4034_v15 = vmul.f32 %v5420_v39, %v8698_v2  ;;  %v5417_v53 = vsel %vm3935_vm6, 1.0, %v8669_v0  ;;  %v3895_v22 = vadd.s32 %v3894_v23, %v3892_v31  ;;  %v6102_v17 = vld [vmem:[%s8505_s18 + $0x64] ss:$8 sps:$4 sm:$0xff]   ;;  %v6100_v32 = vld [vmem:[%s8505_s18 + $0x60] ss:$8 sps:$4 sm:$0xff]  }
 0x928   : > { %v4031_v21 = vmul.f32 %v5417_v53, %v8699_v49  ;;  %v3881_v11 = vadd.s32 %v3880_v27, %v3878_v13  ;;  %v3905_v58 = vpop.xlane.xlu1 %3904  ;;  %v6094_v27 = vld [vmem:[%s8505_s18 + $0x40] ss:$8 sps:$4 sm:$0xff]   ;;  %v6105_v52 = vld [vmem:[%s8505_s18 + $0x74] ss:$8 sps:$4 sm:$0xff]   ;;  %v6103_v41 = vld [vmem:[%s8505_s18 + $0x70] ss:$8 sps:$4 sm:$0xff]  }
 0x929   : > { %v4090_v4 = vsel %vm1483_vm0, %v4034_v15, -inf  ;;  %vm3940_vm7 = vcmp.ge.s32.totalorder %v3895_v22, 1  ;;  %v3906_v61 = vcvt.f32.s32 %v3905_v58  ;;  %v6106_v16 = vld [vmem:[#allocation2] ss:$24 sps:$4 sm:$0xff]   ;;  %v6108_v31 = vld [vmem:[#allocation2 + $0x4] ss:$24 sps:$4 sm:$0xff]  }
 0x92a   : > { %v4091_v3 = vmax.f32 %v4083_v59, %v4090_v4  ;;  %v4084_v8 = vsel %vm1483_vm0, %v4031_v21, -inf  ;;  %v5422_v33 = vsel %vm3940_vm7, 1.0, %v8669_v0  ;;  %vm3939_vm8 = vcmp.ge.s32.totalorder %v3881_v11, 1  ;;  %v6111_v13 = vld [vmem:[#allocation2 + $0xc] ss:$24 sps:$4 sm:$0xff]   ;;  %4948 = vmatprep.subr.bf16.mxu1 %v6108_v31 }
 0x92b   : > { %v4085_v24 = vmax.f32 %v4077_v48, %v4084_v8  ;;  %v4036_v18 = vmul.f32 %v5422_v33, %v8700_v30  ;;  %v5421_v46 = vsel %vm3939_vm8, 1.0, %v8669_v0  ;;  %v3909_v7 = vadd.s32 %v3908_v38, %v3906_v61  ;;  %v6090_v48 = vld [vmem:[%s8505_s18 + $0x24] ss:$8 sps:$4 sm:$0xff]   ;;  %4949 = vmatpush1.bf16.msra.mxu1 %v6106_v16  ;;  %v6112_v43 = vld [vmem:[#allocation2 + $0x30] ss:$24 sps:$4 sm:$0xff]  }
 0x92c   : > { %v4035_v54 = vmul.f32 %v5421_v46, %v8701_v62  ;;  %v6114_v59 = vld [vmem:[#allocation2 + $0x34] ss:$24 sps:$4 sm:$0xff]   ;;  %v6120_v39 = vld [vmem:[#allocation2 + $0x64] ss:$24 sps:$4 sm:$0xff]   ;;  %v6124_v15 = vld [vmem:[#allocation2 + $0x90] ss:$24 sps:$4 sm:$0xff]  }
 0x92d   : > { %vm3941_vm9 = vcmp.ge.s32.totalorder %v3909_v7, 1  ;;  %v4094_v35 = vsel %vm1483_vm0, %v4036_v18, -inf  ;;  %4950 = vmatprep.subr.bf16.mxu1 %v6114_v59  ;;  %v6126_v2 = vld [vmem:[#allocation2 + $0x94] ss:$24 sps:$4 sm:$0xff]   ;;  %v6132_v53 = vld [vmem:[#allocation2 + $0xc4] ss:$24 sps:$4 sm:$0xff]  }
 0x92e   : > { %v4092_v34 = vsel %vm1483_vm0, %v4035_v54, -inf  ;;  %v5423_v63 = vsel %vm3941_vm9, 1.0, %v8669_v0  ;;  %v4095_v19 = vmax.f32 %v4087_v12, %v4094_v35  ;;  %v6082_v0 = vld [vmem:[%s8505_s18] ss:$8 sps:$4 sm:$0xff]   ;;  %v6085_v12 = vld [vmem:[%s8505_s18 + $0x10] ss:$8 sps:$4 sm:$0xff]  }
 0x92f   : > { %v4093_v57 = vmax.f32 %v4085_v24, %v4092_v34  ;;  %v4037_v37 = vmul.f32 %v5423_v63, %v8702_v28  ;;  %4951 = vmatpush1.bf16.msra.mxu1 %v6112_v43  ;;  %v6130_v22 = vld [vmem:[#allocation2 + $0xc0] ss:$24 sps:$4 sm:$0xff]   ;;  %v6138_v49 = vld [vmem:[#allocation2 + $0xf4] ss:$24 sps:$4 sm:$0xff]   ;;  %v6136_v21 = vld [vmem:[#allocation2 + $0xf0] ss:$24 sps:$4 sm:$0xff]  }
 0x930   : > { %4952 = vmatprep.subr.bf16.mxu1 %v6120_v39  ;;  %v6144_v11 = vld [vmem:[#allocation2 + $0x124] ss:$24 sps:$4 sm:$0xff]   ;;  %v6142_v58 = vld [vmem:[#allocation2 + $0x120] ss:$24 sps:$4 sm:$0xff]   ;;  %v6150_v38 = vld [vmem:[#allocation2 + $0x154] ss:$24 sps:$4 sm:$0xff]  }
 0x931   : > { %v4098_v14 = vmax.f32 %v4091_v3, %v4093_v57  ;;  %v4096_v42 = vsel %vm1483_vm0, %v4037_v37, -inf  ;;  %v6148_v4 = vld [vmem:[#allocation2 + $0x150] ss:$24 sps:$4 sm:$0xff]   ;;  %v6156_v61 = vld [vmem:[#allocation2 + $0x184] ss:$24 sps:$4 sm:$0xff]  }
 0x932   : > { %v4097_v44 = vmax.f32 %v4089_v51, %v4096_v42  ;;  %v6118_v51 = vld [vmem:[#allocation2 + $0x60] ss:$24 sps:$4 sm:$0xff]   ;;  %v6162_v8 = vld [vmem:[#allocation2 + $0x1b4] ss:$24 sps:$4 sm:$0xff]   ;;  %v6160_v33 = vld [vmem:[#allocation2 + $0x1b0] ss:$24 sps:$4 sm:$0xff]  }
 0x933   : > { %4953 = vmatpush1.bf16.msra.mxu1 %v6118_v51  ;;  %v6154_v3 = vld [vmem:[#allocation2 + $0x180] ss:$24 sps:$4 sm:$0xff]   ;;  %v6168_v24 = vld [vmem:[#allocation2 + $0x1e4] ss:$24 sps:$4 sm:$0xff]   ;;  %v6174_v18 = vld [vmem:[#allocation2 + $0x214] ss:$24 sps:$4 sm:$0xff]  }
 0x934   : > { %v4099_v23 = vmax.f32 %v4095_v19, %v4097_v44  ;;  %4954 = vmatprep.subr.bf16.mxu1 %v6126_v2  ;;  %v6166_v30 = vld [vmem:[#allocation2 + $0x1e0] ss:$24 sps:$4 sm:$0xff]   ;;  %v6172_v46 = vld [vmem:[#allocation2 + $0x210] ss:$24 sps:$4 sm:$0xff]   ;;  %v6180_v7 = vld [vmem:[#allocation2 + $0x244] ss:$24 sps:$4 sm:$0xff]  }
 0x935   : > { %v6178_v62 = vld [vmem:[#allocation2 + $0x240] ss:$24 sps:$4 sm:$0xff]   ;;  %v6186_v54 = vld [vmem:[#allocation2 + $0x274] ss:$24 sps:$4 sm:$0xff]   ;;  %v6184_v34 = vld [vmem:[#allocation2 + $0x270] ss:$24 sps:$4 sm:$0xff]  }
 0x936   : > { %v4100_v9 = vmax.f32 %v4098_v14, %v4099_v23  ;;  %v4117_v63 = vld [vmem:[%s8504_s17] sm:$0x1]  ;;  %v6117_v23 = vld [vmem:[#allocation2 + $0x3c] ss:$24 sps:$4 sm:$0xff]   ;;  %v6196_v39 = vld [vmem:[#allocation2 + $0x2d0] ss:$24 sps:$4 sm:$0xff]  }
 0x937   : > { %4955 = vmatpush1.bf16.msra.mxu1 %v6124_v15  ;;  %v6109_v19 = vld [vmem:[#allocation2 + $0x8] ss:$24 sps:$4 sm:$0xff]   ;;  %v6192_v16 = vld [vmem:[#allocation2 + $0x2a4] ss:$24 sps:$4 sm:$0xff]   ;;  %v6198_v43 = vld [vmem:[#allocation2 + $0x2d4] ss:$24 sps:$4 sm:$0xff]  }
 0x938   : > { %v4101_v26 = vrot.slane %v4100_v9, 4  ;;  %4956 = vmatprep.subr.bf16.mxu1 %v6132_v53  ;;  %v6190_v31 = vld [vmem:[#allocation2 + $0x2a0] ss:$24 sps:$4 sm:$0xff]   ;;  %v6201_v2 = vld [vmem:[#allocation2 + $0x2dc] ss:$24 sps:$4 sm:$0xff]  }
 0x939   : > { %v6193_v59 = vld [vmem:[#allocation2 + $0x2a8] ss:$24 sps:$4 sm:$0xff]   ;;  %v6199_v51 = vld [vmem:[#allocation2 + $0x2d8] ss:$24 sps:$4 sm:$0xff]   ;;  %v6204_v15 = vld [vmem:[#allocation2 + $0x14] ss:$24 sps:$4 sm:$0xff]  }
 0x93a   : > { %v4102_v60 = vmax.f32 %v4100_v9, %v4101_v26  ;;  %v6115_v9 = vld [vmem:[#allocation2 + $0x38] ss:$24 sps:$4 sm:$0xff]   ;;  %v6123_v26 = vld [vmem:[#allocation2 + $0x6c] ss:$24 sps:$4 sm:$0xff]   ;;  %v4203_v53 = vld [vmem:[%s8506_s19] sm:$0x3] }
 0x93b   : > { %4957 = vmatpush1.bf16.msra.mxu1 %v6130_v22  ;;  %v8704_v22 = vld [vmem:[#allocation18_spill] sm:$0xff] }
 0x93c   : > { %v4103_v50 = vrot.slane %v4102_v60, 2  ;;  %4958 = vmatprep.subr.bf16.mxu1 %v6138_v49  ;;  %v4288_v49 = vrot.slane %v4203_v53, %v8704_v22 }
 0x93e   : > { %v4104_v5 = vmax.f32 %v4102_v60, %v4103_v50  ;;  %v6121_v60 = vld [vmem:[#allocation2 + $0x68] ss:$24 sps:$4 sm:$0xff]   ;;  %v6129_v50 = vld [vmem:[#allocation2 + $0x9c] ss:$24 sps:$4 sm:$0xff]  }
 0x93f   : > { %4959 = vmatpush1.bf16.msra.mxu1 %v6136_v21  ;;  %v8705_v21 = vld [vmem:[#allocation17_spill] sm:$0xff] }
 0x940   : > { %v4105_v45 = vrot.slane %v4104_v5, 1  ;;  %4960 = vmatprep.subr.bf16.mxu1 %v6144_v11  ;;  %v4292_v11 = vrot.slane %v4203_v53, %v8705_v21 }
 0x942   : > { %v4106_v20 = vmax.f32 %v4104_v5, %v4105_v45  ;;  %v6127_v5 = vld [vmem:[#allocation2 + $0x98] ss:$24 sps:$4 sm:$0xff]   ;;  %v6135_v45 = vld [vmem:[#allocation2 + $0xcc] ss:$24 sps:$4 sm:$0xff]  }
 0x943   : > { %4961 = vmatpush1.bf16.msra.mxu1 %v6142_v58 }
 0x944   : > { %v4107_v47 = vmax.f32 %v4106_v20, 0.0  ;;  %4962 = vmatprep.subr.bf16.mxu1 %v6150_v38  ;;  %v6133_v20 = vld [vmem:[#allocation2 + $0xc8] ss:$24 sps:$4 sm:$0xff]  }
 0x946   : > { %v4108_v6 = vpack.c.bf16 %v4107_v47, %v4107_v47  ;;  %v6141_v47 = vld [vmem:[#allocation2 + $0xfc] ss:$24 sps:$4 sm:$0xff]  }
 0x947   : > { %4963 = vmatpush1.bf16.msra.mxu1 %v6148_v4 }
 0x948   : > { %5937 = vmatmul.mubr.msk.bf16.vlgmr.msra.gmra.mrb[96].mxu0 %vm1483_vm0, %v4108_v6  ;;  %4964 = vmatprep.subr.bf16.mxu1 %v6156_v61  ;;  %v6147_v6 = vld [vmem:[#allocation2 + $0x12c] ss:$24 sps:$4 sm:$0xff]  }
 0x949   : > { %4296 = vmatpush1.bf16.msra.mxu0 %v6082_v0  ;;  %4327 = vmatprep.mubr.bf16.mxu0 %v8703_v56  ;;  %v6139_v0 = vld [vmem:[#allocation2 + $0xf8] ss:$24 sps:$4 sm:$0xff]  }
 0x94a   : > { %4297 = vmatprep.subr.bf16.mxu0 %v6087_v40  ;;  %v6145_v40 = vld [vmem:[#allocation2 + $0x128] ss:$24 sps:$4 sm:$0xff]   ;;  %v6151_v56 = vld [vmem:[#allocation2 + $0x158] ss:$24 sps:$4 sm:$0xff]  }
 0x94b   : > { %4965 = vmatpush1.bf16.msra.mxu1 %v6154_v3 }
 0x94c   : > { %4966 = vmatprep.subr.bf16.mxu1 %v6162_v8 }
 0x94d   : > { %4298 = vmatpush1.bf16.msra.mxu0 %v6085_v12  ;;  %v6153_v12 = vld [vmem:[#allocation2 + $0x15c] ss:$24 sps:$4 sm:$0xff]  }
 0x94e   : > { %4299 = vmatprep.subr.bf16.mxu0 %v6090_v48  ;;  %v6159_v48 = vld [vmem:[#allocation2 + $0x18c] ss:$24 sps:$4 sm:$0xff]  }
 0x94f   : > { %4967 = vmatpush1.bf16.msra.mxu1 %v6160_v33 }
 0x950   : > { %4968 = vmatprep.subr.bf16.mxu1 %v6168_v24 }
 0x951   : > { %4300 = vmatpush1.bf16.msra.mxu0 %v6088_v1  ;;  %v6157_v1 = vld [vmem:[#allocation2 + $0x188] ss:$24 sps:$4 sm:$0xff]  }
 0x952   : > { %4301 = vmatprep.subr.bf16.mxu0 %v6093_v25  ;;  %v6165_v25 = vld [vmem:[#allocation2 + $0x1bc] ss:$24 sps:$4 sm:$0xff]  }
 0x953   : > { %4969 = vmatpush1.bf16.msra.mxu1 %v6166_v30 }
 0x954   : > { %4970 = vmatprep.subr.bf16.mxu1 %v6174_v18  ;;  %v6202_v18 = vld [vmem:[#allocation2 + $0x10] ss:$24 sps:$4 sm:$0xff]  }
 0x955   : > { %4302 = vmatpush1.bf16.msra.mxu0 %v6091_v29  ;;  %v6163_v29 = vld [vmem:[#allocation2 + $0x1b8] ss:$24 sps:$4 sm:$0xff]  }
 0x956   : > { %4303 = vmatprep.subr.bf16.mxu0 %v6096_v36  ;;  %v6171_v36 = vld [vmem:[#allocation2 + $0x1ec] ss:$24 sps:$4 sm:$0xff]  }
 0x957   : > { %4971 = vmatpush1.bf16.msra.mxu1 %v6172_v46 }
 0x958   : > { %4972 = vmatprep.subr.bf16.mxu1 %v6180_v7  ;;  %v6207_v7 = vld [vmem:[#allocation2 + $0x44] ss:$24 sps:$4 sm:$0xff]  }
 0x959   : > { %4304 = vmatpush1.bf16.msra.mxu0 %v6094_v27  ;;  %v6169_v27 = vld [vmem:[#allocation2 + $0x1e8] ss:$24 sps:$4 sm:$0xff]  }
 0x95a   : > { %4305 = vmatprep.subr.bf16.mxu0 %v6099_v55  ;;  %v6177_v55 = vld [vmem:[#allocation2 + $0x21c] ss:$24 sps:$4 sm:$0xff]  }
 0x95b   : > { %4973 = vmatpush1.bf16.msra.mxu1 %v6178_v62  ;;  %v6205_v62 = vld [vmem:[#allocation2 + $0x40] ss:$24 sps:$4 sm:$0xff]  }
 0x95c   : > { %4974 = vmatprep.subr.bf16.mxu1 %v6186_v54  ;;  %v6210_v54 = vld [vmem:[#allocation2 + $0x74] ss:$24 sps:$4 sm:$0xff]  }
 0x95d   : > { %4306 = vmatpush1.bf16.msra.mxu0 %v6097_v10  ;;  %v6175_v10 = vld [vmem:[#allocation2 + $0x218] ss:$24 sps:$4 sm:$0xff]  }
 0x95e   : > { %4307 = vmatprep.subr.bf16.mxu0 %v6102_v17  ;;  %v6183_v17 = vld [vmem:[#allocation2 + $0x24c] ss:$24 sps:$4 sm:$0xff]  }
 0x95f   : > { %4975 = vmatpush1.bf16.msra.mxu1 %v6184_v34  ;;  %v6208_v34 = vld [vmem:[#allocation2 + $0x70] ss:$24 sps:$4 sm:$0xff]  }
 0x960   : > { %4976 = vmatprep.subr.bf16.mxu1 %v6192_v16 }
 0x961   : > { %4308 = vmatpush1.bf16.msra.mxu0 %v6100_v32  ;;  %v6181_v32 = vld [vmem:[#allocation2 + $0x248] ss:$24 sps:$4 sm:$0xff]  }
 0x962   : > { %4309 = vmatprep.subr.bf16.mxu0 %v6105_v52  ;;  %v6189_v52 = vld [vmem:[#allocation2 + $0x27c] ss:$24 sps:$4 sm:$0xff]  }
 0x963   : > { %4977 = vmatpush1.bf16.msra.mxu1 %v6190_v31 }
 0x964   : > { %4978 = vmatprep.subr.bf16.mxu1 %v6198_v43 }
 0x965   : > { %4310 = vmatpush1.bf16.msra.mxu0 %v6103_v41  ;;  %v6187_v41 = vld [vmem:[#allocation2 + $0x278] ss:$24 sps:$4 sm:$0xff]  }
 0x966   : > { %4989 = vmatprep.subr.bf16.mxu0 %v6111_v13  ;;  %v6195_v13 = vld [vmem:[#allocation2 + $0x2ac] ss:$24 sps:$4 sm:$0xff]  }
 0x967   : > { %4979 = vmatpush1.bf16.msra.mxu1 %v6196_v39 }
 0x968   : > { %5030 = vmatprep.subr.bf16.mxu1 %v6204_v15 }
 0xa1b   : > { %v4179_v35 = vpop.f32.mrb[96].mxu0 }
 0xa1c   : > { %v4180_v57 = vadd.f32 %v4179_v35, %v4117_v63  ;;  %v5938_v28 = vpop.f32.mrb[97].mxu0  ;;  %v6213_v63 = vld [vmem:[#allocation2 + $0xa4] ss:$24 sps:$4 sm:$0xff]   ;;  %v6211_v35 = vld [vmem:[#allocation2 + $0xa0] ss:$24 sps:$4 sm:$0xff]  }
 0xa1d   : > { %v4182_v37 = vpop.f32.mrb[98].mxu0  ;;  %v6214_v28 = vld [vmem:[#allocation2 + $0xd0] ss:$24 sps:$4 sm:$0xff]  }
 0xa1e   : > { %v4185_v14 = vmax.f32 %v4180_v57, 0.0  ;;  %v5939_v42 = vpop.f32.mrb[99].mxu0  ;;  %v6216_v57 = vld [vmem:[#allocation2 + $0xd4] ss:$24 sps:$4 sm:$0xff]   ;;  %v6219_v37 = vld [vmem:[#allocation2 + $0x104] ss:$24 sps:$4 sm:$0xff]  }
 0xa1f   : > { %v6222_v42 = vld [vmem:[#allocation2 + $0x134] ss:$24 sps:$4 sm:$0xff]  }
 0xa20   : > { %v4186_v44 = vpack.c.bf16 %v4185_v14, %v4185_v14  ;;  %v6217_v14 = vld [vmem:[#allocation2 + $0x100] ss:$24 sps:$4 sm:$0xff]  }
 0xa22   : > { %4328 = vmatmul.mubr.bf16.vlgmr.msra.gmra.mrb[100].mxu0 %v4186_v44  ;;  %v6225_v44 = vld [vmem:[#allocation2 + $0x164] ss:$24 sps:$4 sm:$0xff]  }
 0xa23   : > { %4990 = vmatpush1.bf16.msra.mxu0 %v6109_v19  ;;  %v6220_v19 = vld [vmem:[#allocation2 + $0x130] ss:$24 sps:$4 sm:$0xff]  }
 0xa24   : > { %4991 = vmatprep.subr.bf16.mxu0 %v6117_v23  ;;  %v6223_v23 = vld [vmem:[#allocation2 + $0x160] ss:$24 sps:$4 sm:$0xff]  }
 0xa27   : > { %4992 = vmatpush1.bf16.msra.mxu0 %v6115_v9  ;;  %v6228_v9 = vld [vmem:[#allocation2 + $0x194] ss:$24 sps:$4 sm:$0xff]  }
 0xa28   : > { %4993 = vmatprep.subr.bf16.mxu0 %v6123_v26  ;;  %v6226_v26 = vld [vmem:[#allocation2 + $0x190] ss:$24 sps:$4 sm:$0xff]  }
 0xa2b   : > { %4994 = vmatpush1.bf16.msra.mxu0 %v6121_v60  ;;  %v6231_v60 = vld [vmem:[#allocation2 + $0x1c4] ss:$24 sps:$4 sm:$0xff]  }
 0xa2c   : > { %4995 = vmatprep.subr.bf16.mxu0 %v6129_v50  ;;  %v6229_v50 = vld [vmem:[#allocation2 + $0x1c0] ss:$24 sps:$4 sm:$0xff]  }
 0xa2f   : > { %4996 = vmatpush1.bf16.msra.mxu0 %v6127_v5  ;;  %v6234_v5 = vld [vmem:[#allocation2 + $0x1f4] ss:$24 sps:$4 sm:$0xff]  }
 0xa30   : > { %4997 = vmatprep.subr.bf16.mxu0 %v6135_v45  ;;  %v6232_v45 = vld [vmem:[#allocation2 + $0x1f0] ss:$24 sps:$4 sm:$0xff]  }
 0xa33   : > { %4998 = vmatpush1.bf16.msra.mxu0 %v6133_v20  ;;  %v6237_v20 = vld [vmem:[#allocation2 + $0x224] ss:$24 sps:$4 sm:$0xff]  }
 0xa34   : > { %4999 = vmatprep.subr.bf16.mxu0 %v6141_v47  ;;  %v6235_v47 = vld [vmem:[#allocation2 + $0x220] ss:$24 sps:$4 sm:$0xff]  }
 0xa37   : > { %5000 = vmatpush1.bf16.msra.mxu0 %v6139_v0  ;;  %v6240_v0 = vld [vmem:[#allocation2 + $0x254] ss:$24 sps:$4 sm:$0xff]  }
 0xa38   : > { %5001 = vmatprep.subr.bf16.mxu0 %v6147_v6  ;;  %v6238_v6 = vld [vmem:[#allocation2 + $0x250] ss:$24 sps:$4 sm:$0xff]  }
 0xa3b   : > { %5002 = vmatpush1.bf16.msra.mxu0 %v6145_v40  ;;  %v6243_v40 = vld [vmem:[#allocation2 + $0x284] ss:$24 sps:$4 sm:$0xff]  }
 0xa3c   : > { %5003 = vmatprep.subr.bf16.mxu0 %v6153_v12  ;;  %v6241_v12 = vld [vmem:[#allocation2 + $0x280] ss:$24 sps:$4 sm:$0xff]  }
 0xa3f   : > { %5004 = vmatpush1.bf16.msra.mxu0 %v6151_v56  ;;  %v6246_v56 = vld [vmem:[#allocation2 + $0x2b4] ss:$24 sps:$4 sm:$0xff]  }
 0xa40   : > { %5005 = vmatprep.subr.bf16.mxu0 %v6159_v48  ;;  %v6244_v48 = vld [vmem:[#allocation2 + $0x2b0] ss:$24 sps:$4 sm:$0xff]  }
 0xa43   : > { %5006 = vmatpush1.bf16.msra.mxu0 %v6157_v1  ;;  %v6249_v1 = vld [vmem:[#allocation2 + $0x2e4] ss:$24 sps:$4 sm:$0xff]  }
 0xa44   : > { %5007 = vmatprep.subr.bf16.mxu0 %v6165_v25  ;;  %v6247_v25 = vld [vmem:[#allocation2 + $0x2e0] ss:$24 sps:$4 sm:$0xff]  }
 0xa47   : > { %5008 = vmatpush1.bf16.msra.mxu0 %v6163_v29 }
 0xa48   : > { %5009 = vmatprep.subr.bf16.mxu0 %v6171_v36 }
 0xa4b   : > { %5010 = vmatpush1.bf16.msra.mxu0 %v6169_v27 }
 0xa4c   : > { %5011 = vmatprep.subr.bf16.mxu0 %v6177_v55 }
 0xa4f   : > { %5012 = vmatpush1.bf16.msra.mxu0 %v6175_v10 }
 0xa50   : > { %5013 = vmatprep.subr.bf16.mxu0 %v6183_v17 }
 0xa53   : > { %5014 = vmatpush1.bf16.msra.mxu0 %v6181_v32 }
 0xa54   : > { %5015 = vmatprep.subr.bf16.mxu0 %v6189_v52 }
 0xa57   : > { %5016 = vmatpush1.bf16.msra.mxu0 %v6187_v41 }
 0xa58   : > { %5017 = vmatprep.subr.bf16.mxu0 %v6195_v13 }
 0xa5b   : > { %5018 = vmatpush1.bf16.msra.mxu0 %v6193_v59 }
 0xa5c   : > { %5019 = vmatprep.subr.bf16.mxu0 %v6201_v2 }
 0xa5f   : > { %5020 = vmatpush1.bf16.msra.mxu0 %v6199_v51 }
 0xaf5   : > { %v4329_v58 = vpop.f32.mrb[100].mxu0 }
 0xaf6   : > { %v4330_v38 = vadd.f32 %v4329_v58, %v4288_v49  ;;  %v4331_v4 = vpop.f32.mrb[101].mxu0 }
 0xaf7   : > { %v4332_v61 = vadd.f32 %v4331_v4, %v4292_v11  ;;  %v4333_v3 = vpop.f32.mrb[102].mxu0 }
 0xaf8   : > { %v4336_v8 = vmax.f32 %v4330_v38, 0.0  ;;  %v4334_v33 = vpop.f32.mrb[103].mxu0 }
 0xaf9   : > { %v4337_v24 = vmax.f32 %v4332_v61, 0.0 }
 0xafa   : > { %v8389_v46 = vpack.c.bf16 %v4336_v8, %v4336_v8 }
 0xafb   : > { %v4339_v30 = vpack.c.bf16 %v4337_v24, %v4337_v24 }
 0xafd   : > { %4980 = vmatprep.mubr.bf16.mxu1 %v4339_v30  ;;  %5021 = vmatprep.mubr.bf16.mxu0 %v4339_v30 }
 0xafe   : > { %4981 = vmatmul.mubr.bf16.vlgmr.msra.gmra.mrb[100].mxu1 %v8389_v46  ;;  %5022 = vmatmul.mubr.bf16.vlgmr.msra.gmra.mrb[104].mxu0 %v8389_v46 }
 0xaff   : > { %5031 = vmatpush1.bf16.msra.mxu1 %v6202_v18  ;;  %5062 = vmatprep.mubr.bf16.mxu1 %v4339_v30 }
 0xb00   : > { %5032 = vmatprep.subr.bf16.mxu1 %v6207_v7 }
 0xb03   : > { %5033 = vmatpush1.bf16.msra.mxu1 %v6205_v62 }
 0xb04   : > { %5034 = vmatprep.subr.bf16.mxu1 %v6210_v54 }
 0xb07   : > { %5035 = vmatpush1.bf16.msra.mxu1 %v6208_v34 }
 0xb08   : > { %5036 = vmatprep.subr.bf16.mxu1 %v6213_v63 }
 0xb0b   : > { %5037 = vmatpush1.bf16.msra.mxu1 %v6211_v35 }
 0xb0c   : > { %5038 = vmatprep.subr.bf16.mxu1 %v6216_v57 }
 0xb0f   : > { %5039 = vmatpush1.bf16.msra.mxu1 %v6214_v28 }
 0xb10   : > { %5040 = vmatprep.subr.bf16.mxu1 %v6219_v37 }
 0xb13   : > { %5041 = vmatpush1.bf16.msra.mxu1 %v6217_v14 }
 0xb14   : > { %5042 = vmatprep.subr.bf16.mxu1 %v6222_v42 }
 0xb17   : > { %5043 = vmatpush1.bf16.msra.mxu1 %v6220_v19 }
 0xb18   : > { %5044 = vmatprep.subr.bf16.mxu1 %v6225_v44 }
 0xb1b   : > { %5045 = vmatpush1.bf16.msra.mxu1 %v6223_v23 }
 0xb1c   : > { %5046 = vmatprep.subr.bf16.mxu1 %v6228_v9 }
 0xb1f   : > { %5047 = vmatpush1.bf16.msra.mxu1 %v6226_v26 }
 0xb20   : > { %5048 = vmatprep.subr.bf16.mxu1 %v6231_v60 }
 0xb23   : > { %5049 = vmatpush1.bf16.msra.mxu1 %v6229_v50 }
 0xb24   : > { %5050 = vmatprep.subr.bf16.mxu1 %v6234_v5 }
 0xb27   : > { %5051 = vmatpush1.bf16.msra.mxu1 %v6232_v45 }
 0xb28   : > { %5052 = vmatprep.subr.bf16.mxu1 %v6237_v20 }
 0xb2b   : > { %5053 = vmatpush1.bf16.msra.mxu1 %v6235_v47 }
 0xb2c   : > { %5054 = vmatprep.subr.bf16.mxu1 %v6240_v0 }
 0xb2f   : > { %5055 = vmatpush1.bf16.msra.mxu1 %v6238_v6 }
 0xb30   : > { %5056 = vmatprep.subr.bf16.mxu1 %v6243_v40 }
 0xb33   : > { %5057 = vmatpush1.bf16.msra.mxu1 %v6241_v12 }
 0xb34   : > { %5058 = vmatprep.subr.bf16.mxu1 %v6246_v56 }
 0xb37   : > { %5059 = vmatpush1.bf16.msra.mxu1 %v6244_v48 }
 0xb38   : > { %5060 = vmatprep.subr.bf16.mxu1 %v6249_v1 }
 0xb3b   : > { %5061 = vmatpush1.bf16.msra.mxu1 %v6247_v25 }
 0xb3e   : > { %5063 = vmatmul.mubr.bf16.vlgmr.msra.gmra.mrb[104].mxu1 %v8389_v46 }
 0xb3f   : > { %6303 = shalt.err (!%p6300_p7)
}
 0xb40   : > { %s6304_s24 = scalar_lea.hbm %s8398_s6, 4096  ;;  %s6308_s2 = scalar_lea.hbm %s8509_s22, 8192 }
 0xb41   : > { %p6305_p8 = scmp.ne.s32.totalorder %s8398_s6, %s6304_s24  ;;  %p6309_p1 = scmp.lt.u32.totalorder %s8398_s6, %s8509_s22 }
 0xb42   : > { %p6310_p0 = scmp.lt.u32.totalorder %s6308_s2, %s6304_s24  ;;  %p6312_p6 = scmp.lt.u32.totalorder %s6304_s24, %s8398_s6 }
 0xb43   : > { %p6306_p11 = pnand %p6305_p8, %p8706_p9 }
 0xb44   : > { %p6311_p5 = por %p6310_p0, %p6309_p1 }
 0xb45   : > { %p6307_p13 = pneg %p6306_p11 }
 0xb46   : > { %p6313_p10 = por %p6312_p6, %p6311_p5 }
 0xb48   : > { %p6314_p12 = pnand %p6313_p10, %p6307_p13 }
 0xb4a   : > { %6317 = shalt.err (!%p6314_p12)
}
 0xb4b   : > { %s6399_s4 = smov 128   ;;  %s6400_s3 = smov 8   ;;  %v4436_v29 = vld [vmem:[%s8508_s21] sm:$0x3f]  ;;  %v8707_v36 = vld [vmem:[#allocation16_spill] sm:$0xff]  ;;  %v8709_v26 = vlaneseq }
 0xb4c   : > { %5946 = dma.vmem_to_hbm [thread:$0]  (%p8706_p9), %s8401_s8, 4096, %s8398_s6, %s5130_s9, %s6399_s4, %s6399_s4, %s6400_s3   ;;  %v4932_v27 = vsub.s32 3, %v8707_v36  ;;  %v4921_v55 = vrot.slane %v4436_v29, %v8704_v22  ;;  %v8708_v10 = vsub.s32 2, %v8707_v36  ;;  %v4925_v32 = vrot.slane %v4436_v29, %v8705_v21 }
 0xb4d   : > { %v6401_v22 = vmov 1966171168   ;;  %v4936_v46 = vsub.s32 4, %v8707_v36  ;;  %v4940_v7 = vsub.s32 5, %v8707_v36  ;;  %s5940_s6 = smul.u32 6, %s7486_s1  ;;  %vm5126_vm0 = vcmp.lt.s32.totalorder %v8709_v26, 768 }
 0xb4e   : > { %v4929_v17 = vrot.slane %v4436_v29, %v8708_v10  ;;  %v4933_v52 = vrot.slane %v4436_v29, %v4932_v27  ;;  %v5087_v11 = vunpack.c.l.s4 %v6401_v22  ;;  %s5941_s8 = smul.u32 96, %s6544_s5  ;;  %s5135_s4 = scalar_lea.sflag [#allocation7], %s7486_s1 }
 0xb4f   : > { %v4937_v62 = vrot.slane %v4436_v29, %v4936_v46  ;;  %v4941_v54 = vrot.slane %v4436_v29, %v4940_v7  ;;  %s729_s9 = scalar_lea.vmem [#allocation6], %s5940_s6  ;;  %s6402_s3 = smov [#allocation6]  }
 0xb50   : > { %v5088_v21 = vunpack.c.0.s8 %v5087_v11  ;;  %s5165_s24 = sshll.u32 %s729_s9, 4  ;;  %s8444_s0 = scalar_lea.hbm %s8510_s23, %s5941_s8  ;;  %s8446_s24 = int_to_ptr.vmem [resolvable:$true] %s5165_s24 }
 0xb51   : > { %s6318_s5 = scalar_lea.vmem %s8446_s24, 96  ;;  %s6322_s10 = sshll.u32 %s6402_s3, 4  ;;  %s6323_s10 = int_to_ptr.vmem [resolvable:$false] %s6322_s10 }
 0xb52   : > { %v5091_v4 = vsub.s32 %v5088_v21, %v8707_v36  ;;  %p6319_p2 = scmp.ne.s32.totalorder %s8446_s24, %s6318_s5  ;;  %s6324_s11 = scalar_lea.vmem %s6323_s10, 192 }
 0xb53   : > { %p6325_p7 = scmp.lt.s32.totalorder %s8446_s24, %s6323_s10  ;;  %p6326_p8 = scmp.lt.s32.totalorder %s6324_s11, %s6318_s5 }
 0xb54   : > { %p6320_p3 = pnand %p6319_p2, %p8706_p9 }
 0xb55   : > { %p6327_p11 = por %p6326_p8, %p6325_p7 }
 0xb56   : > { %p6321_p4 = pneg %p6320_p3 }
 0xb58   : > { %p6328_p13 = pnand %p6327_p11, %p6321_p4 }
 0xbd1   : > { %v4982_v41 = vpop.f32.mrb[100].mxu1  ;;  %v5023_v16 = vpop.f32.mrb[104].mxu0 }
 0xbd2   : > { %v4983_v31 = vadd.f32 %v4982_v41, %v4921_v55  ;;  %v5024_v13 = vadd.f32 %v5023_v16, %v4929_v17  ;;  %v4984_v59 = vpop.f32.mrb[101].mxu1  ;;  %v5025_v43 = vpop.f32.mrb[105].mxu0 }
 0xbd3   : > { %v4985_v39 = vadd.f32 %v4984_v59, %v4925_v32  ;;  %v5026_v51 = vadd.f32 %v5025_v43, %v4933_v52  ;;  %v4986_v2 = vpop.f32.mrb[102].mxu1  ;;  %v5027_v15 = vpop.f32.mrb[106].mxu0 }
 0xbd4   : > { %6250 = vtanh.f32 %v4983_v31  ;;  %v4987_v53 = vpop.f32.mrb[103].mxu1  ;;  %v5028_v49 = vpop.f32.mrb[107].mxu0 }
 0xbd5   : > { %6252 = vtanh.f32 %v5024_v13 }
 0xbd6   : > { %6254 = vtanh.f32 %v4985_v39 }
 0xbd7   : > { %6256 = vtanh.f32 %v5026_v51 }
 0xbde   : > { %v6251_v58 = vpop.eup %6250 }
 0xbdf   : > { %v6253_v38 = vpop.eup %6252 }
 0xbe0   : > { %v6255_v61 = vpop.eup %6254 }
 0xbe1   : > { %v6257_v3 = vpop.eup %6256  ;;  %v5083_v8 = vcombine.low %v6251_v58, %v6255_v61 }
 0xbe2   : > { %v5084_v33 = vcombine.low %v6253_v38, %v6257_v3 }
 0xbe3   : > { %v5092_v24 = vrot.slane %v5083_v8, %v5091_v4 }
 0xbe4   : > { %v5099_v30 = vrot.slane %v5084_v33, %v5091_v4 }
 0xbe6   : > { %v5107_v18 = vcombine.low %v5092_v24, %v5099_v30 }
 0xbe8   : > { %v5114_v23 = vrot.slane %v5107_v18, %v5091_v4 }
 0xc11   : > { %v5064_v34 = vpop.f32.mrb[104].mxu1 }
 0xc12   : > { %v5065_v63 = vadd.f32 %v5064_v34, %v4937_v62  ;;  %v5066_v35 = vpop.f32.mrb[105].mxu1 }
 0xc13   : > { %v5067_v57 = vadd.f32 %v5066_v35, %v4941_v54  ;;  %v5068_v28 = vpop.f32.mrb[106].mxu1 }
 0xc14   : > { %6258 = vtanh.f32 %v5065_v63  ;;  %v5069_v37 = vpop.f32.mrb[107].mxu1 }
 0xc15   : > { %6260 = vtanh.f32 %v5067_v57 }
 0xc1e   : > { %v6259_v14 = vpop.eup %6258 }
 0xc1f   : > { %v6261_v42 = vpop.eup %6260 }
 0xc20   : > { %v5085_v19 = vcombine.low %v6259_v14, %v6261_v42 }
 0xc22   : > { %v5106_v44 = vrot.slane %v5085_v19, %v5091_v4 }
 0xc24   : > { %v5121_v9 = vrot.slane %v5106_v44, %v5091_v4 }
 0xc26   : > { %v5122_v60 = vcombine.low %v5114_v23, %v5121_v9 }
 0xc28   : > { %5128 = vst.msk [vmem:[%s729_s9] sm:$0x3f] %vm5126_vm0, %v5122_v60 }
 0xc29   : > { %6331 = shalt.err (!%p6328_p13)
}
 0xc2a   : > { %s6332_s1 = scalar_lea.hbm %s8444_s0, 96  ;;  %s6336_s9 = scalar_lea.hbm %s8510_s23, 192 }
 0xc2b   : > { %p6333_p1 = scmp.ne.s32.totalorder %s8444_s0, %s6332_s1  ;;  %p6337_p6 = scmp.lt.u32.totalorder %s8444_s0, %s8510_s23 }
 0xc2c   : > { %p6338_p10 = scmp.lt.u32.totalorder %s6336_s9, %s6332_s1  ;;  %p6340_p2 = scmp.lt.u32.totalorder %s6332_s1, %s8444_s0 }
 0xc2d   : > { %p6334_p0 = pnand %p6333_p1, %p8706_p9 }
 0xc2e   : > { %p6339_p12 = por %p6338_p10, %p6337_p6 }
 0xc2f   : > { %p6335_p5 = pneg %p6334_p0 }
 0xc30   : > { %p6341_p3 = por %p6340_p2, %p6339_p12 }
 0xc32   : > { %p6342_p4 = pnand %p6341_p3, %p6335_p5 }
 0xc34   : > { %6345 = shalt.err (!%p6342_p4)
}
 0xc35   : > { %5947 = dma.vmem_to_hbm [thread:$0]  (%p8706_p9), %s8446_s24, 96, %s8444_s0, %s5135_s4  }
 0xc36 PF: > { %s8710_s5 = sld [smem:[#allocation11_spill]]  ;;  %s8711_s3 = sld [smem:[#allocation15_spill]] }
 0xc37   : > { %p5963_p7 = scmp.ge.s32.totalorder %s6388_s25, 2 }
 0xc3c   : > { %s5177_s10 = sand.u32 1, %s8710_s5   ;;  %p8712_p8 = scmp.ne.s32.totalorder %s8711_s3, 0 }
 0xc3d   : > { %s5178_s11 = scalar_lea.sflag [#allocation4], %s5177_s10 }
 0xc3e   : > { %p5955_p11 = pnand %p5963_p7, %p8712_p8 }
 0xc40   : > { %6367 = dma.done.wait (!%p5955_p11), %s5178_s11, 4096  }
 0xc41   : > { %6369 = vsyncadd (!%p5955_p11), %s5178_s11, 4294963200  ;;  %s5187_s1 = scalar_lea.sflag [#allocation7], %s5177_s10 }
 0xc42   : > { %6371 = dma.done.wait (!%p5955_p11), %s5187_s1, 96  }
 0xc43   : > { %6373 = vsyncadd (!%p5955_p11), %s5187_s1, 4294967200  ;;  %s8713_s25 = sld [smem:[#allocation13_spill]]  ;;  %s8714_s7 = sld [smem:[#allocation12_spill]] }
 0xc44   : > { %s8715_s24 = sld [smem:[#allocation14_spill]]  ;;  %s8716_s4 = smov %s6380_s30 }
 0xc49   : > { %p38_p9 = scmp.ge.s32.totalorder %s8713_s25, 4   ;;  %s8717_s30 = smov %s8714_s7 }
 0xc4b   :  { %40 = sbr.rel (!%p38_p9) target bundleno = 19 (0x13), region = 165 }
 0xc52   :  { %5192 = vsyncpa [#allocation3], 1 }
 0xc53   :  { %5194 = vsyncpa [#allocation3 + $0x1], 1 }
 0xc54   :  { %5195 = vsyncpa [#allocation4], 1 }
 0xc55   :  { %5197 = vsyncpa [#allocation4 + $0x1], 1 }
 0xc56   :  { %5198 = vsyncpa [#allocation7], 1 }
 0xc57   :  { %5200 = vsyncpa [#allocation7 + $0x1], 1 }

</bundles_post_ra>
